<compile_context>
chip_gen: v7x
topology: tpu7x:2x2x1
jax: 0.10.0
libtpu: 0.0.40
codegen_flags: <defaults>
</compile_context>

<pallas_src>
import functools

import jax
import jax.numpy as jnp
from jax.experimental import pallas as pl
from jax.experimental.pallas import tpu as pltpu


HID = 512  # hidden width of each FC head (NaturalHead / VisionHead)


def _round_up(x, m):
    return ((x + m - 1) // m) * m


# ----------------------------------------------------------------------------
# Pallas kernel 1: generic fused GEMM   out = act(x @ w + b)
#   grid = (M tiles [parallel], K tiles [arbitrary]), f32 accumulator scratch
# ----------------------------------------------------------------------------
def _gemm_bias_act_kernel(x_ref, w_ref, b_ref, o_ref, acc_ref, *, relu):
    k = pl.program_id(1)

    @pl.when(k == 0)
    def _init():
        acc_ref[...] = jnp.zeros_like(acc_ref)

    acc_ref[...] += jnp.dot(x_ref[...], w_ref[...],
                            preferred_element_type=jnp.float32)

    @pl.when(k == pl.num_programs(1) - 1)
    def _finalize():
        r = acc_ref[...] + b_ref[...]        # bias / ReLU in f32 (v5e VPU safe)
        if relu:
            r = jnp.maximum(r, 0.0)
        o_ref[...] = r.astype(o_ref.dtype)


def gemm_bias_act(x, w_p, b_p, *, n_out, relu, k_tile=None):
    """act(x @ w_p + b_p)[:M, :n_out]; bf16 MXU inputs, f32 accumulation.

    x:   (M, K) f32 activations (padded & cast here — the only per-call glue)
    w_p: (Kp, Np) bf16, pre-padded / pre-transposed once in prepare_params()
    b_p: (1, Np)  f32, pre-padded
    """
    M, K = x.shape
    Kp, Np = w_p.shape

    Mp = _round_up(M, 8)
    # Two M tiles when big enough -> v7x's 2 TensorCores can share conv1's
    # GEMM (M=800); harmless on v5e / v6e (single TC).
    tm = Mp // 2 if (Mp >= 256 and (Mp // 2) % 8 == 0) else Mp
    tk = k_tile if k_tile is not None else Kp
    assert Kp % tk == 0 and tk % 128 == 0 and Mp % tm == 0

    xp = jnp.pad(x, ((0, Mp - M), (0, Kp - K))).astype(jnp.bfloat16)

    m_tiles, k_tiles = Mp // tm, Kp // tk
    flops = 2 * Mp * Kp * Np
    bytes_accessed = (Mp * Kp * 2 + m_tiles * Kp * Np * 2
                      + Np * 4 + Mp * Np * 4)

    out = pl.pallas_call(
        functools.partial(_gemm_bias_act_kernel, relu=relu),
        out_shape=jax.ShapeDtypeStruct((Mp, Np), jnp.float32),
        grid=(m_tiles, k_tiles),
        in_specs=[
            pl.BlockSpec((tm, tk), lambda i, k: (i, k)),
            pl.BlockSpec((tk, Np), lambda i, k: (k, 0)),
            pl.BlockSpec((1, Np), lambda i, k: (0, 0)),
        ],
        out_specs=pl.BlockSpec((tm, Np), lambda i, k: (i, 0)),
        scratch_shapes=[pltpu.VMEM((tm, Np), jnp.float32)],
        compiler_params=pltpu.CompilerParams(
            dimension_semantics=("parallel", "arbitrary")),
        cost_estimate=pl.CostEstimate(flops=flops, transcendentals=0,
                                      bytes_accessed=bytes_accessed),
    )(xp, w_p, b_p)
    return out[:M, :n_out]


# ----------------------------------------------------------------------------
# Pallas kernel 2: fully fused FC heads
#   hidden = relu(conv_out @ [Wn1 | Wv1] + [bn1 | bv1])   (K-grid, acc scratch)
#   natural_q = hidden[:, :512] @ Wn2 + bn2               (same kernel body)
#   visual_q  = hidden[:, 512:] @ Wv2 + bv2
# ----------------------------------------------------------------------------
def _heads_kernel(x_ref, w1_ref, b1_ref, wn2_ref, bn2_ref, wv2_ref, bv2_ref,
                  natq_ref, visq_ref, acc_ref):
    k = pl.program_id(0)

    @pl.when(k == 0)
    def _init():
        acc_ref[...] = jnp.zeros_like(acc_ref)

    acc_ref[...] += jnp.dot(x_ref[...], w1_ref[...],
                            preferred_element_type=jnp.float32)

    @pl.when(k == pl.num_programs(0) - 1)
    def _finalize():
        hidden = jnp.maximum(acc_ref[...] + b1_ref[...], 0.0)   # (Mp, 2*HID) f32
        h = hidden.astype(jnp.bfloat16)
        natq_ref[...] = (jnp.dot(h[:, :HID], wn2_ref[...],
                                 preferred_element_type=jnp.float32)
                         + bn2_ref[...])
        visq_ref[...] = (jnp.dot(h[:, HID:], wv2_ref[...],
                                 preferred_element_type=jnp.float32)
                         + bv2_ref[...])


def fused_heads(conv_out, prep, *, n_actions, n_visual_actions, k_tile=640):
    M, K = conv_out.shape
    w1, b1 = prep["h1_w"], prep["h1_b"]
    Kp, H2 = w1.shape                      # (3200, 1024)
    Np = prep["n2_w"].shape[1]             # 128 (padded action dims)
    Mp = _round_up(M, 8)
    tk = k_tile
    assert Kp % tk == 0 and tk % 128 == 0

    xp = jnp.pad(conv_out, ((0, Mp - M), (0, Kp - K))).astype(jnp.bfloat16)

    flops = 2 * Mp * Kp * H2 + 2 * Mp * HID * 2 * Np
    bytes_accessed = (Mp * Kp * 2 + Kp * H2 * 2 + 2 * HID * Np * 2
                      + H2 * 4 + 2 * Np * 4 + 2 * Mp * Np * 4)

    natq, visq = pl.pallas_call(
        _heads_kernel,
        out_shape=(jax.ShapeDtypeStruct((Mp, Np), jnp.float32),
                   jax.ShapeDtypeStruct((Mp, Np), jnp.float32)),
        grid=(Kp // tk,),
        in_specs=[
            pl.BlockSpec((Mp, tk), lambda k: (0, k)),
            pl.BlockSpec((tk, H2), lambda k: (k, 0)),
            pl.BlockSpec((1, H2), lambda k: (0, 0)),
            pl.BlockSpec((HID, Np), lambda k: (0, 0)),
            pl.BlockSpec((1, Np), lambda k: (0, 0)),
            pl.BlockSpec((HID, Np), lambda k: (0, 0)),
            pl.BlockSpec((1, Np), lambda k: (0, 0)),
        ],
        out_specs=(pl.BlockSpec((Mp, Np), lambda k: (0, 0)),
                   pl.BlockSpec((Mp, Np), lambda k: (0, 0))),
        scratch_shapes=[pltpu.VMEM((Mp, H2), jnp.float32)],
        compiler_params=pltpu.CompilerParams(
            dimension_semantics=("arbitrary",)),
        cost_estimate=pl.CostEstimate(flops=flops, transcendentals=0,
                                      bytes_accessed=bytes_accessed),
    )(xp, w1, b1, prep["n2_w"], prep["n2_b"], prep["v2_w"], prep["v2_b"])

    return natq[:M, :n_actions], visq[:M, :n_visual_actions]


# ----------------------------------------------------------------------------
# Conv as im2col (one XLA op) + Pallas GEMM
# ----------------------------------------------------------------------------
def conv2d_relu(x_nhwc, w_p, b_p, *, ksize, stride, oc):
    """NHWC conv (valid padding) + bias + ReLU, math identical to nn.Conv2d."""
    N, H, W, C = x_nhwc.shape
    kh, kw = ksize
    oh = (H - kh) // stride + 1
    ow = (W - kw) // stride + 1
    # TODO(synk): patch extraction stays as XLA glue; an in-kernel (kh,kw)
    # accumulation grid would avoid materializing the expanded patch tensor.
    patches = jax.lax.conv_general_dilated_patches(
        x_nhwc, filter_shape=(kh, kw), window_strides=(stride, stride),
        padding="VALID", dimension_numbers=("NHWC", "HWIO", "NHWC"))
    # patch feature order is (c, kh, kw) with c slowest -> matches the
    # (IC, KH, KW, OC) weight reshape done once in prepare_params().
    cols = patches.reshape(N * oh * ow, C * kh * kw)
    out = gemm_bias_act(cols, w_p, b_p, n_out=oc, relu=True)
    return out.reshape(N, oh, ow, oc)


# ----------------------------------------------------------------------------
# Parameters: raw (PyTorch-layout) init + one-time Pallas-friendly preparation
# ----------------------------------------------------------------------------
def init_params(key, in_channels, n_actions, n_visual_actions):
    ks = jax.random.split(key, 14)
    scale = 0.05

    def rnd(k, shape):
        return jax.random.normal(k, shape, dtype=jnp.float32) * scale

    return {
        # ConvTorso (PyTorch OIHW)
        "conv1_w": rnd(ks[0], (32, in_channels, 8, 8)),
        "conv1_b": rnd(ks[1], (32,)),
        "conv2_w": rnd(ks[2], (64, 32, 4, 4)),
        "conv2_b": rnd(ks[3], (64,)),
        "conv3_w": rnd(ks[4], (64, 64, 3, 3)),
        "conv3_b": rnd(ks[5], (64,)),
        # NaturalHead (stored transposed: (in, out))
        "fcn1_w": rnd(ks[6], (64 * 7 * 7, HID)),
        "fcn1_b": rnd(ks[7], (HID,)),
        "fcn2_w": rnd(ks[8], (HID, n_actions)),
        "fcn2_b": rnd(ks[9], (n_actions,)),
        # VisionHead (stored transposed: (in, out))
        "fcv1_w": rnd(ks[10], (64 * 7 * 7, HID)),
        "fcv1_b": rnd(ks[11], (HID,)),
        "fcv2_w": rnd(ks[12], (HID, n_visual_actions)),
        "fcv2_b": rnd(ks[13], (n_visual_actions,)),
    }


def prepare_params(p):
    """One-time weight transform: GEMM layout, padding, head fusion, bf16."""
    def prep_conv(w_oihw, b):
        OC, IC, KH, KW = w_oihw.shape
        K = IC * KH * KW
        Kp, Np = _round_up(K, 128), _round_up(OC, 128)
        w_mat = jnp.transpose(w_oihw, (1, 2, 3, 0)).reshape(K, OC)  # (ic,kh,kw) rows
        w_pad = jnp.pad(w_mat, ((0, Kp - K), (0, Np - OC))).astype(jnp.bfloat16)
        b_pad = jnp.pad(b, (0, Np - OC)).astype(jnp.float32).reshape(1, Np)
        return w_pad, b_pad

    def prep_fc2(w, b, np_out):
        K, Nv = w.shape
        Kp = _round_up(K, 128)
        w_pad = jnp.pad(w, ((0, Kp - K), (0, np_out - Nv))).astype(jnp.bfloat16)
        b_pad = jnp.pad(b, (0, np_out - Nv)).astype(jnp.float32).reshape(1, np_out)
        return w_pad, b_pad

    prep = {}
    prep["c1_w"], prep["c1_b"] = prep_conv(p["conv1_w"], p["conv1_b"])
    prep["c2_w"], prep["c2_b"] = prep_conv(p["conv2_w"], p["conv2_b"])
    prep["c3_w"], prep["c3_b"] = prep_conv(p["conv3_w"], p["conv3_b"])

    # Fused first FC layer of both heads: (3136, 1024) -> K padded to 3200.
    w1 = jnp.concatenate([p["fcn1_w"], p["fcv1_w"]], axis=1)   # (3136, 2*HID)
    b1 = jnp.concatenate([p["fcn1_b"], p["fcv1_b"]], axis=0)   # (2*HID,)
    K = w1.shape[0]
    Kp = _round_up(K, 128)
    prep["h1_w"] = jnp.pad(w1, ((0, Kp - K), (0, 0))).astype(jnp.bfloat16)
    prep["h1_b"] = b1.astype(jnp.float32).reshape(1, 2 * HID)

    np2 = _round_up(max(p["fcn2_w"].shape[1], p["fcv2_w"].shape[1]), 128)
    prep["n2_w"], prep["n2_b"] = prep_fc2(p["fcn2_w"], p["fcn2_b"], np2)
    prep["v2_w"], prep["v2_b"] = prep_fc2(p["fcv2_w"], p["fcv2_b"], np2)
    return prep


# ----------------------------------------------------------------------------
# ActiveDQN forward
# ----------------------------------------------------------------------------
def active_dqn_forward(prep, x_nchw, *, n_actions, n_visual_actions):
    """Returns (natural_q, visual_q) — PyTorch forward() returns natural_q and
    stashes visual_q in self._visual_forward."""
    x = jnp.transpose(x_nchw, (0, 2, 3, 1)).astype(jnp.float32)   # NCHW -> NHWC

    h = conv2d_relu(x, prep["c1_w"], prep["c1_b"], ksize=(8, 8), stride=4, oc=32)
    h = conv2d_relu(h, prep["c2_w"], prep["c2_b"], ksize=(4, 4), stride=2, oc=64)
    h = conv2d_relu(h, prep["c3_w"], prep["c3_b"], ksize=(3, 3), stride=1, oc=64)

    # PyTorch flatten order: NCHW channel-major .view(N, -1)
    N = h.shape[0]
    conv_out = jnp.transpose(h, (0, 3, 1, 2)).reshape(N, -1)      # (N, 64*7*7)

    natural_q, visual_q = fused_heads(conv_out, prep,
                                      n_actions=n_actions,
                                      n_visual_actions=n_visual_actions)
    return natural_q, visual_q


# Pure-JAX f32 reference (for a loose numeric check against the bf16 kernels).
def reference_forward(params, x_nchw):
    def conv(x, w, b, s):
        y = jax.lax.conv_general_dilated(
            x, w, window_strides=(s, s), padding="VALID",
            dimension_numbers=("NCHW", "OIHW", "NCHW"))
        return jax.nn.relu(y + b[None, :, None, None])

    h = conv(x_nchw.astype(jnp.float32), params["conv1_w"], params["conv1_b"], 4)
    h = conv(h, params["conv2_w"], params["conv2_b"], 2)
    h = conv(h, params["conv3_w"], params["conv3_b"], 1)
    f = h.reshape(h.shape[0], -1)
    nat = (jax.nn.relu(f @ params["fcn1_w"] + params["fcn1_b"])
           @ params["fcn2_w"] + params["fcn2_b"])
    vis = (jax.nn.relu(f @ params["fcv1_w"] + params["fcv1_b"])
           @ params["fcv2_w"] + params["fcv2_b"])
    return nat, vis


if __name__ == "__main__":
    # The FC heads hard-code 64*7*7 features, which forces an 84x84 input
    # (standard Atari frame); batch and channel counts kept small.
    batch, channels, height, width = 2, 4, 84, 84
    n_actions, n_visual_actions = 6, 5

    key = jax.random.PRNGKey(0)
    pkey, xkey = jax.random.split(key)
    params = init_params(pkey, channels, n_actions, n_visual_actions)
    x = jax.random.uniform(xkey, (batch, channels, height, width),
                           dtype=jnp.float32)

    # One-time weight preparation (outside the jitted hot path).
    prep = prepare_params(params)

    fwd = jax.jit(functools.partial(active_dqn_forward,
                                    n_actions=n_actions,
                                    n_visual_actions=n_visual_actions))
    natural_q, visual_q = fwd(prep, x)
    jax.block_until_ready((natural_q, visual_q))

    assert natural_q.shape == (batch, n_actions)
    assert visual_q.shape == (batch, n_visual_actions)

    # Loose check vs. the f32 reference (kernels run the MXU in bf16).
    ref_n, ref_v = jax.jit(reference_forward)(params, x)
    tol_n = 0.1 * float(jnp.max(jnp.abs(ref_n))) + 2e-2
    tol_v = 0.1 * float(jnp.max(jnp.abs(ref_v))) + 2e-2
    assert float(jnp.max(jnp.abs(natural_q - ref_n))) < tol_n
    assert float(jnp.max(jnp.abs(visual_q - ref_v))) < tol_v

    print("KERNEL_OK")
</pallas_src>

<mosaic_0001>
module attributes {stable_mosaic.version = 11 : i64} {
  func.func @_gemm_bias_act_kernel(%arg0: i32, %arg1: i32, %arg2: memref<400x256xbf16, #tpu.memory_space<vmem>>, %arg3: memref<256x128xbf16, #tpu.memory_space<vmem>>, %arg4: memref<1x128xf32, #tpu.memory_space<vmem>>, %arg5: memref<400x128xf32, #tpu.memory_space<vmem>>, %arg6: memref<400x128xf32, #tpu.memory_space<vmem>>) attributes {dimension_semantics = [#tpu.dimension_semantics<parallel>, #tpu.dimension_semantics<arbitrary>], iteration_bounds = array<i64: 2, 1>, scalar_prefetch = 0 : i64, scratch_operands = 1 : i64, tpu.core_type = #tpu.core_type<tc>, window_params = [{transform_indices = @transform_0, window_bounds = array<i64: 400, 256>}, {transform_indices = @transform_1, window_bounds = array<i64: 256, 128>}, {pipeline_mode = #tpu.pipeline_mode<synchronous>, transform_indices = @transform_2, window_bounds = array<i64: 1, 128>}, {transform_indices = @transform_3, window_bounds = array<i64: 400, 128>}]} {
    %c0_i32 = arith.constant 0 : i32
    %0 = arith.cmpi eq, %arg1, %c0_i32 : i32
    %1 = arith.extui %0 : i1 to i32
    %c0_i32_0 = arith.constant 0 : i32
    %2 = arith.cmpi ne, %1, %c0_i32_0 : i32
    scf.if %2 {
      %cst_10 = arith.constant 0.000000e+00 : f32
      %12 = vector.broadcast %cst_10 : f32 to vector<400x128xf32>
      %c0_11 = arith.constant 0 : index
      %c0_12 = arith.constant 0 : index
      %13 = vector.load %arg6[%c0_11, %c0_12] : memref<400x128xf32, #tpu.memory_space<vmem>>, vector<400x128xf32>
      tpu.vector_store %arg6[%c0_11, %c0_12], %12 {strides = array<i32>} : memref<400x128xf32, #tpu.memory_space<vmem>>, vector<400x128xf32>,
    } else {
    }
    %c0 = arith.constant 0 : index
    %c0_1 = arith.constant 0 : index
    %3 = vector.load %arg6[%c0, %c0_1] : memref<400x128xf32, #tpu.memory_space<vmem>>, vector<400x128xf32>
    %c0_2 = arith.constant 0 : index
    %c0_3 = arith.constant 0 : index
    %4 = vector.load %arg2[%c0_2, %c0_3] : memref<400x256xbf16, #tpu.memory_space<vmem>>, vector<400x256xbf16>
    %c0_4 = arith.constant 0 : index
    %c0_5 = arith.constant 0 : index
    %5 = vector.load %arg3[%c0_4, %c0_5] : memref<256x128xbf16, #tpu.memory_space<vmem>>, vector<256x128xbf16>
    %cst = arith.constant dense<0.000000e+00> : vector<400x128xf32>
    %6 = tpu.matmul %4, %5, %cst {dimension_numbers = #tpu.dot_dimension_numbers<[1], [0], [0], [1], [0, 0, 1, 1], [], []>} : vector<400x256xbf16>, vector<256x128xbf16>, vector<400x128xf32> -> vector<400x128xf32>
    %7 = arith.addf %3, %6 : vector<400x128xf32>
    %c0_6 = arith.constant 0 : index
    %c0_7 = arith.constant 0 : index
    %8 = vector.load %arg6[%c0_6, %c0_7] : memref<400x128xf32, #tpu.memory_space<vmem>>, vector<400x128xf32>
    tpu.vector_store %arg6[%c0_6, %c0_7], %7 {strides = array<i32>} : memref<400x128xf32, #tpu.memory_space<vmem>>, vector<400x128xf32>,
    %c0_i32_8 = arith.constant 0 : i32
    %9 = arith.cmpi eq, %arg1, %c0_i32_8 : i32
    %10 = arith.extui %9 : i1 to i32
    %c0_i32_9 = arith.constant 0 : i32
    %11 = arith.cmpi ne, %10, %c0_i32_9 : i32
    scf.if %11 {
      %c0_10 = arith.constant 0 : index
      %c0_11 = arith.constant 0 : index
      %12 = vector.load %arg6[%c0_10, %c0_11] : memref<400x128xf32, #tpu.memory_space<vmem>>, vector<400x128xf32>
      %c0_12 = arith.constant 0 : index
      %c0_13 = arith.constant 0 : index
      %13 = vector.load %arg4[%c0_12, %c0_13] : memref<1x128xf32, #tpu.memory_space<vmem>>, vector<1x128xf32>
      %14 = vector.broadcast %13 : vector<1x128xf32> to vector<400x128xf32>
      %15 = arith.addf %12, %14 : vector<400x128xf32>
      %cst_14 = arith.constant 0.000000e+00 : f32
      %16 = vector.broadcast %cst_14 : f32 to vector<400x128xf32>
      %17 = arith.maximumf %15, %16 : vector<400x128xf32>
      %c0_15 = arith.constant 0 : index
      %c0_16 = arith.constant 0 : index
      %18 = vector.load %arg5[%c0_15, %c0_16] : memref<400x128xf32, #tpu.memory_space<vmem>>, vector<400x128xf32>
      tpu.vector_store %arg5[%c0_15, %c0_16], %17 {strides = array<i32>} : memref<400x128xf32, #tpu.memory_space<vmem>>, vector<400x128xf32>,
    } else {
    }
    return
  }
  func.func @transform_0(%arg0: i32, %arg1: i32) -> (i32, i32) {
    %c0_i32 = arith.constant 0 : i32
    return %arg0, %arg1 : i32, i32
  }
  func.func @transform_1(%arg0: i32, %arg1: i32) -> (i32, i32) {
    %c0_i32 = arith.constant 0 : i32
    %c0_i32_0 = arith.constant 0 : i32
    return %arg1, %c0_i32 : i32, i32
  }
  func.func @transform_2(%arg0: i32, %arg1: i32) -> (i32, i32) {
    %c0_i32 = arith.constant 0 : i32
    %c0_i32_0 = arith.constant 0 : i32
    %c0_i32_1 = arith.constant 0 : i32
    return %c0_i32, %c0_i32_0 : i32, i32
  }
  func.func @transform_3(%arg0: i32, %arg1: i32) -> (i32, i32) {
    %c0_i32 = arith.constant 0 : i32
    %c0_i32_0 = arith.constant 0 : i32
    return %arg0, %c0_i32 : i32, i32
  }
}

module attributes {stable_mosaic.version = 11 : i64} {
  func.func @_gemm_bias_act_kernel(%arg0: i32, %arg1: i32, %arg2: memref<168x512xbf16, #tpu.memory_space<vmem>>, %arg3: memref<512x128xbf16, #tpu.memory_space<vmem>>, %arg4: memref<1x128xf32, #tpu.memory_space<vmem>>, %arg5: memref<168x128xf32, #tpu.memory_space<vmem>>, %arg6: memref<168x128xf32, #tpu.memory_space<vmem>>) attributes {dimension_semantics = [#tpu.dimension_semantics<parallel>, #tpu.dimension_semantics<arbitrary>], iteration_bounds = array<i64: 1, 1>, scalar_prefetch = 0 : i64, scratch_operands = 1 : i64, tpu.core_type = #tpu.core_type<tc>, window_params = [{transform_indices = @transform_0, window_bounds = array<i64: 168, 512>}, {transform_indices = @transform_1, window_bounds = array<i64: 512, 128>}, {pipeline_mode = #tpu.pipeline_mode<synchronous>, transform_indices = @transform_2, window_bounds = array<i64: 1, 128>}, {transform_indices = @transform_3, window_bounds = array<i64: 168, 128>}]} {
    %c0_i32 = arith.constant 0 : i32
    %0 = arith.cmpi eq, %arg1, %c0_i32 : i32
    %1 = arith.extui %0 : i1 to i32
    %c0_i32_0 = arith.constant 0 : i32
    %2 = arith.cmpi ne, %1, %c0_i32_0 : i32
    scf.if %2 {
      %cst_10 = arith.constant 0.000000e+00 : f32
      %12 = vector.broadcast %cst_10 : f32 to vector<168x128xf32>
      %c0_11 = arith.constant 0 : index
      %c0_12 = arith.constant 0 : index
      %13 = vector.load %arg6[%c0_11, %c0_12] : memref<168x128xf32, #tpu.memory_space<vmem>>, vector<168x128xf32>
      tpu.vector_store %arg6[%c0_11, %c0_12], %12 {strides = array<i32>} : memref<168x128xf32, #tpu.memory_space<vmem>>, vector<168x128xf32>,
    } else {
    }
    %c0 = arith.constant 0 : index
    %c0_1 = arith.constant 0 : index
    %3 = vector.load %arg6[%c0, %c0_1] : memref<168x128xf32, #tpu.memory_space<vmem>>, vector<168x128xf32>
    %c0_2 = arith.constant 0 : index
    %c0_3 = arith.constant 0 : index
    %4 = vector.load %arg2[%c0_2, %c0_3] : memref<168x512xbf16, #tpu.memory_space<vmem>>, vector<168x512xbf16>
    %c0_4 = arith.constant 0 : index
    %c0_5 = arith.constant 0 : index
    %5 = vector.load %arg3[%c0_4, %c0_5] : memref<512x128xbf16, #tpu.memory_space<vmem>>, vector<512x128xbf16>
    %cst = arith.constant dense<0.000000e+00> : vector<168x128xf32>
    %6 = tpu.matmul %4, %5, %cst {dimension_numbers = #tpu.dot_dimension_numbers<[1], [0], [0], [1], [0, 0, 1, 1], [], []>} : vector<168x512xbf16>, vector<512x128xbf16>, vector<168x128xf32> -> vector<168x128xf32>
    %7 = arith.addf %3, %6 : vector<168x128xf32>
    %c0_6 = arith.constant 0 : index
    %c0_7 = arith.constant 0 : index
    %8 = vector.load %arg6[%c0_6, %c0_7] : memref<168x128xf32, #tpu.memory_space<vmem>>, vector<168x128xf32>
    tpu.vector_store %arg6[%c0_6, %c0_7], %7 {strides = array<i32>} : memref<168x128xf32, #tpu.memory_space<vmem>>, vector<168x128xf32>,
    %c0_i32_8 = arith.constant 0 : i32
    %9 = arith.cmpi eq, %arg1, %c0_i32_8 : i32
    %10 = arith.extui %9 : i1 to i32
    %c0_i32_9 = arith.constant 0 : i32
    %11 = arith.cmpi ne, %10, %c0_i32_9 : i32
    scf.if %11 {
      %c0_10 = arith.constant 0 : index
      %c0_11 = arith.constant 0 : index
      %12 = vector.load %arg6[%c0_10, %c0_11] : memref<168x128xf32, #tpu.memory_space<vmem>>, vector<168x128xf32>
      %c0_12 = arith.constant 0 : index
      %c0_13 = arith.constant 0 : index
      %13 = vector.load %arg4[%c0_12, %c0_13] : memref<1x128xf32, #tpu.memory_space<vmem>>, vector<1x128xf32>
      %14 = vector.broadcast %13 : vector<1x128xf32> to vector<168x128xf32>
      %15 = arith.addf %12, %14 : vector<168x128xf32>
      %cst_14 = arith.constant 0.000000e+00 : f32
      %16 = vector.broadcast %cst_14 : f32 to vector<168x128xf32>
      %17 = arith.maximumf %15, %16 : vector<168x128xf32>
      %c0_15 = arith.constant 0 : index
      %c0_16 = arith.constant 0 : index
      %18 = vector.load %arg5[%c0_15, %c0_16] : memref<168x128xf32, #tpu.memory_space<vmem>>, vector<168x128xf32>
      tpu.vector_store %arg5[%c0_15, %c0_16], %17 {strides = array<i32>} : memref<168x128xf32, #tpu.memory_space<vmem>>, vector<168x128xf32>,
    } else {
    }
    return
  }
  func.func @transform_0(%arg0: i32, %arg1: i32) -> (i32, i32) {
    %c0_i32 = arith.constant 0 : i32
    return %arg0, %arg1 : i32, i32
  }
  func.func @transform_1(%arg0: i32, %arg1: i32) -> (i32, i32) {
    %c0_i32 = arith.constant 0 : i32
    %c0_i32_0 = arith.constant 0 : i32
    return %arg1, %c0_i32 : i32, i32
  }
  func.func @transform_2(%arg0: i32, %arg1: i32) -> (i32, i32) {
    %c0_i32 = arith.constant 0 : i32
    %c0_i32_0 = arith.constant 0 : i32
    %c0_i32_1 = arith.constant 0 : i32
    return %c0_i32, %c0_i32_0 : i32, i32
  }
  func.func @transform_3(%arg0: i32, %arg1: i32) -> (i32, i32) {
    %c0_i32 = arith.constant 0 : i32
    %c0_i32_0 = arith.constant 0 : i32
    return %arg0, %c0_i32 : i32, i32
  }
}

module attributes {stable_mosaic.version = 11 : i64} {
  func.func @_gemm_bias_act_kernel(%arg0: i32, %arg1: i32, %arg2: memref<104x640xbf16, #tpu.memory_space<vmem>>, %arg3: memref<640x128xbf16, #tpu.memory_space<vmem>>, %arg4: memref<1x128xf32, #tpu.memory_space<vmem>>, %arg5: memref<104x128xf32, #tpu.memory_space<vmem>>, %arg6: memref<104x128xf32, #tpu.memory_space<vmem>>) attributes {dimension_semantics = [#tpu.dimension_semantics<parallel>, #tpu.dimension_semantics<arbitrary>], iteration_bounds = array<i64: 1, 1>, scalar_prefetch = 0 : i64, scratch_operands = 1 : i64, tpu.core_type = #tpu.core_type<tc>, window_params = [{transform_indices = @transform_0, window_bounds = array<i64: 104, 640>}, {transform_indices = @transform_1, window_bounds = array<i64: 640, 128>}, {pipeline_mode = #tpu.pipeline_mode<synchronous>, transform_indices = @transform_2, window_bounds = array<i64: 1, 128>}, {transform_indices = @transform_3, window_bounds = array<i64: 104, 128>}]} {
    %c0_i32 = arith.constant 0 : i32
    %0 = arith.cmpi eq, %arg1, %c0_i32 : i32
    %1 = arith.extui %0 : i1 to i32
    %c0_i32_0 = arith.constant 0 : i32
    %2 = arith.cmpi ne, %1, %c0_i32_0 : i32
    scf.if %2 {
      %cst_10 = arith.constant 0.000000e+00 : f32
      %12 = vector.broadcast %cst_10 : f32 to vector<104x128xf32>
      %c0_11 = arith.constant 0 : index
      %c0_12 = arith.constant 0 : index
      %13 = vector.load %arg6[%c0_11, %c0_12] : memref<104x128xf32, #tpu.memory_space<vmem>>, vector<104x128xf32>
      tpu.vector_store %arg6[%c0_11, %c0_12], %12 {strides = array<i32>} : memref<104x128xf32, #tpu.memory_space<vmem>>, vector<104x128xf32>,
    } else {
    }
    %c0 = arith.constant 0 : index
    %c0_1 = arith.constant 0 : index
    %3 = vector.load %arg6[%c0, %c0_1] : memref<104x128xf32, #tpu.memory_space<vmem>>, vector<104x128xf32>
    %c0_2 = arith.constant 0 : index
    %c0_3 = arith.constant 0 : index
    %4 = vector.load %arg2[%c0_2, %c0_3] : memref<104x640xbf16, #tpu.memory_space<vmem>>, vector<104x640xbf16>
    %c0_4 = arith.constant 0 : index
    %c0_5 = arith.constant 0 : index
    %5 = vector.load %arg3[%c0_4, %c0_5] : memref<640x128xbf16, #tpu.memory_space<vmem>>, vector<640x128xbf16>
    %cst = arith.constant dense<0.000000e+00> : vector<104x128xf32>
    %6 = tpu.matmul %4, %5, %cst {dimension_numbers = #tpu.dot_dimension_numbers<[1], [0], [0], [1], [0, 0, 1, 1], [], []>} : vector<104x640xbf16>, vector<640x128xbf16>, vector<104x128xf32> -> vector<104x128xf32>
    %7 = arith.addf %3, %6 : vector<104x128xf32>
    %c0_6 = arith.constant 0 : index
    %c0_7 = arith.constant 0 : index
    %8 = vector.load %arg6[%c0_6, %c0_7] : memref<104x128xf32, #tpu.memory_space<vmem>>, vector<104x128xf32>
    tpu.vector_store %arg6[%c0_6, %c0_7], %7 {strides = array<i32>} : memref<104x128xf32, #tpu.memory_space<vmem>>, vector<104x128xf32>,
    %c0_i32_8 = arith.constant 0 : i32
    %9 = arith.cmpi eq, %arg1, %c0_i32_8 : i32
    %10 = arith.extui %9 : i1 to i32
    %c0_i32_9 = arith.constant 0 : i32
    %11 = arith.cmpi ne, %10, %c0_i32_9 : i32
    scf.if %11 {
      %c0_10 = arith.constant 0 : index
      %c0_11 = arith.constant 0 : index
      %12 = vector.load %arg6[%c0_10, %c0_11] : memref<104x128xf32, #tpu.memory_space<vmem>>, vector<104x128xf32>
      %c0_12 = arith.constant 0 : index
      %c0_13 = arith.constant 0 : index
      %13 = vector.load %arg4[%c0_12, %c0_13] : memref<1x128xf32, #tpu.memory_space<vmem>>, vector<1x128xf32>
      %14 = vector.broadcast %13 : vector<1x128xf32> to vector<104x128xf32>
      %15 = arith.addf %12, %14 : vector<104x128xf32>
      %cst_14 = arith.constant 0.000000e+00 : f32
      %16 = vector.broadcast %cst_14 : f32 to vector<104x128xf32>
      %17 = arith.maximumf %15, %16 : vector<104x128xf32>
      %c0_15 = arith.constant 0 : index
      %c0_16 = arith.constant 0 : index
      %18 = vector.load %arg5[%c0_15, %c0_16] : memref<104x128xf32, #tpu.memory_space<vmem>>, vector<104x128xf32>
      tpu.vector_store %arg5[%c0_15, %c0_16], %17 {strides = array<i32>} : memref<104x128xf32, #tpu.memory_space<vmem>>, vector<104x128xf32>,
    } else {
    }
    return
  }
  func.func @transform_0(%arg0: i32, %arg1: i32) -> (i32, i32) {
    %c0_i32 = arith.constant 0 : i32
    return %arg0, %arg1 : i32, i32
  }
  func.func @transform_1(%arg0: i32, %arg1: i32) -> (i32, i32) {
    %c0_i32 = arith.constant 0 : i32
    %c0_i32_0 = arith.constant 0 : i32
    return %arg1, %c0_i32 : i32, i32
  }
  func.func @transform_2(%arg0: i32, %arg1: i32) -> (i32, i32) {
    %c0_i32 = arith.constant 0 : i32
    %c0_i32_0 = arith.constant 0 : i32
    %c0_i32_1 = arith.constant 0 : i32
    return %c0_i32, %c0_i32_0 : i32, i32
  }
  func.func @transform_3(%arg0: i32, %arg1: i32) -> (i32, i32) {
    %c0_i32 = arith.constant 0 : i32
    %c0_i32_0 = arith.constant 0 : i32
    return %arg0, %c0_i32 : i32, i32
  }
}

module attributes {stable_mosaic.version = 11 : i64} {
  func.func @_heads_kernel(%arg0: i32, %arg1: memref<8x640xbf16, #tpu.memory_space<vmem>>, %arg2: memref<640x1024xbf16, #tpu.memory_space<vmem>>, %arg3: memref<1x1024xf32, #tpu.memory_space<vmem>>, %arg4: memref<512x128xbf16, #tpu.memory_space<vmem>>, %arg5: memref<1x128xf32, #tpu.memory_space<vmem>>, %arg6: memref<512x128xbf16, #tpu.memory_space<vmem>>, %arg7: memref<1x128xf32, #tpu.memory_space<vmem>>, %arg8: memref<8x128xf32, #tpu.memory_space<vmem>>, %arg9: memref<8x128xf32, #tpu.memory_space<vmem>>, %arg10: memref<8x1024xf32, #tpu.memory_space<vmem>>) attributes {dimension_semantics = [#tpu.dimension_semantics<arbitrary>], iteration_bounds = array<i64: 5>, scalar_prefetch = 0 : i64, scratch_operands = 1 : i64, tpu.core_type = #tpu.core_type<tc>, window_params = [{transform_indices = @transform_0, window_bounds = array<i64: 8, 640>}, {transform_indices = @transform_1, window_bounds = array<i64: 640, 1024>}, {pipeline_mode = #tpu.pipeline_mode<synchronous>, transform_indices = @transform_2, window_bounds = array<i64: 1, 1024>}, {pipeline_mode = #tpu.pipeline_mode<synchronous>, transform_indices = @transform_3, window_bounds = array<i64: 512, 128>}, {pipeline_mode = #tpu.pipeline_mode<synchronous>, transform_indices = @transform_4, window_bounds = array<i64: 1, 128>}, {pipeline_mode = #tpu.pipeline_mode<synchronous>, transform_indices = @transform_5, window_bounds = array<i64: 512, 128>}, {pipeline_mode = #tpu.pipeline_mode<synchronous>, transform_indices = @transform_6, window_bounds = array<i64: 1, 128>}, {pipeline_mode = #tpu.pipeline_mode<synchronous>, transform_indices = @transform_7, window_bounds = array<i64: 8, 128>}, {pipeline_mode = #tpu.pipeline_mode<synchronous>, transform_indices = @transform_8, window_bounds = array<i64: 8, 128>}]} {
    %c0_i32 = arith.constant 0 : i32
    %0 = arith.cmpi eq, %arg0, %c0_i32 : i32
    %1 = arith.extui %0 : i1 to i32
    %c0_i32_0 = arith.constant 0 : i32
    %2 = arith.cmpi ne, %1, %c0_i32_0 : i32
    scf.if %2 {
      %cst_9 = arith.constant 0.000000e+00 : f32
      %12 = vector.broadcast %cst_9 : f32 to vector<8x1024xf32>
      %c0_10 = arith.constant 0 : index
      %c0_11 = arith.constant 0 : index
      %13 = vector.load %arg10[%c0_10, %c0_11] : memref<8x1024xf32, #tpu.memory_space<vmem>>, vector<8x1024xf32>
      tpu.vector_store %arg10[%c0_10, %c0_11], %12 {strides = array<i32>} : memref<8x1024xf32, #tpu.memory_space<vmem>>, vector<8x1024xf32>,
    } else {
    }
    %c0 = arith.constant 0 : index
    %c0_1 = arith.constant 0 : index
    %3 = vector.load %arg10[%c0, %c0_1] : memref<8x1024xf32, #tpu.memory_space<vmem>>, vector<8x1024xf32>
    %c0_2 = arith.constant 0 : index
    %c0_3 = arith.constant 0 : index
    %4 = vector.load %arg1[%c0_2, %c0_3] : memref<8x640xbf16, #tpu.memory_space<vmem>>, vector<8x640xbf16>
    %c0_4 = arith.constant 0 : index
    %c0_5 = arith.constant 0 : index
    %5 = vector.load %arg2[%c0_4, %c0_5] : memref<640x1024xbf16, #tpu.memory_space<vmem>>, vector<640x1024xbf16>
    %cst = arith.constant dense<0.000000e+00> : vector<8x1024xf32>
    %6 = tpu.matmul %4, %5, %cst {dimension_numbers = #tpu.dot_dimension_numbers<[1], [0], [0], [1], [0, 0, 1, 1], [], []>} : vector<8x640xbf16>, vector<640x1024xbf16>, vector<8x1024xf32> -> vector<8x1024xf32>
    %7 = arith.addf %3, %6 : vector<8x1024xf32>
    %c0_6 = arith.constant 0 : index
    %c0_7 = arith.constant 0 : index
    %8 = vector.load %arg10[%c0_6, %c0_7] : memref<8x1024xf32, #tpu.memory_space<vmem>>, vector<8x1024xf32>
    tpu.vector_store %arg10[%c0_6, %c0_7], %7 {strides = array<i32>} : memref<8x1024xf32, #tpu.memory_space<vmem>>, vector<8x1024xf32>,
    %c4_i32 = arith.constant 4 : i32
    %9 = arith.cmpi eq, %arg0, %c4_i32 : i32
    %10 = arith.extui %9 : i1 to i32
    %c0_i32_8 = arith.constant 0 : i32
    %11 = arith.cmpi ne, %10, %c0_i32_8 : i32
    scf.if %11 {
      %c0_9 = arith.constant 0 : index
      %c0_10 = arith.constant 0 : index
      %12 = vector.load %arg10[%c0_9, %c0_10] : memref<8x1024xf32, #tpu.memory_space<vmem>>, vector<8x1024xf32>
      %c0_11 = arith.constant 0 : index
      %c0_12 = arith.constant 0 : index
      %13 = vector.load %arg3[%c0_11, %c0_12] : memref<1x1024xf32, #tpu.memory_space<vmem>>, vector<1x1024xf32>
      %14 = vector.broadcast %13 : vector<1x1024xf32> to vector<8x1024xf32>
      %15 = arith.addf %12, %14 : vector<8x1024xf32>
      %cst_13 = arith.constant 0.000000e+00 : f32
      %16 = vector.broadcast %cst_13 : f32 to vector<8x1024xf32>
      %17 = arith.maximumf %15, %16 : vector<8x1024xf32>
      %18 = arith.truncf %17 : vector<8x1024xf32> to vector<8x1024xbf16>
      %19 = vector.extract_strided_slice %18 {offsets = [0, 0], sizes = [8, 512], strides = [1, 1]} : vector<8x1024xbf16> to vector<8x512xbf16>
      %c0_14 = arith.constant 0 : index
      %c0_15 = arith.constant 0 : index
      %20 = vector.load %arg4[%c0_14, %c0_15] : memref<512x128xbf16, #tpu.memory_space<vmem>>, vector<512x128xbf16>
      %cst_16 = arith.constant dense<0.000000e+00> : vector<8x128xf32>
      %21 = tpu.matmul %19, %20, %cst_16 {dimension_numbers = #tpu.dot_dimension_numbers<[1], [0], [0], [1], [0, 0, 1, 1], [], []>} : vector<8x512xbf16>, vector<512x128xbf16>, vector<8x128xf32> -> vector<8x128xf32>
      %c0_17 = arith.constant 0 : index
      %c0_18 = arith.constant 0 : index
      %22 = vector.load %arg5[%c0_17, %c0_18] : memref<1x128xf32, #tpu.memory_space<vmem>>, vector<1x128xf32>
      %23 = vector.broadcast %22 : vector<1x128xf32> to vector<8x128xf32>
      %24 = arith.addf %21, %23 : vector<8x128xf32>
      %c0_19 = arith.constant 0 : index
      %c0_20 = arith.constant 0 : index
      %25 = vector.load %arg8[%c0_19, %c0_20] : memref<8x128xf32, #tpu.memory_space<vmem>>, vector<8x128xf32>
      tpu.vector_store %arg8[%c0_19, %c0_20], %24 {strides = array<i32>} : memref<8x128xf32, #tpu.memory_space<vmem>>, vector<8x128xf32>,
      %26 = vector.extract_strided_slice %18 {offsets = [0, 512], sizes = [8, 512], strides = [1, 1]} : vector<8x1024xbf16> to vector<8x512xbf16>
      %c0_21 = arith.constant 0 : index
      %c0_22 = arith.constant 0 : index
      %27 = vector.load %arg6[%c0_21, %c0_22] : memref<512x128xbf16, #tpu.memory_space<vmem>>, vector<512x128xbf16>
      %cst_23 = arith.constant dense<0.000000e+00> : vector<8x128xf32>
      %28 = tpu.matmul %26, %27, %cst_23 {dimension_numbers = #tpu.dot_dimension_numbers<[1], [0], [0], [1], [0, 0, 1, 1], [], []>} : vector<8x512xbf16>, vector<512x128xbf16>, vector<8x128xf32> -> vector<8x128xf32>
      %c0_24 = arith.constant 0 : index
      %c0_25 = arith.constant 0 : index
      %29 = vector.load %arg7[%c0_24, %c0_25] : memref<1x128xf32, #tpu.memory_space<vmem>>, vector<1x128xf32>
      %30 = vector.broadcast %29 : vector<1x128xf32> to vector<8x128xf32>
      %31 = arith.addf %28, %30 : vector<8x128xf32>
      %c0_26 = arith.constant 0 : index
      %c0_27 = arith.constant 0 : index
      %32 = vector.load %arg9[%c0_26, %c0_27] : memref<8x128xf32, #tpu.memory_space<vmem>>, vector<8x128xf32>
      tpu.vector_store %arg9[%c0_26, %c0_27], %31 {strides = array<i32>} : memref<8x128xf32, #tpu.memory_space<vmem>>, vector<8x128xf32>,
    } else {
    }
    return
  }
  func.func @transform_0(%arg0: i32) -> (i32, i32) {
    %c0_i32 = arith.constant 0 : i32
    %c0_i32_0 = arith.constant 0 : i32
    return %c0_i32, %arg0 : i32, i32
  }
  func.func @transform_1(%arg0: i32) -> (i32, i32) {
    %c0_i32 = arith.constant 0 : i32
    %c0_i32_0 = arith.constant 0 : i32
    return %arg0, %c0_i32 : i32, i32
  }
  func.func @transform_2(%arg0: i32) -> (i32, i32) {
    %c0_i32 = arith.constant 0 : i32
    %c0_i32_0 = arith.constant 0 : i32
    %c0_i32_1 = arith.constant 0 : i32
    return %c0_i32, %c0_i32_0 : i32, i32
  }
  func.func @transform_3(%arg0: i32) -> (i32, i32) {
    %c0_i32 = arith.constant 0 : i32
    %c0_i32_0 = arith.constant 0 : i32
    %c0_i32_1 = arith.constant 0 : i32
    return %c0_i32, %c0_i32_0 : i32, i32
  }
  func.func @transform_4(%arg0: i32) -> (i32, i32) {
    %c0_i32 = arith.constant 0 : i32
    %c0_i32_0 = arith.constant 0 : i32
    %c0_i32_1 = arith.constant 0 : i32
    return %c0_i32, %c0_i32_0 : i32, i32
  }
  func.func @transform_5(%arg0: i32) -> (i32, i32) {
    %c0_i32 = arith.constant 0 : i32
    %c0_i32_0 = arith.constant 0 : i32
    %c0_i32_1 = arith.constant 0 : i32
    return %c0_i32, %c0_i32_0 : i32, i32
  }
  func.func @transform_6(%arg0: i32) -> (i32, i32) {
    %c0_i32 = arith.constant 0 : i32
    %c0_i32_0 = arith.constant 0 : i32
    %c0_i32_1 = arith.constant 0 : i32
    return %c0_i32, %c0_i32_0 : i32, i32
  }
  func.func @transform_7(%arg0: i32) -> (i32, i32) {
    %c0_i32 = arith.constant 0 : i32
    %c0_i32_0 = arith.constant 0 : i32
    %c0_i32_1 = arith.constant 0 : i32
    return %c0_i32, %c0_i32_0 : i32, i32
  }
  func.func @transform_8(%arg0: i32) -> (i32, i32) {
    %c0_i32 = arith.constant 0 : i32
    %c0_i32_0 = arith.constant 0 : i32
    %c0_i32_1 = arith.constant 0 : i32
    return %c0_i32, %c0_i32_0 : i32, i32
  }
}

</mosaic_0001>

<bundles_post_ra>
// kernel: active_dqn_forward.4
= control target key start
LH: loop header
LB: loop body
LE: loop exit
PB: predicated region body
PF: predicated region fallthrough
CT: control target
= control target key end

     0   :  { %s1661_s12 = smov 0   ;;  %s1663_s13 = smov 0   ;;  %s1940_s0 = inlined_call_operand.vmem [shape: bf16[800,256], index: 0, kind: input, shape index: {}]   ;;  %s1941_s1 = inlined_call_operand.vmem [shape: bf16[256,128], index: 1, kind: input, shape index: {}]   ;;  %s1942_s2 = inlined_call_operand.vmem [shape: f32[1,128], index: 2, kind: input, shape index: {}]   ;;  %s1943_s3 = inlined_call_operand.vmem [shape: f32[800,128], index: 3, kind: output, shape index: {}]  }
   0x1   :  { %s1665_s14 = smov 0  }
   0x2 LB: > { %s25_s15 = sadd.s32 1, %s1634_s13  ;;  %p1394_p0 = scmp.ge.s32.totalorder %s1638_s14, 1  ;;  %s1638_s14 = sphi %s1665_s14, %s13_s14   ;;  %s1634_s13 = sphi %s1663_s13, %s1945_s13   ;;  %s1630_s12 = sphi %s1661_s12, %s1944_s12  }
   0x3   : > { %p27_p1 = scmp.ge.s32.totalorder %s25_s15, 2  ;;  %p169_p2 = scmp.lt.s32.totalorder %s1638_s14, 3 }
   0x5   : > { %s1947_s15 = smov (%p27_p1, %s25_s15), 0  ;;  %p170_p3 = pnand %p1394_p0, %p169_p2 }
   0x6   : > { %v1525_v0 = vld [vmem:[%s1941_s1] sm:$0xff] (!%p170_p3)   ;;  %v1640_v1 = vmov (!%p170_p3), 0   ;;  %s203_s18 = smul.u32 (!%p170_p3), 50, %s1630_s12  ;;  %v1526_v2 = vld [vmem:[%s1941_s1 + $0x8] sm:$0xff] (!%p170_p3)   ;;  %v1527_v3 = vld [vmem:[%s1941_s1 + $0x10] sm:$0xff] (!%p170_p3)  }
   0x7   : > { %173 = sbr.rel (%p170_p3) target bundleno = 386 (0x182), region = 32  ;;  %760 = vmatprep.subr.bf16.mxu0 (!%p170_p3), %v1640_v1  ;;  %1468 = vmatprep.subr.bf16.mxu1 (!%p170_p3), %v1640_v1  ;;  %v1528_v4 = vld [vmem:[%s1941_s1 + $0x18] sm:$0xff] (!%p170_p3)   ;;  %v1529_v5 = vld [vmem:[%s1941_s1 + $0x20] sm:$0xff] (!%p170_p3)   ;;  %v1530_v7 = vld [vmem:[%s1941_s1 + $0x28] sm:$0xff] (!%p170_p3)  }
   0x8   : > { %761 = vmatpush1.bf16.msra.mxu0 (!%p170_p3), %v1525_v0  ;;  %1484 = vmatpush1.bf16.msra.mxu1 (!%p170_p3), %v1525_v0  ;;  %p205_p4 = scmp.lt.s32.totalorder (!%p170_p3), %s203_s18, 99  ;;  %v1531_v9 = vld [vmem:[%s1941_s1 + $0x30] sm:$0xff] (!%p170_p3)   ;;  %v1532_v10 = vld [vmem:[%s1941_s1 + $0x38] sm:$0xff] (!%p170_p3)   ;;  %v1533_v11 = vld [vmem:[%s1941_s1 + $0x40] sm:$0xff] (!%p170_p3)  }
   0x9   : > { %762 = vmatprep.subr.bf16.mxu0 (!%p170_p3), %v1640_v1  ;;  %1469 = vmatprep.subr.bf16.mxu1 (!%p170_p3), %v1640_v1  ;;  %v1534_v12 = vld [vmem:[%s1941_s1 + $0x48] sm:$0xff] (!%p170_p3)   ;;  %v1535_v13 = vld [vmem:[%s1941_s1 + $0x50] sm:$0xff] (!%p170_p3)   ;;  %v1536_v14 = vld [vmem:[%s1941_s1 + $0x58] sm:$0xff] (!%p170_p3)  }
   0xa   : > { %v1537_v15 = vld [vmem:[%s1941_s1 + $0x60] sm:$0xff] (!%p170_p3)   ;;  %v1538_v16 = vld [vmem:[%s1941_s1 + $0x68] sm:$0xff] (!%p170_p3)   ;;  %v1539_v17 = vld [vmem:[%s1941_s1 + $0x70] sm:$0xff] (!%p170_p3)  }
   0xb   : > { %v1540_v18 = vld [vmem:[%s1941_s1 + $0x78] sm:$0xff] (!%p170_p3)  }
   0xc   : > { %763 = vmatpush1.bf16.msra.mxu0 (!%p170_p3), %v1526_v2  ;;  %1485 = vmatpush1.bf16.msra.mxu1 (!%p170_p3), %v1526_v2 }
   0xd   : > { %764 = vmatprep.subr.bf16.mxu0 (!%p170_p3), %v1640_v1  ;;  %1470 = vmatprep.subr.bf16.mxu1 (!%p170_p3), %v1640_v1 }
   0xe   : > { %s1949_s18 = smov (!%p205_p4, %s203_s18), 99 }
   0xf   : > { %s1467_s25 = sshll.u32 %s1949_s18, 3 }
  0x10   : > { %765 = vmatpush1.bf16.msra.mxu0 %v1527_v3  ;;  %1486 = vmatpush1.bf16.msra.mxu1 %v1527_v3  ;;  %s1710_s30 = scalar_lea.vmem %s1940_s0, %s1467_s25  ;;  %v1822_v3 = vld [vmem:[%s1942_s2] ss:$0 sm:$0xff]  ;;  %s1831_s9 = scalar_lea.vmem %s1943_s3, %s1467_s25 }
  0x11   : > { %766 = vmatprep.subr.bf16.mxu0 %v1640_v1  ;;  %1471 = vmatprep.subr.bf16.mxu1 %v1640_v1  ;;  %v1543_v6 = vld [vmem:[%s1710_s30 + $0x4] ss:$8 sps:$4 sm:$0xff]   ;;  %v1546_v8 = vld [vmem:[%s1710_s30 + $0xd4] ss:$8 sps:$4 sm:$0xff]   ;;  %v1541_v19 = vld [vmem:[%s1710_s30] ss:$8 sps:$4 sm:$0xff]  }
  0x12   : > { %792 = vmatprep.mubr.bf16.mxu0 %v1543_v6  ;;  %896 = vmatprep.mubr.bf16.mxu1 %v1546_v8  ;;  %v1544_v20 = vld [vmem:[%s1710_s30 + $0xd0] ss:$8 sps:$4 sm:$0xff]   ;;  %v1547_v21 = vld [vmem:[%s1710_s30 + $0x14] ss:$8 sps:$4 sm:$0xff]   ;;  %v1550_v22 = vld [vmem:[%s1710_s30 + $0xe4] ss:$8 sps:$4 sm:$0xff]  }
  0x13   : > { %v1549_v23 = vld [vmem:[%s1710_s30 + $0x10] ss:$8 sps:$4 sm:$0xff]   ;;  %v1552_v24 = vld [vmem:[%s1710_s30 + $0xe0] ss:$8 sps:$4 sm:$0xff]   ;;  %v1553_v25 = vld [vmem:[%s1710_s30 + $0x24] ss:$8 sps:$4 sm:$0xff]  }
  0x14   : > { %767 = vmatpush1.bf16.msra.mxu0 %v1528_v4  ;;  %1487 = vmatpush1.bf16.msra.mxu1 %v1528_v4  ;;  %v1556_v26 = vld [vmem:[%s1710_s30 + $0xf4] ss:$8 sps:$4 sm:$0xff]   ;;  %v1555_v27 = vld [vmem:[%s1710_s30 + $0x20] ss:$8 sps:$4 sm:$0xff]   ;;  %v1558_v28 = vld [vmem:[%s1710_s30 + $0xf0] ss:$8 sps:$4 sm:$0xff]  }
  0x15   : > { %768 = vmatprep.subr.bf16.mxu0 %v1640_v1  ;;  %1472 = vmatprep.subr.bf16.mxu1 %v1640_v1  ;;  %v1559_v29 = vld [vmem:[%s1710_s30 + $0x34] ss:$8 sps:$4 sm:$0xff]   ;;  %v1562_v30 = vld [vmem:[%s1710_s30 + $0x104] ss:$8 sps:$4 sm:$0xff]   ;;  %v1561_v31 = vld [vmem:[%s1710_s30 + $0x30] ss:$8 sps:$4 sm:$0xff]  }
  0x16   : > { %v1564_v32 = vld [vmem:[%s1710_s30 + $0x100] ss:$8 sps:$4 sm:$0xff]   ;;  %v1565_v33 = vld [vmem:[%s1710_s30 + $0x44] ss:$8 sps:$4 sm:$0xff]   ;;  %v1568_v34 = vld [vmem:[%s1710_s30 + $0x114] ss:$8 sps:$4 sm:$0xff]  }
  0x17   : > { %v1567_v35 = vld [vmem:[%s1710_s30 + $0x40] ss:$8 sps:$4 sm:$0xff]   ;;  %v1570_v36 = vld [vmem:[%s1710_s30 + $0x110] ss:$8 sps:$4 sm:$0xff]   ;;  %v1571_v37 = vld [vmem:[%s1710_s30 + $0x54] ss:$8 sps:$4 sm:$0xff]  }
  0x18   : > { %769 = vmatpush1.bf16.msra.mxu0 %v1529_v5  ;;  %1488 = vmatpush1.bf16.msra.mxu1 %v1529_v5  ;;  %v1574_v38 = vld [vmem:[%s1710_s30 + $0x124] ss:$8 sps:$4 sm:$0xff]   ;;  %v1573_v39 = vld [vmem:[%s1710_s30 + $0x50] ss:$8 sps:$4 sm:$0xff]   ;;  %v1576_v40 = vld [vmem:[%s1710_s30 + $0x120] ss:$8 sps:$4 sm:$0xff]  }
  0x19   : > { %770 = vmatprep.subr.bf16.mxu0 %v1640_v1  ;;  %1473 = vmatprep.subr.bf16.mxu1 %v1640_v1  ;;  %v1577_v41 = vld [vmem:[%s1710_s30 + $0x64] ss:$8 sps:$4 sm:$0xff]   ;;  %v1580_v42 = vld [vmem:[%s1710_s30 + $0x134] ss:$8 sps:$4 sm:$0xff]   ;;  %v1579_v43 = vld [vmem:[%s1710_s30 + $0x60] ss:$8 sps:$4 sm:$0xff]  }
  0x1a   : > { %v1582_v44 = vld [vmem:[%s1710_s30 + $0x130] ss:$8 sps:$4 sm:$0xff]   ;;  %v1583_v45 = vld [vmem:[%s1710_s30 + $0x74] ss:$8 sps:$4 sm:$0xff]   ;;  %v1586_v46 = vld [vmem:[%s1710_s30 + $0x144] ss:$8 sps:$4 sm:$0xff]  }
  0x1b   : > { %v1585_v47 = vld [vmem:[%s1710_s30 + $0x70] ss:$8 sps:$4 sm:$0xff]   ;;  %v1588_v48 = vld [vmem:[%s1710_s30 + $0x140] ss:$8 sps:$4 sm:$0xff]   ;;  %v1589_v49 = vld [vmem:[%s1710_s30 + $0x84] ss:$8 sps:$4 sm:$0xff]  }
  0x1c   : > { %771 = vmatpush1.bf16.msra.mxu0 %v1530_v7  ;;  %1489 = vmatpush1.bf16.msra.mxu1 %v1530_v7  ;;  %v1592_v50 = vld [vmem:[%s1710_s30 + $0x154] ss:$8 sps:$4 sm:$0xff]   ;;  %v1591_v51 = vld [vmem:[%s1710_s30 + $0x80] ss:$8 sps:$4 sm:$0xff]   ;;  %v1594_v52 = vld [vmem:[%s1710_s30 + $0x150] ss:$8 sps:$4 sm:$0xff]  }
  0x1d   : > { %772 = vmatprep.subr.bf16.mxu0 %v1640_v1  ;;  %1474 = vmatprep.subr.bf16.mxu1 %v1640_v1  ;;  %v1595_v53 = vld [vmem:[%s1710_s30 + $0x94] ss:$8 sps:$4 sm:$0xff]   ;;  %v1598_v54 = vld [vmem:[%s1710_s30 + $0x164] ss:$8 sps:$4 sm:$0xff]   ;;  %v1597_v55 = vld [vmem:[%s1710_s30 + $0x90] ss:$8 sps:$4 sm:$0xff]  }
  0x1e   : > { %v1600_v56 = vld [vmem:[%s1710_s30 + $0x160] ss:$8 sps:$4 sm:$0xff]   ;;  %v1601_v57 = vld [vmem:[%s1710_s30 + $0xa4] ss:$8 sps:$4 sm:$0xff]   ;;  %v1604_v58 = vld [vmem:[%s1710_s30 + $0x174] ss:$8 sps:$4 sm:$0xff]  }
  0x1f   : > { %v1603_v59 = vld [vmem:[%s1710_s30 + $0xa0] ss:$8 sps:$4 sm:$0xff]   ;;  %v1606_v60 = vld [vmem:[%s1710_s30 + $0x170] ss:$8 sps:$4 sm:$0xff]   ;;  %v1607_v61 = vld [vmem:[%s1710_s30 + $0xb4] ss:$8 sps:$4 sm:$0xff]  }
  0x20   : > { %773 = vmatpush1.bf16.msra.mxu0 %v1531_v9  ;;  %1490 = vmatpush1.bf16.msra.mxu1 %v1531_v9  ;;  %v1610_v62 = vld [vmem:[%s1710_s30 + $0x184] ss:$8 sps:$4 sm:$0xff]   ;;  %v1609_v63 = vld [vmem:[%s1710_s30 + $0xb0] ss:$8 sps:$4 sm:$0xff]   ;;  %v1612_v0 = vld [vmem:[%s1710_s30 + $0x180] ss:$8 sps:$4 sm:$0xff]  }
  0x21   : > { %774 = vmatprep.subr.bf16.mxu0 %v1640_v1  ;;  %1475 = vmatprep.subr.bf16.mxu1 %v1640_v1  ;;  %v1615_v2 = vld [vmem:[%s1710_s30 + $0xc0] ss:$8 sps:$4 sm:$0xff]  }
  0x24   : > { %775 = vmatpush1.bf16.msra.mxu0 %v1532_v10  ;;  %1491 = vmatpush1.bf16.msra.mxu1 %v1532_v10 }
  0x25   : > { %776 = vmatprep.subr.bf16.mxu0 %v1640_v1  ;;  %1476 = vmatprep.subr.bf16.mxu1 %v1640_v1 }
  0x28   : > { %777 = vmatpush1.bf16.msra.mxu0 %v1533_v11  ;;  %1492 = vmatpush1.bf16.msra.mxu1 %v1533_v11 }
  0x29   : > { %778 = vmatprep.subr.bf16.mxu0 %v1640_v1  ;;  %1477 = vmatprep.subr.bf16.mxu1 %v1640_v1 }
  0x2c   : > { %779 = vmatpush1.bf16.msra.mxu0 %v1534_v12  ;;  %1493 = vmatpush1.bf16.msra.mxu1 %v1534_v12 }
  0x2d   : > { %780 = vmatprep.subr.bf16.mxu0 %v1640_v1  ;;  %1478 = vmatprep.subr.bf16.mxu1 %v1640_v1 }
  0x30   : > { %781 = vmatpush1.bf16.msra.mxu0 %v1535_v13  ;;  %1494 = vmatpush1.bf16.msra.mxu1 %v1535_v13 }
  0x31   : > { %782 = vmatprep.subr.bf16.mxu0 %v1640_v1  ;;  %1479 = vmatprep.subr.bf16.mxu1 %v1640_v1 }
  0x34   : > { %783 = vmatpush1.bf16.msra.mxu0 %v1536_v14  ;;  %1495 = vmatpush1.bf16.msra.mxu1 %v1536_v14 }
  0x35   : > { %784 = vmatprep.subr.bf16.mxu0 %v1640_v1  ;;  %1480 = vmatprep.subr.bf16.mxu1 %v1640_v1 }
  0x38   : > { %785 = vmatpush1.bf16.msra.mxu0 %v1537_v15  ;;  %1496 = vmatpush1.bf16.msra.mxu1 %v1537_v15 }
  0x39   : > { %786 = vmatprep.subr.bf16.mxu0 %v1640_v1  ;;  %1481 = vmatprep.subr.bf16.mxu1 %v1640_v1 }
  0x3c   : > { %787 = vmatpush1.bf16.msra.mxu0 %v1538_v16  ;;  %1497 = vmatpush1.bf16.msra.mxu1 %v1538_v16 }
  0x3d   : > { %788 = vmatprep.subr.bf16.mxu0 %v1640_v1  ;;  %1482 = vmatprep.subr.bf16.mxu1 %v1640_v1 }
  0x40   : > { %789 = vmatpush1.bf16.msra.mxu0 %v1539_v17  ;;  %1498 = vmatpush1.bf16.msra.mxu1 %v1539_v17 }
  0x41   : > { %790 = vmatprep.subr.bf16.mxu0 %v1640_v1  ;;  %1483 = vmatprep.subr.bf16.mxu1 %v1640_v1  ;;  %v1613_v1 = vld [vmem:[%s1710_s30 + $0xc4] ss:$8 sps:$4 sm:$0xff]  }
  0x44   : > { %791 = vmatpush1.bf16.msra.mxu0 %v1540_v18  ;;  %1499 = vmatpush1.bf16.msra.mxu1 %v1540_v18 }
  0x47   : > { %793 = vmatmul.mubr.bf16.vlgmr.msra.gmra.mrb[0].mxu0 %v1541_v19  ;;  %897 = vmatmul.mubr.bf16.vlgmr.msra.gmra.mrb[0].mxu1 %v1544_v20 }
  0x48   : > { %800 = vmatprep.mubr.bf16.mxu0 %v1547_v21  ;;  %904 = vmatprep.mubr.bf16.mxu1 %v1550_v22 }
  0x4f   : > { %801 = vmatmul.mubr.bf16.gmra.mrb[4].mxu0 %v1549_v23  ;;  %905 = vmatmul.mubr.bf16.gmra.mrb[4].mxu1 %v1552_v24 }
  0x50   : > { %808 = vmatprep.mubr.bf16.mxu0 %v1553_v25  ;;  %912 = vmatprep.mubr.bf16.mxu1 %v1556_v26 }
  0x57   : > { %809 = vmatmul.mubr.bf16.gmra.mrb[8].mxu0 %v1555_v27  ;;  %913 = vmatmul.mubr.bf16.gmra.mrb[8].mxu1 %v1558_v28 }
  0x58   : > { %816 = vmatprep.mubr.bf16.mxu0 %v1559_v29  ;;  %920 = vmatprep.mubr.bf16.mxu1 %v1562_v30 }
  0x5f   : > { %817 = vmatmul.mubr.bf16.gmra.mrb[12].mxu0 %v1561_v31  ;;  %921 = vmatmul.mubr.bf16.gmra.mrb[12].mxu1 %v1564_v32 }
  0x60   : > { %824 = vmatprep.mubr.bf16.mxu0 %v1565_v33  ;;  %928 = vmatprep.mubr.bf16.mxu1 %v1568_v34 }
  0x67   : > { %825 = vmatmul.mubr.bf16.gmra.mrb[16].mxu0 %v1567_v35  ;;  %929 = vmatmul.mubr.bf16.gmra.mrb[16].mxu1 %v1570_v36 }
  0x68   : > { %832 = vmatprep.mubr.bf16.mxu0 %v1571_v37  ;;  %936 = vmatprep.mubr.bf16.mxu1 %v1574_v38 }
  0x6f   : > { %833 = vmatmul.mubr.bf16.gmra.mrb[20].mxu0 %v1573_v39  ;;  %937 = vmatmul.mubr.bf16.gmra.mrb[20].mxu1 %v1576_v40 }
  0x70   : > { %840 = vmatprep.mubr.bf16.mxu0 %v1577_v41  ;;  %944 = vmatprep.mubr.bf16.mxu1 %v1580_v42 }
  0x77   : > { %841 = vmatmul.mubr.bf16.gmra.mrb[24].mxu0 %v1579_v43  ;;  %945 = vmatmul.mubr.bf16.gmra.mrb[24].mxu1 %v1582_v44 }
  0x78   : > { %848 = vmatprep.mubr.bf16.mxu0 %v1583_v45  ;;  %952 = vmatprep.mubr.bf16.mxu1 %v1586_v46 }
  0x7f   : > { %849 = vmatmul.mubr.bf16.gmra.mrb[28].mxu0 %v1585_v47  ;;  %953 = vmatmul.mubr.bf16.gmra.mrb[28].mxu1 %v1588_v48 }
  0x80   : > { %856 = vmatprep.mubr.bf16.mxu0 %v1589_v49  ;;  %960 = vmatprep.mubr.bf16.mxu1 %v1592_v50 }
  0x87   : > { %857 = vmatmul.mubr.bf16.gmra.mrb[32].mxu0 %v1591_v51  ;;  %961 = vmatmul.mubr.bf16.gmra.mrb[32].mxu1 %v1594_v52 }
  0x88   : > { %864 = vmatprep.mubr.bf16.mxu0 %v1595_v53  ;;  %968 = vmatprep.mubr.bf16.mxu1 %v1598_v54 }
  0x8f   : > { %865 = vmatmul.mubr.bf16.gmra.mrb[36].mxu0 %v1597_v55  ;;  %969 = vmatmul.mubr.bf16.gmra.mrb[36].mxu1 %v1600_v56 }
  0x90   : > { %872 = vmatprep.mubr.bf16.mxu0 %v1601_v57  ;;  %976 = vmatprep.mubr.bf16.mxu1 %v1604_v58 }
  0x97   : > { %873 = vmatmul.mubr.bf16.gmra.mrb[40].mxu0 %v1603_v59  ;;  %977 = vmatmul.mubr.bf16.gmra.mrb[40].mxu1 %v1606_v60 }
  0x98   : > { %880 = vmatprep.mubr.bf16.mxu0 %v1607_v61  ;;  %984 = vmatprep.mubr.bf16.mxu1 %v1610_v62 }
  0x9f   : > { %881 = vmatmul.mubr.bf16.gmra.mrb[44].mxu0 %v1609_v63  ;;  %985 = vmatmul.mubr.bf16.gmra.mrb[44].mxu1 %v1612_v0 }
  0xa0   : > { %888 = vmatprep.mubr.bf16.mxu0 %v1613_v1 }
  0xa7   : > { %889 = vmatmul.mubr.bf16.gmra.mrb[48].mxu0 %v1615_v2 }
 0x11a   : > { %v794_v4 = vpop.f32.mrb[0].mxu0  ;;  %v898_v5 = vpop.f32.mrb[0].mxu1 }
 0x11b   : > { %v1153_v6 = vadd.f32 %v1822_v3, %v794_v4  ;;  %v796_v7 = vpop.f32.mrb[1].mxu0  ;;  %v1179_v8 = vadd.f32 %v1822_v3, %v898_v5  ;;  %v900_v9 = vpop.f32.mrb[1].mxu1 }
 0x11c   : > { %v797_v10 = vpop.f32.mrb[2].mxu0  ;;  %v901_v11 = vpop.f32.mrb[2].mxu1 }
 0x11d   : > { %v1203_v12 = vmax.f32 %v1153_v6, 0.0  ;;  %v1154_v13 = vadd.f32 %v1822_v3, %v797_v10  ;;  %v799_v14 = vpop.f32.mrb[3].mxu0  ;;  %v1229_v15 = vmax.f32 %v1179_v8, 0.0  ;;  %v1180_v16 = vadd.f32 %v1822_v3, %v901_v11  ;;  %v903_v17 = vpop.f32.mrb[3].mxu1 }
 0x11f   : > { %1253 = vst [vmem:[%s1831_s9] sm:$0xff] %v1203_v12  ;;  %v1204_v18 = vmax.f32 %v1154_v13, 0.0  ;;  %1279 = vst [vmem:[%s1831_s9 + $0xd0] sm:$0xff] %v1229_v15  ;;  %v1230_v19 = vmax.f32 %v1180_v16, 0.0 }
 0x121   : > { %1254 = vst [vmem:[%s1831_s9 + $0x8] sm:$0xff] %v1204_v18  ;;  %1280 = vst [vmem:[%s1831_s9 + $0xd8] sm:$0xff] %v1230_v19 }
 0x122   : > { %v802_v20 = vpop.f32.mrb[4].mxu0  ;;  %v906_v21 = vpop.f32.mrb[4].mxu1 }
 0x123   : > { %v1155_v22 = vadd.f32 %v1822_v3, %v802_v20  ;;  %v804_v23 = vpop.f32.mrb[5].mxu0  ;;  %v1181_v24 = vadd.f32 %v1822_v3, %v906_v21  ;;  %v908_v25 = vpop.f32.mrb[5].mxu1 }
 0x124   : > { %v805_v26 = vpop.f32.mrb[6].mxu0  ;;  %v909_v27 = vpop.f32.mrb[6].mxu1 }
 0x125   : > { %v1205_v28 = vmax.f32 %v1155_v22, 0.0  ;;  %v1156_v29 = vadd.f32 %v1822_v3, %v805_v26  ;;  %v807_v30 = vpop.f32.mrb[7].mxu0  ;;  %v1231_v31 = vmax.f32 %v1181_v24, 0.0  ;;  %v1182_v32 = vadd.f32 %v1822_v3, %v909_v27  ;;  %v911_v33 = vpop.f32.mrb[7].mxu1 }
 0x127   : > { %1255 = vst [vmem:[%s1831_s9 + $0x10] sm:$0xff] %v1205_v28  ;;  %v1206_v34 = vmax.f32 %v1156_v29, 0.0  ;;  %1281 = vst [vmem:[%s1831_s9 + $0xe0] sm:$0xff] %v1231_v31  ;;  %v1232_v35 = vmax.f32 %v1182_v32, 0.0 }
 0x129   : > { %1256 = vst [vmem:[%s1831_s9 + $0x18] sm:$0xff] %v1206_v34  ;;  %1282 = vst [vmem:[%s1831_s9 + $0xe8] sm:$0xff] %v1232_v35 }
 0x12a   : > { %v810_v36 = vpop.f32.mrb[8].mxu0  ;;  %v914_v37 = vpop.f32.mrb[8].mxu1 }
 0x12b   : > { %v1157_v38 = vadd.f32 %v1822_v3, %v810_v36  ;;  %v812_v39 = vpop.f32.mrb[9].mxu0  ;;  %v1183_v40 = vadd.f32 %v1822_v3, %v914_v37  ;;  %v916_v41 = vpop.f32.mrb[9].mxu1 }
 0x12c   : > { %v813_v42 = vpop.f32.mrb[10].mxu0  ;;  %v917_v43 = vpop.f32.mrb[10].mxu1 }
 0x12d   : > { %v1207_v44 = vmax.f32 %v1157_v38, 0.0  ;;  %v1158_v45 = vadd.f32 %v1822_v3, %v813_v42  ;;  %v815_v46 = vpop.f32.mrb[11].mxu0  ;;  %v1233_v47 = vmax.f32 %v1183_v40, 0.0  ;;  %v1184_v48 = vadd.f32 %v1822_v3, %v917_v43  ;;  %v919_v49 = vpop.f32.mrb[11].mxu1 }
 0x12f   : > { %1257 = vst [vmem:[%s1831_s9 + $0x20] sm:$0xff] %v1207_v44  ;;  %v1208_v50 = vmax.f32 %v1158_v45, 0.0  ;;  %1283 = vst [vmem:[%s1831_s9 + $0xf0] sm:$0xff] %v1233_v47  ;;  %v1234_v51 = vmax.f32 %v1184_v48, 0.0 }
 0x131   : > { %1258 = vst [vmem:[%s1831_s9 + $0x28] sm:$0xff] %v1208_v50  ;;  %1284 = vst [vmem:[%s1831_s9 + $0xf8] sm:$0xff] %v1234_v51 }
 0x132   : > { %v818_v52 = vpop.f32.mrb[12].mxu0  ;;  %v922_v53 = vpop.f32.mrb[12].mxu1 }
 0x133   : > { %v1159_v54 = vadd.f32 %v1822_v3, %v818_v52  ;;  %v820_v55 = vpop.f32.mrb[13].mxu0  ;;  %v1185_v56 = vadd.f32 %v1822_v3, %v922_v53  ;;  %v924_v57 = vpop.f32.mrb[13].mxu1 }
 0x134   : > { %v821_v58 = vpop.f32.mrb[14].mxu0  ;;  %v925_v59 = vpop.f32.mrb[14].mxu1 }
 0x135   : > { %v1209_v60 = vmax.f32 %v1159_v54, 0.0  ;;  %v1160_v61 = vadd.f32 %v1822_v3, %v821_v58  ;;  %v823_v62 = vpop.f32.mrb[15].mxu0  ;;  %v1235_v63 = vmax.f32 %v1185_v56, 0.0  ;;  %v1186_v0 = vadd.f32 %v1822_v3, %v925_v59  ;;  %v927_v1 = vpop.f32.mrb[15].mxu1 }
 0x137   : > { %1259 = vst [vmem:[%s1831_s9 + $0x30] sm:$0xff] %v1209_v60  ;;  %v1210_v2 = vmax.f32 %v1160_v61, 0.0  ;;  %1285 = vst [vmem:[%s1831_s9 + $0x100] sm:$0xff] %v1235_v63  ;;  %v1236_v4 = vmax.f32 %v1186_v0, 0.0 }
 0x139   : > { %1260 = vst [vmem:[%s1831_s9 + $0x38] sm:$0xff] %v1210_v2  ;;  %1286 = vst [vmem:[%s1831_s9 + $0x108] sm:$0xff] %v1236_v4 }
 0x13a   : > { %v826_v5 = vpop.f32.mrb[16].mxu0  ;;  %v930_v6 = vpop.f32.mrb[16].mxu1 }
 0x13b   : > { %v1161_v7 = vadd.f32 %v1822_v3, %v826_v5  ;;  %v828_v8 = vpop.f32.mrb[17].mxu0  ;;  %v1187_v9 = vadd.f32 %v1822_v3, %v930_v6  ;;  %v932_v10 = vpop.f32.mrb[17].mxu1 }
 0x13c   : > { %v829_v11 = vpop.f32.mrb[18].mxu0  ;;  %v933_v12 = vpop.f32.mrb[18].mxu1 }
 0x13d   : > { %v1211_v13 = vmax.f32 %v1161_v7, 0.0  ;;  %v1162_v14 = vadd.f32 %v1822_v3, %v829_v11  ;;  %v831_v15 = vpop.f32.mrb[19].mxu0  ;;  %v1237_v16 = vmax.f32 %v1187_v9, 0.0  ;;  %v1188_v17 = vadd.f32 %v1822_v3, %v933_v12  ;;  %v935_v18 = vpop.f32.mrb[19].mxu1 }
 0x13f   : > { %1261 = vst [vmem:[%s1831_s9 + $0x40] sm:$0xff] %v1211_v13  ;;  %v1212_v19 = vmax.f32 %v1162_v14, 0.0  ;;  %1287 = vst [vmem:[%s1831_s9 + $0x110] sm:$0xff] %v1237_v16  ;;  %v1238_v20 = vmax.f32 %v1188_v17, 0.0 }
 0x141   : > { %1262 = vst [vmem:[%s1831_s9 + $0x48] sm:$0xff] %v1212_v19  ;;  %1288 = vst [vmem:[%s1831_s9 + $0x118] sm:$0xff] %v1238_v20 }
 0x142   : > { %v834_v21 = vpop.f32.mrb[20].mxu0  ;;  %v938_v22 = vpop.f32.mrb[20].mxu1 }
 0x143   : > { %v1163_v23 = vadd.f32 %v1822_v3, %v834_v21  ;;  %v836_v24 = vpop.f32.mrb[21].mxu0  ;;  %v1189_v25 = vadd.f32 %v1822_v3, %v938_v22  ;;  %v940_v26 = vpop.f32.mrb[21].mxu1 }
 0x144   : > { %v837_v27 = vpop.f32.mrb[22].mxu0  ;;  %v941_v28 = vpop.f32.mrb[22].mxu1 }
 0x145   : > { %v1213_v29 = vmax.f32 %v1163_v23, 0.0  ;;  %v1164_v30 = vadd.f32 %v1822_v3, %v837_v27  ;;  %v839_v31 = vpop.f32.mrb[23].mxu0  ;;  %v1239_v32 = vmax.f32 %v1189_v25, 0.0  ;;  %v1190_v33 = vadd.f32 %v1822_v3, %v941_v28  ;;  %v943_v34 = vpop.f32.mrb[23].mxu1 }
 0x147   : > { %1263 = vst [vmem:[%s1831_s9 + $0x50] sm:$0xff] %v1213_v29  ;;  %v1214_v35 = vmax.f32 %v1164_v30, 0.0  ;;  %1289 = vst [vmem:[%s1831_s9 + $0x120] sm:$0xff] %v1239_v32  ;;  %v1240_v36 = vmax.f32 %v1190_v33, 0.0 }
 0x149   : > { %1264 = vst [vmem:[%s1831_s9 + $0x58] sm:$0xff] %v1214_v35  ;;  %1290 = vst [vmem:[%s1831_s9 + $0x128] sm:$0xff] %v1240_v36 }
 0x14a   : > { %v842_v37 = vpop.f32.mrb[24].mxu0  ;;  %v946_v38 = vpop.f32.mrb[24].mxu1 }
 0x14b   : > { %v1165_v39 = vadd.f32 %v1822_v3, %v842_v37  ;;  %v844_v40 = vpop.f32.mrb[25].mxu0  ;;  %v1191_v41 = vadd.f32 %v1822_v3, %v946_v38  ;;  %v948_v42 = vpop.f32.mrb[25].mxu1 }
 0x14c   : > { %v845_v43 = vpop.f32.mrb[26].mxu0  ;;  %v949_v44 = vpop.f32.mrb[26].mxu1 }
 0x14d   : > { %v1215_v45 = vmax.f32 %v1165_v39, 0.0  ;;  %v1166_v46 = vadd.f32 %v1822_v3, %v845_v43  ;;  %v847_v47 = vpop.f32.mrb[27].mxu0  ;;  %v1241_v48 = vmax.f32 %v1191_v41, 0.0  ;;  %v1192_v49 = vadd.f32 %v1822_v3, %v949_v44  ;;  %v951_v50 = vpop.f32.mrb[27].mxu1 }
 0x14f   : > { %1265 = vst [vmem:[%s1831_s9 + $0x60] sm:$0xff] %v1215_v45  ;;  %v1216_v51 = vmax.f32 %v1166_v46, 0.0  ;;  %1291 = vst [vmem:[%s1831_s9 + $0x130] sm:$0xff] %v1241_v48  ;;  %v1242_v52 = vmax.f32 %v1192_v49, 0.0 }
 0x151   : > { %1266 = vst [vmem:[%s1831_s9 + $0x68] sm:$0xff] %v1216_v51  ;;  %1292 = vst [vmem:[%s1831_s9 + $0x138] sm:$0xff] %v1242_v52 }
 0x152   : > { %v850_v53 = vpop.f32.mrb[28].mxu0  ;;  %v954_v54 = vpop.f32.mrb[28].mxu1 }
 0x153   : > { %v1167_v55 = vadd.f32 %v1822_v3, %v850_v53  ;;  %v852_v56 = vpop.f32.mrb[29].mxu0  ;;  %v1193_v57 = vadd.f32 %v1822_v3, %v954_v54  ;;  %v956_v58 = vpop.f32.mrb[29].mxu1 }
 0x154   : > { %v853_v59 = vpop.f32.mrb[30].mxu0  ;;  %v957_v60 = vpop.f32.mrb[30].mxu1 }
 0x155   : > { %v1217_v61 = vmax.f32 %v1167_v55, 0.0  ;;  %v1168_v62 = vadd.f32 %v1822_v3, %v853_v59  ;;  %v855_v63 = vpop.f32.mrb[31].mxu0  ;;  %v1243_v0 = vmax.f32 %v1193_v57, 0.0  ;;  %v1194_v1 = vadd.f32 %v1822_v3, %v957_v60  ;;  %v959_v2 = vpop.f32.mrb[31].mxu1 }
 0x157   : > { %1267 = vst [vmem:[%s1831_s9 + $0x70] sm:$0xff] %v1217_v61  ;;  %v1218_v4 = vmax.f32 %v1168_v62, 0.0  ;;  %1293 = vst [vmem:[%s1831_s9 + $0x140] sm:$0xff] %v1243_v0  ;;  %v1244_v5 = vmax.f32 %v1194_v1, 0.0 }
 0x159   : > { %1268 = vst [vmem:[%s1831_s9 + $0x78] sm:$0xff] %v1218_v4  ;;  %1294 = vst [vmem:[%s1831_s9 + $0x148] sm:$0xff] %v1244_v5 }
 0x15a   : > { %v858_v6 = vpop.f32.mrb[32].mxu0  ;;  %v962_v7 = vpop.f32.mrb[32].mxu1 }
 0x15b   : > { %v1169_v8 = vadd.f32 %v1822_v3, %v858_v6  ;;  %v860_v9 = vpop.f32.mrb[33].mxu0  ;;  %v1195_v10 = vadd.f32 %v1822_v3, %v962_v7  ;;  %v964_v11 = vpop.f32.mrb[33].mxu1 }
 0x15c   : > { %v861_v12 = vpop.f32.mrb[34].mxu0  ;;  %v965_v13 = vpop.f32.mrb[34].mxu1 }
 0x15d   : > { %v1219_v14 = vmax.f32 %v1169_v8, 0.0  ;;  %v1170_v15 = vadd.f32 %v1822_v3, %v861_v12  ;;  %v863_v16 = vpop.f32.mrb[35].mxu0  ;;  %v1245_v17 = vmax.f32 %v1195_v10, 0.0  ;;  %v1196_v18 = vadd.f32 %v1822_v3, %v965_v13  ;;  %v967_v19 = vpop.f32.mrb[35].mxu1 }
 0x15f   : > { %1269 = vst [vmem:[%s1831_s9 + $0x80] sm:$0xff] %v1219_v14  ;;  %v1220_v20 = vmax.f32 %v1170_v15, 0.0  ;;  %1295 = vst [vmem:[%s1831_s9 + $0x150] sm:$0xff] %v1245_v17  ;;  %v1246_v21 = vmax.f32 %v1196_v18, 0.0 }
 0x161   : > { %1270 = vst [vmem:[%s1831_s9 + $0x88] sm:$0xff] %v1220_v20  ;;  %1296 = vst [vmem:[%s1831_s9 + $0x158] sm:$0xff] %v1246_v21 }
 0x162   : > { %v866_v22 = vpop.f32.mrb[36].mxu0  ;;  %v970_v23 = vpop.f32.mrb[36].mxu1 }
 0x163   : > { %v1171_v24 = vadd.f32 %v1822_v3, %v866_v22  ;;  %v868_v25 = vpop.f32.mrb[37].mxu0  ;;  %v1197_v26 = vadd.f32 %v1822_v3, %v970_v23  ;;  %v972_v27 = vpop.f32.mrb[37].mxu1 }
 0x164   : > { %v869_v28 = vpop.f32.mrb[38].mxu0  ;;  %v973_v29 = vpop.f32.mrb[38].mxu1 }
 0x165   : > { %v1221_v30 = vmax.f32 %v1171_v24, 0.0  ;;  %v1172_v31 = vadd.f32 %v1822_v3, %v869_v28  ;;  %v871_v32 = vpop.f32.mrb[39].mxu0  ;;  %v1247_v33 = vmax.f32 %v1197_v26, 0.0  ;;  %v1198_v34 = vadd.f32 %v1822_v3, %v973_v29  ;;  %v975_v35 = vpop.f32.mrb[39].mxu1 }
 0x167   : > { %1271 = vst [vmem:[%s1831_s9 + $0x90] sm:$0xff] %v1221_v30  ;;  %v1222_v36 = vmax.f32 %v1172_v31, 0.0  ;;  %1297 = vst [vmem:[%s1831_s9 + $0x160] sm:$0xff] %v1247_v33  ;;  %v1248_v37 = vmax.f32 %v1198_v34, 0.0 }
 0x169   : > { %1272 = vst [vmem:[%s1831_s9 + $0x98] sm:$0xff] %v1222_v36  ;;  %1298 = vst [vmem:[%s1831_s9 + $0x168] sm:$0xff] %v1248_v37 }
 0x16a   : > { %v874_v38 = vpop.f32.mrb[40].mxu0  ;;  %v978_v39 = vpop.f32.mrb[40].mxu1 }
 0x16b   : > { %v1173_v40 = vadd.f32 %v1822_v3, %v874_v38  ;;  %v876_v41 = vpop.f32.mrb[41].mxu0  ;;  %v1199_v42 = vadd.f32 %v1822_v3, %v978_v39  ;;  %v980_v43 = vpop.f32.mrb[41].mxu1 }
 0x16c   : > { %v877_v44 = vpop.f32.mrb[42].mxu0  ;;  %v981_v45 = vpop.f32.mrb[42].mxu1 }
 0x16d   : > { %v1223_v46 = vmax.f32 %v1173_v40, 0.0  ;;  %v1174_v47 = vadd.f32 %v1822_v3, %v877_v44  ;;  %v879_v48 = vpop.f32.mrb[43].mxu0  ;;  %v1249_v49 = vmax.f32 %v1199_v42, 0.0  ;;  %v1200_v50 = vadd.f32 %v1822_v3, %v981_v45  ;;  %v983_v51 = vpop.f32.mrb[43].mxu1 }
 0x16f   : > { %1273 = vst [vmem:[%s1831_s9 + $0xa0] sm:$0xff] %v1223_v46  ;;  %v1224_v52 = vmax.f32 %v1174_v47, 0.0  ;;  %1299 = vst [vmem:[%s1831_s9 + $0x170] sm:$0xff] %v1249_v49  ;;  %v1250_v53 = vmax.f32 %v1200_v50, 0.0 }
 0x171   : > { %1274 = vst [vmem:[%s1831_s9 + $0xa8] sm:$0xff] %v1224_v52  ;;  %1300 = vst [vmem:[%s1831_s9 + $0x178] sm:$0xff] %v1250_v53 }
 0x172   : > { %v882_v54 = vpop.f32.mrb[44].mxu0  ;;  %v986_v55 = vpop.f32.mrb[44].mxu1 }
 0x173   : > { %v1175_v56 = vadd.f32 %v1822_v3, %v882_v54  ;;  %v884_v57 = vpop.f32.mrb[45].mxu0  ;;  %v1201_v58 = vadd.f32 %v1822_v3, %v986_v55  ;;  %v988_v59 = vpop.f32.mrb[45].mxu1 }
 0x174   : > { %v885_v60 = vpop.f32.mrb[46].mxu0  ;;  %v989_v61 = vpop.f32.mrb[46].mxu1 }
 0x175   : > { %v1225_v62 = vmax.f32 %v1175_v56, 0.0  ;;  %v1176_v63 = vadd.f32 %v1822_v3, %v885_v60  ;;  %v887_v0 = vpop.f32.mrb[47].mxu0  ;;  %v1251_v1 = vmax.f32 %v1201_v58, 0.0  ;;  %v1202_v2 = vadd.f32 %v1822_v3, %v989_v61  ;;  %v991_v4 = vpop.f32.mrb[47].mxu1 }
 0x177   : > { %1275 = vst [vmem:[%s1831_s9 + $0xb0] sm:$0xff] %v1225_v62  ;;  %v1226_v5 = vmax.f32 %v1176_v63, 0.0  ;;  %1301 = vst [vmem:[%s1831_s9 + $0x180] sm:$0xff] %v1251_v1  ;;  %v1252_v6 = vmax.f32 %v1202_v2, 0.0 }
 0x179   : > { %1276 = vst [vmem:[%s1831_s9 + $0xb8] sm:$0xff] %v1226_v5  ;;  %1302 = vst [vmem:[%s1831_s9 + $0x188] sm:$0xff] %v1252_v6 }
 0x17a   : > { %v890_v7 = vpop.f32.mrb[48].mxu0 }
 0x17b   : > { %v1177_v8 = vadd.f32 %v1822_v3, %v890_v7  ;;  %v892_v9 = vpop.f32.mrb[49].mxu0 }
 0x17c   : > { %v893_v10 = vpop.f32.mrb[50].mxu0 }
 0x17d   : > { %v1227_v11 = vmax.f32 %v1177_v8, 0.0  ;;  %v1178_v12 = vadd.f32 %v1822_v3, %v893_v10  ;;  %v895_v13 = vpop.f32.mrb[51].mxu0 }
 0x17f   : > { %1277 = vst [vmem:[%s1831_s9 + $0xc0] sm:$0xff] %v1227_v11  ;;  %v1228_v14 = vmax.f32 %v1178_v12, 0.0 }
 0x181   : > { %1278 = vst [vmem:[%s1831_s9 + $0xc8] sm:$0xff] %v1228_v14 }
 0x182 PF: > { %s13_s14 = sadd.s32 1, %s1638_s14   ;;  %s1944_s12 = smov %s1634_s13 }
 0x183   : > { %p10_p5 = scmp.ge.s32.totalorder %s13_s14, 4   ;;  %s1945_s13 = smov %s1947_s15 }
 0x185   :  { %12 = sbr.rel (!%p10_p5) target bundleno = 2 (0x2), region = 73 }

// kernel: active_dqn_forward.5
= control target key start
LH: loop header
LB: loop body
LE: loop exit
PB: predicated region body
PF: predicated region fallthrough
CT: control target
= control target key end

     0   :  { %s1621_s1 = inlined_call_operand.vmem [shape: bf16[512,128], index: 1, kind: input, shape index: {}]   ;;  %s1622_s0 = inlined_call_operand.vmem [shape: bf16[168,512], index: 0, kind: input, shape index: {}]   ;;  %s1623_s2 = inlined_call_operand.vmem [shape: f32[1,128], index: 2, kind: input, shape index: {}]   ;;  %s1624_s3 = inlined_call_operand.vmem [shape: f32[168,128], index: 3, kind: output, shape index: {}]  }
   0x1   :  { %v1194_v0 = vld [vmem:[%s1621_s1 + $0x40] sm:$0xff]   ;;  %v1198_v4 = vld [vmem:[%s1621_s1 + $0x48] sm:$0xff]   ;;  %v1202_v8 = vld [vmem:[%s1621_s1 + $0x50] sm:$0xff]  }
   0x2   :  { %v1195_v1 = vld [vmem:[%s1621_s1 + $0xc0] sm:$0xff]   ;;  %1030 = vmatprep.subr.bf16.mxu0 %v1194_v0  ;;  %v1199_v5 = vld [vmem:[%s1621_s1 + $0xc8] sm:$0xff]   ;;  %v1203_v9 = vld [vmem:[%s1621_s1 + $0xd0] sm:$0xff]  }
   0x3   :  { %v1196_v2 = vld [vmem:[%s1621_s1] sm:$0xff]   ;;  %1112 = vmatprep.subr.bf16.mxu1 %v1195_v1  ;;  %v1200_v6 = vld [vmem:[%s1621_s1 + $0x8] sm:$0xff]   ;;  %v1204_v10 = vld [vmem:[%s1621_s1 + $0x10] sm:$0xff]  }
   0x4   :  { %v1197_v3 = vld [vmem:[%s1621_s1 + $0x80] sm:$0xff]   ;;  %1031 = vmatpush3.bf16.msra.mxu0 %v1196_v2  ;;  %v1201_v7 = vld [vmem:[%s1621_s1 + $0x88] sm:$0xff]   ;;  %v1205_v11 = vld [vmem:[%s1621_s1 + $0x90] sm:$0xff]  }
   0x5   :  { %1113 = vmatpush3.bf16.msra.mxu1 %v1197_v3  ;;  %1032 = vmatprep.subr.bf16.mxu0 %v1198_v4  ;;  %v1206_v12 = vld [vmem:[%s1621_s1 + $0x58] sm:$0xff]   ;;  %v1210_v16 = vld [vmem:[%s1621_s1 + $0x60] sm:$0xff]   ;;  %v1214_v20 = vld [vmem:[%s1621_s1 + $0x68] sm:$0xff]  }
   0x6   :  { %1114 = vmatprep.subr.bf16.mxu1 %v1199_v5  ;;  %v1207_v13 = vld [vmem:[%s1621_s1 + $0xd8] sm:$0xff]   ;;  %v1211_v17 = vld [vmem:[%s1621_s1 + $0xe0] sm:$0xff]   ;;  %v1215_v21 = vld [vmem:[%s1621_s1 + $0xe8] sm:$0xff]  }
   0x7   :  { %v1208_v14 = vld [vmem:[%s1621_s1 + $0x18] sm:$0xff]   ;;  %v1212_v18 = vld [vmem:[%s1621_s1 + $0x20] sm:$0xff]   ;;  %v1216_v22 = vld [vmem:[%s1621_s1 + $0x28] sm:$0xff]  }
   0x8   :  { %1033 = vmatpush3.bf16.msra.mxu0 %v1200_v6  ;;  %v1209_v15 = vld [vmem:[%s1621_s1 + $0x98] sm:$0xff]   ;;  %v1213_v19 = vld [vmem:[%s1621_s1 + $0xa0] sm:$0xff]   ;;  %v1217_v23 = vld [vmem:[%s1621_s1 + $0xa8] sm:$0xff]  }
   0x9   :  { %1115 = vmatpush3.bf16.msra.mxu1 %v1201_v7  ;;  %1034 = vmatprep.subr.bf16.mxu0 %v1202_v8  ;;  %v1218_v24 = vld [vmem:[%s1621_s1 + $0x70] sm:$0xff]   ;;  %v1222_v28 = vld [vmem:[%s1621_s1 + $0x78] sm:$0xff]   ;;  %v101_v6 = vld [vmem:[%s1622_s0 + $0x140] sm:$0xff] }
   0xa   :  { %1116 = vmatprep.subr.bf16.mxu1 %v1203_v9  ;;  %v1219_v25 = vld [vmem:[%s1621_s1 + $0xf0] sm:$0xff]   ;;  %v1223_v29 = vld [vmem:[%s1621_s1 + $0xf8] sm:$0xff]   ;;  %v102_v7 = vld [vmem:[%s1622_s0 + $0x148] sm:$0xff] }
   0xb   :  { %v1220_v26 = vld [vmem:[%s1621_s1 + $0x30] sm:$0xff]   ;;  %v1224_v30 = vld [vmem:[%s1621_s1 + $0x38] sm:$0xff]  }
   0xc   :  { %1035 = vmatpush3.bf16.msra.mxu0 %v1204_v10  ;;  %v1221_v27 = vld [vmem:[%s1621_s1 + $0xb0] sm:$0xff]   ;;  %v1225_v31 = vld [vmem:[%s1621_s1 + $0xb8] sm:$0xff]   ;;  %v994_v10 = vcombine.high %v101_v6, %v101_v6 }
   0xd   :  { %1117 = vmatpush3.bf16.msra.mxu1 %v1205_v11  ;;  %1036 = vmatprep.subr.bf16.mxu0 %v1206_v12  ;;  %v1226_v32 = vld [vmem:[%s1622_s0] ss:$16 sps:$4 sm:$0xff]   ;;  %v1228_v33 = vld [vmem:[%s1622_s0 + $0x4] ss:$16 sps:$4 sm:$0xff]   ;;  %v1229_v34 = vld [vmem:[%s1622_s0 + $0x8] ss:$16 sps:$4 sm:$0xff]   ;;  %v996_v11 = vcombine.high %v102_v7, %v102_v7  ;;  %v993_v12 = vcombine.low %v101_v6, %v101_v6 }
   0xe   :  { %1118 = vmatprep.subr.bf16.mxu1 %v1207_v13  ;;  %v1231_v35 = vld [vmem:[%s1622_s0 + $0xc] ss:$16 sps:$4 sm:$0xff]   ;;  %605 = vmatprep.mubr.bf16.mxu0 %v1228_v33  ;;  %v1232_v36 = vld [vmem:[%s1622_s0 + $0x24] ss:$16 sps:$4 sm:$0xff]   ;;  %v1236_v38 = vld [vmem:[%s1622_s0 + $0x20] ss:$16 sps:$4 sm:$0xff]   ;;  %v995_v13 = vcombine.low %v102_v7, %v102_v7 }
   0xf   :  { %725 = vmatprep.mubr.bf16.mxu1 %v1231_v35  ;;  %v1234_v37 = vld [vmem:[%s1622_s0 + $0x2c] ss:$16 sps:$4 sm:$0xff]   ;;  %v1237_v39 = vld [vmem:[%s1622_s0 + $0x28] ss:$16 sps:$4 sm:$0xff]   ;;  %v1238_v40 = vld [vmem:[%s1622_s0 + $0x44] ss:$16 sps:$4 sm:$0xff]  }
  0x10   :  { %1037 = vmatpush3.bf16.msra.mxu0 %v1208_v14  ;;  %v1240_v41 = vld [vmem:[%s1622_s0 + $0x4c] ss:$16 sps:$4 sm:$0xff]   ;;  %v1242_v42 = vld [vmem:[%s1622_s0 + $0x40] ss:$16 sps:$4 sm:$0xff]   ;;  %v1243_v43 = vld [vmem:[%s1622_s0 + $0x48] ss:$16 sps:$4 sm:$0xff]  }
  0x11   :  { %1119 = vmatpush3.bf16.msra.mxu1 %v1209_v15  ;;  %1038 = vmatprep.subr.bf16.mxu0 %v1210_v16  ;;  %v1244_v44 = vld [vmem:[%s1622_s0 + $0x64] ss:$16 sps:$4 sm:$0xff]   ;;  %v1246_v45 = vld [vmem:[%s1622_s0 + $0x6c] ss:$16 sps:$4 sm:$0xff]   ;;  %v1248_v46 = vld [vmem:[%s1622_s0 + $0x60] ss:$16 sps:$4 sm:$0xff]  }
  0x12   :  { %1120 = vmatprep.subr.bf16.mxu1 %v1211_v17  ;;  %v1249_v47 = vld [vmem:[%s1622_s0 + $0x68] ss:$16 sps:$4 sm:$0xff]   ;;  %v1250_v48 = vld [vmem:[%s1622_s0 + $0x84] ss:$16 sps:$4 sm:$0xff]   ;;  %v1252_v49 = vld [vmem:[%s1622_s0 + $0x8c] ss:$16 sps:$4 sm:$0xff]  }
  0x13   :  { %v1254_v50 = vld [vmem:[%s1622_s0 + $0x80] ss:$16 sps:$4 sm:$0xff]   ;;  %v1255_v51 = vld [vmem:[%s1622_s0 + $0x88] ss:$16 sps:$4 sm:$0xff]   ;;  %v1256_v52 = vld [vmem:[%s1622_s0 + $0xa4] ss:$16 sps:$4 sm:$0xff]  }
  0x14   :  { %1039 = vmatpush3.bf16.msra.mxu0 %v1212_v18  ;;  %v1258_v53 = vld [vmem:[%s1622_s0 + $0xac] ss:$16 sps:$4 sm:$0xff]   ;;  %v1260_v54 = vld [vmem:[%s1622_s0 + $0xa0] ss:$16 sps:$4 sm:$0xff]   ;;  %v1261_v55 = vld [vmem:[%s1622_s0 + $0xa8] ss:$16 sps:$4 sm:$0xff]  }
  0x15   :  { %1121 = vmatpush3.bf16.msra.mxu1 %v1213_v19  ;;  %1040 = vmatprep.subr.bf16.mxu0 %v1214_v20  ;;  %v1262_v56 = vld [vmem:[%s1622_s0 + $0xc4] ss:$16 sps:$4 sm:$0xff]   ;;  %v1264_v57 = vld [vmem:[%s1622_s0 + $0xcc] ss:$16 sps:$4 sm:$0xff]   ;;  %v1266_v58 = vld [vmem:[%s1622_s0 + $0xc0] ss:$16 sps:$4 sm:$0xff]  }
  0x16   :  { %1122 = vmatprep.subr.bf16.mxu1 %v1215_v21  ;;  %v1267_v59 = vld [vmem:[%s1622_s0 + $0xc8] ss:$16 sps:$4 sm:$0xff]   ;;  %v1268_v60 = vld [vmem:[%s1622_s0 + $0xe4] ss:$16 sps:$4 sm:$0xff]   ;;  %v1270_v61 = vld [vmem:[%s1622_s0 + $0xec] ss:$16 sps:$4 sm:$0xff]  }
  0x17   :  { %v1272_v62 = vld [vmem:[%s1622_s0 + $0xe0] ss:$16 sps:$4 sm:$0xff]   ;;  %v1273_v63 = vld [vmem:[%s1622_s0 + $0xe8] ss:$16 sps:$4 sm:$0xff]   ;;  %v1274_v0 = vld [vmem:[%s1622_s0 + $0x104] ss:$16 sps:$4 sm:$0xff]  }
  0x18   :  { %1041 = vmatpush3.bf16.msra.mxu0 %v1216_v22  ;;  %v1276_v1 = vld [vmem:[%s1622_s0 + $0x10c] ss:$16 sps:$4 sm:$0xff]   ;;  %v1278_v2 = vld [vmem:[%s1622_s0 + $0x100] ss:$16 sps:$4 sm:$0xff]   ;;  %v1279_v3 = vld [vmem:[%s1622_s0 + $0x108] ss:$16 sps:$4 sm:$0xff]  }
  0x19   :  { %1123 = vmatpush3.bf16.msra.mxu1 %v1217_v23  ;;  %1042 = vmatprep.subr.bf16.mxu0 %v1218_v24  ;;  %v1280_v4 = vld [vmem:[%s1622_s0 + $0x124] ss:$16 sps:$4 sm:$0xff]   ;;  %v1282_v5 = vld [vmem:[%s1622_s0 + $0x12c] ss:$16 sps:$4 sm:$0xff]   ;;  %v1284_v8 = vld [vmem:[%s1622_s0 + $0x120] ss:$16 sps:$4 sm:$0xff]  }
  0x1a   :  { %1124 = vmatprep.subr.bf16.mxu1 %v1219_v25  ;;  %v1285_v9 = vld [vmem:[%s1622_s0 + $0x128] ss:$16 sps:$4 sm:$0xff]   ;;  %v1535_v23 = vld [vmem:[%s1623_s2] ss:$0 sm:$0xff] }
  0x1c   :  { %1043 = vmatpush3.bf16.msra.mxu0 %v1220_v26 }
  0x1d   :  { %1125 = vmatpush3.bf16.msra.mxu1 %v1221_v27  ;;  %1044 = vmatprep.subr.bf16.mxu0 %v1222_v28 }
  0x1e   :  { %1126 = vmatprep.subr.bf16.mxu1 %v1223_v29 }
  0x20   :  { %1045 = vmatpush3.bf16.msra.mxu0 %v1224_v30 }
  0x21   :  { %1127 = vmatpush3.bf16.msra.mxu1 %v1225_v31 }
  0x23   :  { %606 = vmatmul.mubr.bf16.vlgmr.msra.gmra.mrb[0].mxu0 %v1226_v32 }
  0x24   :  { %726 = vmatmul.mubr.bf16.vlgmr.msra.gmra.mrb[0].mxu1 %v1229_v34  ;;  %613 = vmatprep.mubr.bf16.mxu0 %v1232_v36 }
  0x25   :  { %733 = vmatprep.mubr.bf16.mxu1 %v1234_v37 }
  0x2b   :  { %614 = vmatmul.mubr.bf16.gmra.mrb[4].mxu0 %v1236_v38 }
  0x2c   :  { %734 = vmatmul.mubr.bf16.gmra.mrb[4].mxu1 %v1237_v39  ;;  %621 = vmatprep.mubr.bf16.mxu0 %v1238_v40 }
  0x2d   :  { %741 = vmatprep.mubr.bf16.mxu1 %v1240_v41 }
  0x33   :  { %622 = vmatmul.mubr.bf16.gmra.mrb[8].mxu0 %v1242_v42 }
  0x34   :  { %742 = vmatmul.mubr.bf16.gmra.mrb[8].mxu1 %v1243_v43  ;;  %629 = vmatprep.mubr.bf16.mxu0 %v1244_v44 }
  0x35   :  { %749 = vmatprep.mubr.bf16.mxu1 %v1246_v45 }
  0x3b   :  { %630 = vmatmul.mubr.bf16.gmra.mrb[12].mxu0 %v1248_v46 }
  0x3c   :  { %750 = vmatmul.mubr.bf16.gmra.mrb[12].mxu1 %v1249_v47  ;;  %637 = vmatprep.mubr.bf16.mxu0 %v1250_v48 }
  0x3d   :  { %757 = vmatprep.mubr.bf16.mxu1 %v1252_v49 }
  0x43   :  { %638 = vmatmul.mubr.bf16.gmra.mrb[16].mxu0 %v1254_v50 }
  0x44   :  { %758 = vmatmul.mubr.bf16.gmra.mrb[16].mxu1 %v1255_v51  ;;  %645 = vmatprep.mubr.bf16.mxu0 %v1256_v52 }
  0x45   :  { %765 = vmatprep.mubr.bf16.mxu1 %v1258_v53 }
  0x4b   :  { %646 = vmatmul.mubr.bf16.gmra.mrb[20].mxu0 %v1260_v54 }
  0x4c   :  { %766 = vmatmul.mubr.bf16.gmra.mrb[20].mxu1 %v1261_v55  ;;  %653 = vmatprep.mubr.bf16.mxu0 %v1262_v56 }
  0x4d   :  { %773 = vmatprep.mubr.bf16.mxu1 %v1264_v57 }
  0x53   :  { %654 = vmatmul.mubr.bf16.gmra.mrb[24].mxu0 %v1266_v58 }
  0x54   :  { %774 = vmatmul.mubr.bf16.gmra.mrb[24].mxu1 %v1267_v59  ;;  %661 = vmatprep.mubr.bf16.mxu0 %v1268_v60 }
  0x55   :  { %781 = vmatprep.mubr.bf16.mxu1 %v1270_v61 }
  0x5b   :  { %662 = vmatmul.mubr.bf16.gmra.mrb[28].mxu0 %v1272_v62 }
  0x5c   :  { %782 = vmatmul.mubr.bf16.gmra.mrb[28].mxu1 %v1273_v63  ;;  %669 = vmatprep.mubr.bf16.mxu0 %v1274_v0 }
  0x5d   :  { %789 = vmatprep.mubr.bf16.mxu1 %v1276_v1 }
  0x63   :  { %670 = vmatmul.mubr.bf16.gmra.mrb[32].mxu0 %v1278_v2 }
  0x64   :  { %790 = vmatmul.mubr.bf16.gmra.mrb[32].mxu1 %v1279_v3  ;;  %677 = vmatprep.mubr.bf16.mxu0 %v1280_v4 }
  0x65   :  { %797 = vmatprep.mubr.bf16.mxu1 %v1282_v5 }
  0x6b   :  { %678 = vmatmul.mubr.bf16.gmra.mrb[36].mxu0 %v1284_v8 }
  0x6c   :  { %798 = vmatmul.mubr.bf16.gmra.mrb[36].mxu1 %v1285_v9  ;;  %685 = vmatprep.mubr.bf16.mxu0 %v994_v10 }
  0x6d   :  { %805 = vmatprep.mubr.bf16.mxu1 %v996_v11 }
  0x73   :  { %686 = vmatmul.mubr.bf16.gmra.mrb[40].mxu0 %v993_v12 }
  0x74   :  { %806 = vmatmul.mubr.bf16.gmra.mrb[40].mxu1 %v995_v13 }
  0xf6   :  { %v1046_v14 = vpop.f32.mrb[0].mxu0 }
  0xf7   :  { %v1128_v15 = vpop.f32.mrb[0].mxu1  ;;  %v1047_v16 = vpop.f32.mrb[1].mxu0 }
  0xf8   :  { %v1048_v17 = vadd.f32 %v1047_v16, %v1046_v14  ;;  %v1129_v18 = vpop.f32.mrb[1].mxu1  ;;  %v1049_v19 = vpop.f32.mrb[2].mxu0 }
  0xf9   :  { %v1130_v20 = vadd.f32 %v1129_v18, %v1128_v15  ;;  %v1131_v21 = vpop.f32.mrb[2].mxu1  ;;  %v1050_v22 = vpop.f32.mrb[3].mxu0 }
  0xfa   :  { %v1051_v24 = vadd.f32 %v1050_v22, %v1049_v19  ;;  %v1132_v25 = vpop.f32.mrb[3].mxu1 }
  0xfb   :  { %v728_v26 = vadd.f32 %v1130_v20, %v1048_v17  ;;  %v1133_v27 = vadd.f32 %v1132_v25, %v1131_v21 }
  0xfd   :  { %v886_v28 = vadd.f32 %v1535_v23, %v728_v26  ;;  %v731_v29 = vadd.f32 %v1133_v27, %v1051_v24 }
  0xfe   :  { %v1052_v30 = vpop.f32.mrb[4].mxu0 }
  0xff   :  { %v907_v31 = vmax.f32 %v886_v28, 0.0  ;;  %v887_v32 = vadd.f32 %v1535_v23, %v731_v29  ;;  %v1134_v33 = vpop.f32.mrb[4].mxu1  ;;  %v1053_v34 = vpop.f32.mrb[5].mxu0 }
 0x100   :  { %v1054_v35 = vadd.f32 %v1053_v34, %v1052_v30  ;;  %v1135_v36 = vpop.f32.mrb[5].mxu1  ;;  %v1055_v37 = vpop.f32.mrb[6].mxu0 }
 0x101   :  { %928 = vst [vmem:[%s1624_s3] sm:$0xff] %v907_v31  ;;  %v908_v38 = vmax.f32 %v887_v32, 0.0  ;;  %v1136_v39 = vadd.f32 %v1135_v36, %v1134_v33  ;;  %v1137_v40 = vpop.f32.mrb[6].mxu1  ;;  %v1056_v41 = vpop.f32.mrb[7].mxu0 }
 0x102   :  { %v1057_v42 = vadd.f32 %v1056_v41, %v1055_v37  ;;  %v1138_v43 = vpop.f32.mrb[7].mxu1 }
 0x103   :  { %929 = vst [vmem:[%s1624_s3 + $0x8] sm:$0xff] %v908_v38  ;;  %v736_v44 = vadd.f32 %v1136_v39, %v1054_v35  ;;  %v1139_v45 = vadd.f32 %v1138_v43, %v1137_v40 }
 0x105   :  { %v888_v46 = vadd.f32 %v1535_v23, %v736_v44  ;;  %v739_v47 = vadd.f32 %v1139_v45, %v1057_v42 }
 0x106   :  { %v1058_v48 = vpop.f32.mrb[8].mxu0 }
 0x107   :  { %v909_v49 = vmax.f32 %v888_v46, 0.0  ;;  %v889_v50 = vadd.f32 %v1535_v23, %v739_v47  ;;  %v1140_v51 = vpop.f32.mrb[8].mxu1  ;;  %v1059_v52 = vpop.f32.mrb[9].mxu0 }
 0x108   :  { %v1060_v53 = vadd.f32 %v1059_v52, %v1058_v48  ;;  %v1141_v54 = vpop.f32.mrb[9].mxu1  ;;  %v1061_v55 = vpop.f32.mrb[10].mxu0 }
 0x109   :  { %930 = vst [vmem:[%s1624_s3 + $0x10] sm:$0xff] %v909_v49  ;;  %v910_v56 = vmax.f32 %v889_v50, 0.0  ;;  %v1142_v57 = vadd.f32 %v1141_v54, %v1140_v51  ;;  %v1143_v58 = vpop.f32.mrb[10].mxu1  ;;  %v1062_v59 = vpop.f32.mrb[11].mxu0 }
 0x10a   :  { %v1063_v60 = vadd.f32 %v1062_v59, %v1061_v55  ;;  %v1144_v61 = vpop.f32.mrb[11].mxu1 }
 0x10b   :  { %931 = vst [vmem:[%s1624_s3 + $0x18] sm:$0xff] %v910_v56  ;;  %v744_v62 = vadd.f32 %v1142_v57, %v1060_v53  ;;  %v1145_v63 = vadd.f32 %v1144_v61, %v1143_v58 }
 0x10d   :  { %v890_v0 = vadd.f32 %v1535_v23, %v744_v62  ;;  %v747_v1 = vadd.f32 %v1145_v63, %v1063_v60 }
 0x10e   :  { %v1064_v2 = vpop.f32.mrb[12].mxu0 }
 0x10f   :  { %v911_v3 = vmax.f32 %v890_v0, 0.0  ;;  %v891_v4 = vadd.f32 %v1535_v23, %v747_v1  ;;  %v1146_v5 = vpop.f32.mrb[12].mxu1  ;;  %v1065_v6 = vpop.f32.mrb[13].mxu0 }
 0x110   :  { %v1066_v7 = vadd.f32 %v1065_v6, %v1064_v2  ;;  %v1147_v8 = vpop.f32.mrb[13].mxu1  ;;  %v1067_v9 = vpop.f32.mrb[14].mxu0 }
 0x111   :  { %932 = vst [vmem:[%s1624_s3 + $0x20] sm:$0xff] %v911_v3  ;;  %v912_v10 = vmax.f32 %v891_v4, 0.0  ;;  %v1148_v11 = vadd.f32 %v1147_v8, %v1146_v5  ;;  %v1149_v12 = vpop.f32.mrb[14].mxu1  ;;  %v1068_v13 = vpop.f32.mrb[15].mxu0 }
 0x112   :  { %v1069_v14 = vadd.f32 %v1068_v13, %v1067_v9  ;;  %v1150_v15 = vpop.f32.mrb[15].mxu1 }
 0x113   :  { %933 = vst [vmem:[%s1624_s3 + $0x28] sm:$0xff] %v912_v10  ;;  %v752_v16 = vadd.f32 %v1148_v11, %v1066_v7  ;;  %v1151_v17 = vadd.f32 %v1150_v15, %v1149_v12 }
 0x115   :  { %v892_v18 = vadd.f32 %v1535_v23, %v752_v16  ;;  %v755_v19 = vadd.f32 %v1151_v17, %v1069_v14 }
 0x116   :  { %v1070_v20 = vpop.f32.mrb[16].mxu0 }
 0x117   :  { %v913_v21 = vmax.f32 %v892_v18, 0.0  ;;  %v893_v22 = vadd.f32 %v1535_v23, %v755_v19  ;;  %v1152_v24 = vpop.f32.mrb[16].mxu1  ;;  %v1071_v25 = vpop.f32.mrb[17].mxu0 }
 0x118   :  { %v1072_v26 = vadd.f32 %v1071_v25, %v1070_v20  ;;  %v1153_v27 = vpop.f32.mrb[17].mxu1  ;;  %v1073_v28 = vpop.f32.mrb[18].mxu0 }
 0x119   :  { %934 = vst [vmem:[%s1624_s3 + $0x30] sm:$0xff] %v913_v21  ;;  %v914_v29 = vmax.f32 %v893_v22, 0.0  ;;  %v1154_v30 = vadd.f32 %v1153_v27, %v1152_v24  ;;  %v1155_v31 = vpop.f32.mrb[18].mxu1  ;;  %v1074_v32 = vpop.f32.mrb[19].mxu0 }
 0x11a   :  { %v1075_v33 = vadd.f32 %v1074_v32, %v1073_v28  ;;  %v1156_v34 = vpop.f32.mrb[19].mxu1 }
 0x11b   :  { %935 = vst [vmem:[%s1624_s3 + $0x38] sm:$0xff] %v914_v29  ;;  %v760_v35 = vadd.f32 %v1154_v30, %v1072_v26  ;;  %v1157_v36 = vadd.f32 %v1156_v34, %v1155_v31 }
 0x11d   :  { %v894_v37 = vadd.f32 %v1535_v23, %v760_v35  ;;  %v763_v38 = vadd.f32 %v1157_v36, %v1075_v33 }
 0x11e   :  { %v1076_v39 = vpop.f32.mrb[20].mxu0 }
 0x11f   :  { %v915_v40 = vmax.f32 %v894_v37, 0.0  ;;  %v895_v41 = vadd.f32 %v1535_v23, %v763_v38  ;;  %v1158_v42 = vpop.f32.mrb[20].mxu1  ;;  %v1077_v43 = vpop.f32.mrb[21].mxu0 }
 0x120   :  { %v1078_v44 = vadd.f32 %v1077_v43, %v1076_v39  ;;  %v1159_v45 = vpop.f32.mrb[21].mxu1  ;;  %v1079_v46 = vpop.f32.mrb[22].mxu0 }
 0x121   :  { %936 = vst [vmem:[%s1624_s3 + $0x40] sm:$0xff] %v915_v40  ;;  %v916_v47 = vmax.f32 %v895_v41, 0.0  ;;  %v1160_v48 = vadd.f32 %v1159_v45, %v1158_v42  ;;  %v1161_v49 = vpop.f32.mrb[22].mxu1  ;;  %v1080_v50 = vpop.f32.mrb[23].mxu0 }
 0x122   :  { %v1081_v51 = vadd.f32 %v1080_v50, %v1079_v46  ;;  %v1162_v52 = vpop.f32.mrb[23].mxu1 }
 0x123   :  { %937 = vst [vmem:[%s1624_s3 + $0x48] sm:$0xff] %v916_v47  ;;  %v768_v53 = vadd.f32 %v1160_v48, %v1078_v44  ;;  %v1163_v54 = vadd.f32 %v1162_v52, %v1161_v49 }
 0x125   :  { %v896_v55 = vadd.f32 %v1535_v23, %v768_v53  ;;  %v771_v56 = vadd.f32 %v1163_v54, %v1081_v51 }
 0x126   :  { %v1082_v57 = vpop.f32.mrb[24].mxu0 }
 0x127   :  { %v917_v58 = vmax.f32 %v896_v55, 0.0  ;;  %v897_v59 = vadd.f32 %v1535_v23, %v771_v56  ;;  %v1164_v60 = vpop.f32.mrb[24].mxu1  ;;  %v1083_v61 = vpop.f32.mrb[25].mxu0 }
 0x128   :  { %v1084_v62 = vadd.f32 %v1083_v61, %v1082_v57  ;;  %v1165_v63 = vpop.f32.mrb[25].mxu1  ;;  %v1085_v0 = vpop.f32.mrb[26].mxu0 }
 0x129   :  { %938 = vst [vmem:[%s1624_s3 + $0x50] sm:$0xff] %v917_v58  ;;  %v918_v1 = vmax.f32 %v897_v59, 0.0  ;;  %v1166_v2 = vadd.f32 %v1165_v63, %v1164_v60  ;;  %v1167_v3 = vpop.f32.mrb[26].mxu1  ;;  %v1086_v4 = vpop.f32.mrb[27].mxu0 }
 0x12a   :  { %v1087_v5 = vadd.f32 %v1086_v4, %v1085_v0  ;;  %v1168_v6 = vpop.f32.mrb[27].mxu1 }
 0x12b   :  { %939 = vst [vmem:[%s1624_s3 + $0x58] sm:$0xff] %v918_v1  ;;  %v776_v7 = vadd.f32 %v1166_v2, %v1084_v62  ;;  %v1169_v8 = vadd.f32 %v1168_v6, %v1167_v3 }
 0x12d   :  { %v898_v9 = vadd.f32 %v1535_v23, %v776_v7  ;;  %v779_v10 = vadd.f32 %v1169_v8, %v1087_v5 }
 0x12e   :  { %v1088_v11 = vpop.f32.mrb[28].mxu0 }
 0x12f   :  { %v919_v12 = vmax.f32 %v898_v9, 0.0  ;;  %v899_v13 = vadd.f32 %v1535_v23, %v779_v10  ;;  %v1170_v14 = vpop.f32.mrb[28].mxu1  ;;  %v1089_v15 = vpop.f32.mrb[29].mxu0 }
 0x130   :  { %v1090_v16 = vadd.f32 %v1089_v15, %v1088_v11  ;;  %v1171_v17 = vpop.f32.mrb[29].mxu1  ;;  %v1091_v18 = vpop.f32.mrb[30].mxu0 }
 0x131   :  { %940 = vst [vmem:[%s1624_s3 + $0x60] sm:$0xff] %v919_v12  ;;  %v920_v19 = vmax.f32 %v899_v13, 0.0  ;;  %v1172_v20 = vadd.f32 %v1171_v17, %v1170_v14  ;;  %v1173_v21 = vpop.f32.mrb[30].mxu1  ;;  %v1092_v22 = vpop.f32.mrb[31].mxu0 }
 0x132   :  { %v1093_v24 = vadd.f32 %v1092_v22, %v1091_v18  ;;  %v1174_v25 = vpop.f32.mrb[31].mxu1 }
 0x133   :  { %941 = vst [vmem:[%s1624_s3 + $0x68] sm:$0xff] %v920_v19  ;;  %v784_v26 = vadd.f32 %v1172_v20, %v1090_v16  ;;  %v1175_v27 = vadd.f32 %v1174_v25, %v1173_v21 }
 0x135   :  { %v900_v28 = vadd.f32 %v1535_v23, %v784_v26  ;;  %v787_v29 = vadd.f32 %v1175_v27, %v1093_v24 }
 0x136   :  { %v1094_v30 = vpop.f32.mrb[32].mxu0 }
 0x137   :  { %v921_v31 = vmax.f32 %v900_v28, 0.0  ;;  %v901_v32 = vadd.f32 %v1535_v23, %v787_v29  ;;  %v1176_v33 = vpop.f32.mrb[32].mxu1  ;;  %v1095_v34 = vpop.f32.mrb[33].mxu0 }
 0x138   :  { %v1096_v35 = vadd.f32 %v1095_v34, %v1094_v30  ;;  %v1177_v36 = vpop.f32.mrb[33].mxu1  ;;  %v1097_v37 = vpop.f32.mrb[34].mxu0 }
 0x139   :  { %942 = vst [vmem:[%s1624_s3 + $0x70] sm:$0xff] %v921_v31  ;;  %v922_v38 = vmax.f32 %v901_v32, 0.0  ;;  %v1178_v39 = vadd.f32 %v1177_v36, %v1176_v33  ;;  %v1179_v40 = vpop.f32.mrb[34].mxu1  ;;  %v1098_v41 = vpop.f32.mrb[35].mxu0 }
 0x13a   :  { %v1099_v42 = vadd.f32 %v1098_v41, %v1097_v37  ;;  %v1180_v43 = vpop.f32.mrb[35].mxu1 }
 0x13b   :  { %943 = vst [vmem:[%s1624_s3 + $0x78] sm:$0xff] %v922_v38  ;;  %v792_v44 = vadd.f32 %v1178_v39, %v1096_v35  ;;  %v1181_v45 = vadd.f32 %v1180_v43, %v1179_v40 }
 0x13d   :  { %v902_v46 = vadd.f32 %v1535_v23, %v792_v44  ;;  %v795_v47 = vadd.f32 %v1181_v45, %v1099_v42 }
 0x13e   :  { %v1100_v48 = vpop.f32.mrb[36].mxu0 }
 0x13f   :  { %v923_v49 = vmax.f32 %v902_v46, 0.0  ;;  %v903_v50 = vadd.f32 %v1535_v23, %v795_v47  ;;  %v1182_v51 = vpop.f32.mrb[36].mxu1  ;;  %v1101_v52 = vpop.f32.mrb[37].mxu0 }
 0x140   :  { %v1102_v53 = vadd.f32 %v1101_v52, %v1100_v48  ;;  %v1183_v54 = vpop.f32.mrb[37].mxu1  ;;  %v1103_v55 = vpop.f32.mrb[38].mxu0 }
 0x141   :  { %944 = vst [vmem:[%s1624_s3 + $0x80] sm:$0xff] %v923_v49  ;;  %v924_v56 = vmax.f32 %v903_v50, 0.0  ;;  %v1184_v57 = vadd.f32 %v1183_v54, %v1182_v51  ;;  %v1185_v58 = vpop.f32.mrb[38].mxu1  ;;  %v1104_v59 = vpop.f32.mrb[39].mxu0 }
 0x142   :  { %v1105_v60 = vadd.f32 %v1104_v59, %v1103_v55  ;;  %v1186_v61 = vpop.f32.mrb[39].mxu1 }
 0x143   :  { %945 = vst [vmem:[%s1624_s3 + $0x88] sm:$0xff] %v924_v56  ;;  %v800_v62 = vadd.f32 %v1184_v57, %v1102_v53  ;;  %v1187_v63 = vadd.f32 %v1186_v61, %v1185_v58 }
 0x145   :  { %v904_v0 = vadd.f32 %v1535_v23, %v800_v62  ;;  %v803_v1 = vadd.f32 %v1187_v63, %v1105_v60 }
 0x146   :  { %v1106_v2 = vpop.f32.mrb[40].mxu0 }
 0x147   :  { %v925_v3 = vmax.f32 %v904_v0, 0.0  ;;  %v905_v4 = vadd.f32 %v1535_v23, %v803_v1  ;;  %v1188_v5 = vpop.f32.mrb[40].mxu1  ;;  %v1107_v6 = vpop.f32.mrb[41].mxu0 }
 0x148   :  { %v1108_v7 = vadd.f32 %v1107_v6, %v1106_v2  ;;  %v1189_v8 = vpop.f32.mrb[41].mxu1  ;;  %v1109_v9 = vpop.f32.mrb[42].mxu0 }
 0x149   :  { %946 = vst [vmem:[%s1624_s3 + $0x90] sm:$0xff] %v925_v3  ;;  %v926_v10 = vmax.f32 %v905_v4, 0.0  ;;  %v1190_v11 = vadd.f32 %v1189_v8, %v1188_v5  ;;  %v1191_v12 = vpop.f32.mrb[42].mxu1  ;;  %v1110_v13 = vpop.f32.mrb[43].mxu0 }
 0x14a   :  { %v1192_v14 = vpop.f32.mrb[43].mxu1 }
 0x14b   :  { %947 = vst [vmem:[%s1624_s3 + $0x98] sm:$0xff] %v926_v10  ;;  %v808_v15 = vadd.f32 %v1190_v11, %v1108_v7 }
 0x14d   :  { %v906_v16 = vadd.f32 %v1535_v23, %v808_v15 }
 0x14f   :  { %v927_v17 = vmax.f32 %v906_v16, 0.0 }
 0x151   :  { %948 = vst [vmem:[%s1624_s3 + $0xa0] sm:$0xff] %v927_v17 }

// kernel: active_dqn_forward.6
= control target key start
LH: loop header
LB: loop body
LE: loop exit
PB: predicated region body
PF: predicated region fallthrough
CT: control target
= control target key end

     0   :  { %v1290_v24 = vmov 0.0   ;;  %vm1291_vm0 = vmmov 0   ;;  %s1634_s1 = inlined_call_operand.vmem [shape: bf16[640,128], index: 1, kind: input, shape index: {}]   ;;  %s1635_s0 = inlined_call_operand.vmem [shape: bf16[104,640], index: 0, kind: input, shape index: {}]   ;;  %s1636_s2 = inlined_call_operand.vmem [shape: f32[1,128], index: 2, kind: input, shape index: {}]   ;;  %s1637_s3 = inlined_call_operand.vmem [shape: f32[104,128], index: 3, kind: output, shape index: {}]  }
   0x1   :  { %v1203_v0 = vld [vmem:[%s1634_s1 + $0x40] sm:$0xff]   ;;  %v1205_v2 = vld [vmem:[%s1634_s1 + $0x48] sm:$0xff]   ;;  %v1207_v4 = vld [vmem:[%s1634_s1 + $0x50] sm:$0xff]  }
   0x2   :  { %v1204_v1 = vld [vmem:[%s1634_s1] sm:$0xff]   ;;  %1185 = vmatprep.subr.bf16.mxu1 %v1203_v0  ;;  %1010 = vmatprep.subr.bf16.mxu0 %v1203_v0  ;;  %v1206_v3 = vld [vmem:[%s1634_s1 + $0x8] sm:$0xff]   ;;  %v1208_v5 = vld [vmem:[%s1634_s1 + $0x10] sm:$0xff]  }
   0x3   :  { %1193 = vmatpush3.bf16.msra.mxu1 %v1204_v1  ;;  %1011 = vmatpush3.bf16.msra.mxu0 %v1204_v1  ;;  %v1209_v6 = vld [vmem:[%s1634_s1 + $0x58] sm:$0xff]   ;;  %v1211_v8 = vld [vmem:[%s1634_s1 + $0x60] sm:$0xff]   ;;  %v1213_v10 = vld [vmem:[%s1634_s1 + $0x68] sm:$0xff]  }
   0x4   :  { %1186 = vmatprep.subr.bf16.mxu1 %v1205_v2  ;;  %1012 = vmatprep.subr.bf16.mxu0 %v1205_v2  ;;  %v1210_v7 = vld [vmem:[%s1634_s1 + $0x18] sm:$0xff]   ;;  %v1212_v9 = vld [vmem:[%s1634_s1 + $0x20] sm:$0xff]   ;;  %v1214_v12 = vld [vmem:[%s1634_s1 + $0x28] sm:$0xff]  }
   0x5   :  { %v1221_v11 = vld [vmem:[%s1635_s0 + $0xa4] ss:$20 sps:$4 sm:$0xff]   ;;  %v1215_v14 = vld [vmem:[%s1634_s1 + $0x70] sm:$0xff]   ;;  %v1228_v23 = vld [vmem:[%s1634_s1 + $0xc8] sm:$0xff]  }
   0x6   :  { %v1225_v13 = vld [vmem:[%s1635_s0 + $0x4] ss:$20 sps:$4 sm:$0xff]   ;;  %642 = vmatprep.mubr.bf16.mxu1 %v1221_v11  ;;  %v1216_v15 = vld [vmem:[%s1634_s1 + $0x30] sm:$0xff]   ;;  %v1232_v25 = vld [vmem:[%s1635_s0 + $0x2c] ss:$20 sps:$4 sm:$0xff]  }
   0x7   :  { %1194 = vmatpush3.bf16.msra.mxu1 %v1206_v3  ;;  %1013 = vmatpush3.bf16.msra.mxu0 %v1206_v3  ;;  %v1217_v16 = vld [vmem:[%s1634_s1 + $0x78] sm:$0xff]   ;;  %v1222_v18 = vld [vmem:[%s1634_s1 + $0xc0] sm:$0xff]   ;;  %v1229_v27 = vld [vmem:[%s1634_s1 + $0x88] sm:$0xff]  }
   0x8   :  { %1187 = vmatprep.subr.bf16.mxu1 %v1207_v4  ;;  %1014 = vmatprep.subr.bf16.mxu0 %v1207_v4  ;;  %v1218_v17 = vld [vmem:[%s1634_s1 + $0x38] sm:$0xff]   ;;  %v1219_v19 = vld [vmem:[%s1635_s0 + $0xa0] ss:$20 sps:$4 sm:$0xff]   ;;  %v1230_v28 = vld [vmem:[%s1634_s1 + $0x108] sm:$0xff]  }
   0x9   :  { %610 = vmatprep.mubr.bf16.mxu0 %v1225_v13  ;;  %v1223_v20 = vld [vmem:[%s1635_s0] ss:$20 sps:$4 sm:$0xff]   ;;  %v1235_v31 = vld [vmem:[%s1635_s0 + $0x28] ss:$20 sps:$4 sm:$0xff]   ;;  %v1247_v42 = vld [vmem:[%s1635_s0 + $0x50] ss:$20 sps:$4 sm:$0xff]  }
   0xa   :  { %v1226_v21 = vld [vmem:[%s1634_s1 + $0x80] sm:$0xff]   ;;  %v1231_v29 = vld [vmem:[%s1634_s1 + $0xd0] sm:$0xff]   ;;  %v1240_v32 = vld [vmem:[%s1635_s0 + $0xc8] ss:$20 sps:$4 sm:$0xff]  }
   0xb   :  { %1195 = vmatpush3.bf16.msra.mxu1 %v1208_v5  ;;  %1015 = vmatpush3.bf16.msra.mxu0 %v1208_v5  ;;  %v1227_v22 = vld [vmem:[%s1634_s1 + $0x100] sm:$0xff]   ;;  %v1234_v30 = vld [vmem:[%s1634_s1 + $0x90] sm:$0xff]   ;;  %v1239_v35 = vld [vmem:[%s1634_s1 + $0xd8] sm:$0xff]  }
   0xc   :  { %1188 = vmatprep.subr.bf16.mxu1 %v1209_v6  ;;  %1016 = vmatprep.subr.bf16.mxu0 %v1209_v6  ;;  %v1237_v26 = vld [vmem:[%s1635_s0 + $0xcc] ss:$20 sps:$4 sm:$0xff]   ;;  %v81_v33 = vld [vmem:[%s1635_s0 + $0xf0] sm:$0xff]  ;;  %v1241_v38 = vld [vmem:[%s1634_s1 + $0x98] sm:$0xff]  }
   0xd   :  { %v1236_v34 = vld [vmem:[%s1634_s1 + $0x110] sm:$0xff]   ;;  %v965_v37 = vcombine.high %v81_v33, %v81_v33  ;;  %v1242_v39 = vld [vmem:[%s1634_s1 + $0x118] sm:$0xff]   ;;  %v1243_v40 = vld [vmem:[%s1634_s1 + $0xe0] sm:$0xff]   ;;  %v964_v43 = vcombine.low %v81_v33, %v81_v33 }
   0xe   :  { %v1244_v36 = vld [vmem:[%s1635_s0 + $0x54] ss:$20 sps:$4 sm:$0xff]   ;;  %v1246_v41 = vld [vmem:[%s1634_s1 + $0xa0] sm:$0xff]   ;;  %v1255_v46 = vld [vmem:[%s1635_s0 + $0x7c] ss:$20 sps:$4 sm:$0xff]  }
   0xf   :  { %1196 = vmatpush3.bf16.msra.mxu1 %v1210_v7  ;;  %1017 = vmatpush3.bf16.msra.mxu0 %v1210_v7  ;;  %v1248_v44 = vld [vmem:[%s1634_s1 + $0x120] sm:$0xff]   ;;  %v1250_v45 = vld [vmem:[%s1634_s1 + $0xe8] sm:$0xff]   ;;  %v1254_v50 = vld [vmem:[%s1634_s1 + $0xf0] sm:$0xff]  }
  0x10   :  { %1189 = vmatprep.subr.bf16.mxu1 %v1211_v8  ;;  %1018 = vmatprep.subr.bf16.mxu0 %v1211_v8  ;;  %v1264_v47 = vld [vmem:[%s1635_s0 + $0xc] ss:$20 sps:$4 sm:$0xff]   ;;  %v1257_v51 = vld [vmem:[%s1634_s1 + $0xb0] sm:$0xff]   ;;  %v1260_v54 = vld [vmem:[%s1634_s1 + $0xf8] sm:$0xff]  }
  0x11   :  { %v1252_v48 = vld [vmem:[%s1634_s1 + $0xa8] sm:$0xff]   ;;  %v1259_v53 = vld [vmem:[%s1634_s1 + $0x130] sm:$0xff]   ;;  %v1261_v55 = vld [vmem:[%s1634_s1 + $0xb8] sm:$0xff]  }
  0x12   :  { %v1253_v49 = vld [vmem:[%s1634_s1 + $0x128] sm:$0xff]   ;;  %v1265_v56 = vld [vmem:[%s1634_s1 + $0x138] sm:$0xff]   ;;  %v1266_v58 = vld [vmem:[%s1635_s0 + $0x10] ss:$20 sps:$4 sm:$0xff]  }
  0x13   :  { %1197 = vmatpush3.bf16.msra.mxu1 %v1212_v9  ;;  %1019 = vmatpush3.bf16.msra.mxu0 %v1212_v9  ;;  %v1258_v52 = vld [vmem:[%s1635_s0 + $0x78] ss:$20 sps:$4 sm:$0xff]   ;;  %v1262_v57 = vld [vmem:[%s1635_s0 + $0x8] ss:$20 sps:$4 sm:$0xff]   ;;  %v1269_v60 = vld [vmem:[%s1635_s0 + $0x30] ss:$20 sps:$4 sm:$0xff]  }
  0x14   :  { %1190 = vmatprep.subr.bf16.mxu1 %v1213_v10  ;;  %1020 = vmatprep.subr.bf16.mxu0 %v1213_v10  ;;  %v1267_v59 = vld [vmem:[%s1635_s0 + $0x34] ss:$20 sps:$4 sm:$0xff]   ;;  %v1270_v61 = vld [vmem:[%s1635_s0 + $0x38] ss:$20 sps:$4 sm:$0xff]   ;;  %v1271_v62 = vld [vmem:[%s1635_s0 + $0x5c] ss:$20 sps:$4 sm:$0xff]  }
  0x15   :  { %v1273_v63 = vld [vmem:[%s1635_s0 + $0x58] ss:$20 sps:$4 sm:$0xff]   ;;  %v1274_v0 = vld [vmem:[%s1635_s0 + $0x60] ss:$20 sps:$4 sm:$0xff]   ;;  %v1278_v3 = vld [vmem:[%s1635_s0 + $0x88] ss:$20 sps:$4 sm:$0xff]  }
  0x16   :  { %v1275_v1 = vld [vmem:[%s1635_s0 + $0x84] ss:$20 sps:$4 sm:$0xff]   ;;  %v1277_v2 = vld [vmem:[%s1635_s0 + $0x80] ss:$20 sps:$4 sm:$0xff]   ;;  %v1281_v5 = vld [vmem:[%s1635_s0 + $0xa8] ss:$20 sps:$4 sm:$0xff]  }
  0x17   :  { %1198 = vmatpush3.bf16.msra.mxu1 %v1214_v12  ;;  %1021 = vmatpush3.bf16.msra.mxu0 %v1214_v12  ;;  %v1279_v4 = vld [vmem:[%s1635_s0 + $0xac] ss:$20 sps:$4 sm:$0xff]   ;;  %v1282_v6 = vld [vmem:[%s1635_s0 + $0xb0] ss:$20 sps:$4 sm:$0xff]   ;;  %v1283_v7 = vld [vmem:[%s1635_s0 + $0xd4] ss:$20 sps:$4 sm:$0xff]  }
  0x18   :  { %1191 = vmatprep.subr.bf16.mxu1 %v1215_v14  ;;  %1022 = vmatprep.subr.bf16.mxu0 %v1215_v14  ;;  %v82_v8 = vld [vmem:[%s1635_s0 + $0xf8] sm:$0xff]  ;;  %v1285_v9 = vld [vmem:[%s1635_s0 + $0xd0] ss:$20 sps:$4 sm:$0xff]   ;;  %v1289_v13 = vld [vmem:[%s1635_s0 + $0x100] ss:$0 sps:$4 sm:$0xff]  }
  0x19   :  { %v1286_v10 = vld [vmem:[%s1635_s0 + $0xd8] ss:$20 sps:$4 sm:$0xff]   ;;  %v967_v11 = vcombine.high %v82_v8, %v82_v8  ;;  %v966_v12 = vcombine.low %v82_v8, %v82_v8 }
  0x1b   :  { %1199 = vmatpush3.bf16.msra.mxu1 %v1216_v15  ;;  %1023 = vmatpush3.bf16.msra.mxu0 %v1216_v15 }
  0x1c   :  { %1192 = vmatprep.subr.bf16.mxu1 %v1217_v16  ;;  %1024 = vmatprep.subr.bf16.mxu0 %v1217_v16 }
  0x1f   :  { %1200 = vmatpush3.bf16.msra.mxu1 %v1218_v17  ;;  %1025 = vmatpush3.bf16.msra.mxu0 %v1218_v17 }
  0x20   :  { %1068 = vmatprep.subr.bf16.mxu1 %v1222_v18  ;;  %1141 = vmatprep.subr.bf16.mxu0 %v1290_v24 }
  0x22   :  { %643 = vmatmul.mubr.bf16.vlgmr.msra.gmra.mrb[0].mxu1 %v1219_v19  ;;  %611 = vmatmul.mubr.bf16.vlgmr.msra.gmra.mrb[0].mxu0 %v1223_v20 }
  0x23   :  { %1069 = vmatpush3.bf16.msra.mxu1 %v1226_v21  ;;  %1142 = vmatpush3.bf16.msra.mxu0 %v1227_v22 }
  0x24   :  { %1070 = vmatprep.subr.bf16.mxu1 %v1228_v23  ;;  %1143 = vmatprep.subr.bf16.mxu0 %v1290_v24 }
  0x25   :  { %618 = vmatprep.mubr.bf16.mxu0 %v1232_v25  ;;  %650 = vmatprep.mubr.bf16.mxu1 %v1237_v26 }
  0x27   :  { %1071 = vmatpush3.bf16.msra.mxu1 %v1229_v27  ;;  %1144 = vmatpush3.bf16.msra.mxu0 %v1230_v28 }
  0x28   :  { %1072 = vmatprep.subr.bf16.mxu1 %v1231_v29  ;;  %1145 = vmatprep.subr.bf16.mxu0 %v1290_v24 }
  0x2a   :  { %619 = vmatmul.mubr.bf16.gmra.mrb[4].mxu0 %v1235_v31  ;;  %651 = vmatmul.mubr.bf16.gmra.mrb[4].mxu1 %v1240_v32 }
  0x2b   :  { %1073 = vmatpush3.bf16.msra.mxu1 %v1234_v30  ;;  %1146 = vmatpush3.bf16.msra.mxu0 %v1236_v34 }
  0x2c   :  { %1074 = vmatprep.subr.bf16.mxu1 %v1239_v35  ;;  %1147 = vmatprep.subr.bf16.mxu0 %v1290_v24 }
  0x2d   :  { %626 = vmatprep.mubr.bf16.mxu0 %v1244_v36  ;;  %658 = vmatprep.mubr.bf16.mxu1 %v965_v37 }
  0x2f   :  { %1075 = vmatpush3.bf16.msra.mxu1 %v1241_v38  ;;  %1148 = vmatpush3.bf16.msra.mxu0 %v1242_v39 }
  0x30   :  { %1076 = vmatprep.subr.bf16.mxu1 %v1243_v40  ;;  %1149 = vmatprep.subr.bf16.mxu0 %v1290_v24 }
  0x32   :  { %627 = vmatmul.mubr.bf16.gmra.mrb[8].mxu0 %v1247_v42  ;;  %659 = vmatmul.mubr.bf16.gmra.mrb[8].mxu1 %v964_v43 }
  0x33   :  { %1077 = vmatpush3.bf16.msra.mxu1 %v1246_v41  ;;  %1150 = vmatpush3.bf16.msra.mxu0 %v1248_v44 }
  0x34   :  { %1078 = vmatprep.subr.bf16.mxu1 %v1250_v45  ;;  %1151 = vmatprep.subr.bf16.mxu0 %v1290_v24 }
  0x35   :  { %634 = vmatprep.mubr.bf16.mxu0 %v1255_v46  ;;  %698 = vmatprep.mubr.bf16.mxu1 %v1264_v47 }
  0x37   :  { %1079 = vmatpush3.bf16.msra.mxu1 %v1252_v48  ;;  %1152 = vmatpush3.bf16.msra.mxu0 %v1253_v49 }
  0x38   :  { %1080 = vmatprep.subr.bf16.mxu1 %v1254_v50  ;;  %1153 = vmatprep.subr.bf16.mxu0 %v1290_v24 }
  0x3a   :  { %635 = vmatmul.mubr.bf16.gmra.mrb[12].mxu0 %v1258_v52 }
  0x3b   :  { %1081 = vmatpush3.bf16.msra.mxu1 %v1257_v51  ;;  %1154 = vmatpush3.bf16.msra.mxu0 %v1259_v53 }
  0x3c   :  { %1082 = vmatprep.subr.bf16.mxu1 %v1260_v54  ;;  %1155 = vmatprep.subr.bf16.mxu0 %v1290_v24 }
  0x3d   :  { %1157 = vmatprep.mubr.msk.bf16.mxu0 %vm1291_vm0, %v1290_v24 }
  0x3f   :  { %1083 = vmatpush3.bf16.msra.mxu1 %v1261_v55  ;;  %1156 = vmatpush3.bf16.msra.mxu0 %v1265_v56 }
  0x42   :  { %699 = vmatmul.mubr.bf16.vlgmr.msra.gmra.mrb[12].mxu1 %v1262_v57  ;;  %1158 = vmatmul.mubr.bf16.vlgmr.msra.gmra.mrb[16].mxu0 %v1266_v58 }
  0x43   :  { %706 = vmatprep.mubr.bf16.mxu1 %v1267_v59  ;;  %1161 = vmatprep.mubr.msk.bf16.mxu0 %vm1291_vm0, %v1290_v24 }
  0x4a   :  { %707 = vmatmul.mubr.bf16.gmra.mrb[16].mxu1 %v1269_v60  ;;  %1162 = vmatmul.mubr.bf16.gmra.mrb[20].mxu0 %v1270_v61 }
  0x4b   :  { %714 = vmatprep.mubr.bf16.mxu1 %v1271_v62  ;;  %1165 = vmatprep.mubr.msk.bf16.mxu0 %vm1291_vm0, %v1290_v24 }
  0x52   :  { %715 = vmatmul.mubr.bf16.gmra.mrb[20].mxu1 %v1273_v63  ;;  %1166 = vmatmul.mubr.bf16.gmra.mrb[24].mxu0 %v1274_v0 }
  0x53   :  { %722 = vmatprep.mubr.bf16.mxu1 %v1275_v1  ;;  %1169 = vmatprep.mubr.msk.bf16.mxu0 %vm1291_vm0, %v1290_v24 }
  0x5a   :  { %723 = vmatmul.mubr.bf16.gmra.mrb[24].mxu1 %v1277_v2  ;;  %1170 = vmatmul.mubr.bf16.gmra.mrb[28].mxu0 %v1278_v3  ;;  %v1572_v2 = vld [vmem:[%s1636_s2] ss:$0 sm:$0xff] }
  0x5b   :  { %730 = vmatprep.mubr.bf16.mxu1 %v1279_v4  ;;  %1173 = vmatprep.mubr.msk.bf16.mxu0 %vm1291_vm0, %v1290_v24 }
  0x62   :  { %731 = vmatmul.mubr.bf16.gmra.mrb[28].mxu1 %v1281_v5  ;;  %1174 = vmatmul.mubr.bf16.gmra.mrb[32].mxu0 %v1282_v6 }
  0x63   :  { %738 = vmatprep.mubr.bf16.mxu1 %v1283_v7  ;;  %1177 = vmatprep.mubr.msk.bf16.mxu0 %vm1291_vm0, %v1290_v24 }
  0x6a   :  { %739 = vmatmul.mubr.bf16.gmra.mrb[32].mxu1 %v1285_v9  ;;  %1178 = vmatmul.mubr.bf16.gmra.mrb[36].mxu0 %v1286_v10 }
  0x6b   :  { %746 = vmatprep.mubr.bf16.mxu1 %v967_v11  ;;  %1181 = vmatprep.mubr.msk.bf16.mxu0 %vm1291_vm0, %v1290_v24 }
  0x72   :  { %747 = vmatmul.mubr.bf16.gmra.mrb[36].mxu1 %v966_v12  ;;  %1182 = vmatmul.mubr.bf16.gmra.mrb[40].mxu0 %v1289_v13 }
  0xf5   :  { %v1050_v14 = vpop.f32.mrb[0].mxu1  ;;  %v1026_v15 = vpop.f32.mrb[0].mxu0 }
  0xf6   :  { %v1051_v16 = vpop.f32.mrb[1].mxu1  ;;  %v1027_v17 = vpop.f32.mrb[1].mxu0 }
  0xf7   :  { %v1553_v18 = vadd.f32 %v1051_v16, %v1050_v14  ;;  %v1053_v19 = vpop.f32.mrb[2].mxu1  ;;  %v1028_v20 = vadd.f32 %v1027_v17, %v1026_v15  ;;  %v1029_v21 = vpop.f32.mrb[2].mxu0 }
  0xf8   :  { %v1054_v22 = vpop.f32.mrb[3].mxu1  ;;  %v1030_v23 = vpop.f32.mrb[3].mxu0 }
  0xf9   :  { %v1555_v25 = vadd.f32 %v1054_v22, %v1053_v19  ;;  %v1031_v24 = vadd.f32 %v1030_v23, %v1029_v21 }
  0xfd   :  { %v1032_v26 = vpop.f32.mrb[4].mxu0  ;;  %v1056_v27 = vpop.f32.mrb[4].mxu1 }
  0xfe   :  { %v1033_v28 = vpop.f32.mrb[5].mxu0  ;;  %v1057_v29 = vpop.f32.mrb[5].mxu1 }
  0xff   :  { %v1034_v30 = vadd.f32 %v1033_v28, %v1032_v26  ;;  %v1035_v31 = vpop.f32.mrb[6].mxu0  ;;  %v1557_v32 = vadd.f32 %v1057_v29, %v1056_v27  ;;  %v1059_v33 = vpop.f32.mrb[6].mxu1 }
 0x100   :  { %v1036_v34 = vpop.f32.mrb[7].mxu0  ;;  %v1060_v35 = vpop.f32.mrb[7].mxu1 }
 0x101   :  { %v1037_v36 = vadd.f32 %v1036_v34, %v1035_v31  ;;  %v1559_v37 = vadd.f32 %v1060_v35, %v1059_v33 }
 0x105   :  { %v1038_v38 = vpop.f32.mrb[8].mxu0  ;;  %v1062_v39 = vpop.f32.mrb[8].mxu1 }
 0x106   :  { %v1039_v40 = vpop.f32.mrb[9].mxu0  ;;  %v1063_v41 = vpop.f32.mrb[9].mxu1 }
 0x107   :  { %v1561_v42 = vadd.f32 %v1039_v40, %v1038_v38  ;;  %v1041_v43 = vpop.f32.mrb[10].mxu0  ;;  %v1563_v44 = vadd.f32 %v1063_v41, %v1062_v39  ;;  %v1065_v45 = vpop.f32.mrb[10].mxu1 }
 0x108   :  { %v1042_v46 = vpop.f32.mrb[11].mxu0  ;;  %v1066_v47 = vpop.f32.mrb[11].mxu1 }
 0x109   :  { %v1043_v48 = vadd.f32 %v1042_v46, %v1041_v43 }
 0x10d   :  { %v1044_v49 = vpop.f32.mrb[12].mxu0 }
 0x10e   :  { %v1045_v50 = vpop.f32.mrb[13].mxu0 }
 0x10f   :  { %v1565_v51 = vadd.f32 %v1045_v50, %v1044_v49  ;;  %v1047_v52 = vpop.f32.mrb[14].mxu0 }
 0x110   :  { %v1048_v53 = vpop.f32.mrb[15].mxu0 }
 0x111   :  { %v1567_v54 = vadd.f32 %v1048_v53, %v1047_v52 }
 0x115   :  { %v1084_v55 = vpop.f32.mrb[12].mxu1  ;;  %v788_v56 = vpop.f32.mrb[16].mxu0 }
 0x116   :  { %v1085_v57 = vpop.f32.mrb[13].mxu1  ;;  %v1159_v58 = vpop.f32.mrb[17].mxu0 }
 0x117   :  { %v1086_v59 = vadd.f32 %v1085_v57, %v1084_v55  ;;  %v1087_v60 = vpop.f32.mrb[14].mxu1  ;;  %v791_v61 = vpop.f32.mrb[18].mxu0 }
 0x118   :  { %v1088_v62 = vpop.f32.mrb[15].mxu1  ;;  %v1160_v63 = vpop.f32.mrb[19].mxu0 }
 0x119   :  { %v701_v0 = vadd.f32 %v1086_v59, %v1028_v20  ;;  %v1089_v1 = vadd.f32 %v1088_v62, %v1087_v60 }
 0x11b   :  { %v789_v3 = vadd.f32 %v788_v56, %v701_v0  ;;  %v704_v4 = vadd.f32 %v1089_v1, %v1031_v24 }
 0x11d   :  { %v891_v5 = vadd.f32 %v1572_v2, %v789_v3  ;;  %v792_v6 = vadd.f32 %v791_v61, %v704_v4  ;;  %v1090_v7 = vpop.f32.mrb[16].mxu1  ;;  %v796_v8 = vpop.f32.mrb[20].mxu0 }
 0x11e   :  { %v1091_v9 = vpop.f32.mrb[17].mxu1  ;;  %v1163_v10 = vpop.f32.mrb[21].mxu0 }
 0x11f   :  { %v904_v11 = vmax.f32 %v891_v5, 0.0  ;;  %v892_v12 = vadd.f32 %v1572_v2, %v792_v6  ;;  %v1092_v13 = vadd.f32 %v1091_v9, %v1090_v7  ;;  %v1093_v14 = vpop.f32.mrb[18].mxu1  ;;  %v799_v15 = vpop.f32.mrb[22].mxu0 }
 0x120   :  { %v1094_v16 = vpop.f32.mrb[19].mxu1  ;;  %v1164_v17 = vpop.f32.mrb[23].mxu0 }
 0x121   :  { %917 = vst [vmem:[%s1637_s3] sm:$0xff] %v904_v11  ;;  %v905_v19 = vmax.f32 %v892_v12, 0.0  ;;  %v709_v20 = vadd.f32 %v1092_v13, %v1034_v30  ;;  %v1095_v21 = vadd.f32 %v1094_v16, %v1093_v14 }
 0x123   :  { %918 = vst [vmem:[%s1637_s3 + $0x8] sm:$0xff] %v905_v19  ;;  %v797_v22 = vadd.f32 %v796_v8, %v709_v20  ;;  %v712_v23 = vadd.f32 %v1095_v21, %v1037_v36 }
 0x125   :  { %v893_v24 = vadd.f32 %v1572_v2, %v797_v22  ;;  %v800_v26 = vadd.f32 %v799_v15, %v712_v23  ;;  %v1096_v27 = vpop.f32.mrb[20].mxu1  ;;  %v804_v28 = vpop.f32.mrb[24].mxu0 }
 0x126   :  { %v1097_v29 = vpop.f32.mrb[21].mxu1  ;;  %v1167_v31 = vpop.f32.mrb[25].mxu0 }
 0x127   :  { %v906_v33 = vmax.f32 %v893_v24, 0.0  ;;  %v894_v34 = vadd.f32 %v1572_v2, %v800_v26  ;;  %v1098_v35 = vadd.f32 %v1097_v29, %v1096_v27  ;;  %v1099_v38 = vpop.f32.mrb[22].mxu1  ;;  %v807_v30 = vpop.f32.mrb[26].mxu0 }
 0x128   :  { %v1100_v39 = vpop.f32.mrb[23].mxu1  ;;  %v1168_v40 = vpop.f32.mrb[27].mxu0 }
 0x129   :  { %919 = vst [vmem:[%s1637_s3 + $0x10] sm:$0xff] %v906_v33  ;;  %v907_v36 = vmax.f32 %v894_v34, 0.0  ;;  %v717_v41 = vadd.f32 %v1098_v35, %v1561_v42  ;;  %v1101_v43 = vadd.f32 %v1100_v39, %v1099_v38 }
 0x12b   :  { %920 = vst [vmem:[%s1637_s3 + $0x18] sm:$0xff] %v907_v36  ;;  %v805_v45 = vadd.f32 %v804_v28, %v717_v41  ;;  %v720_v46 = vadd.f32 %v1101_v43, %v1043_v48 }
 0x12d   :  { %v895_v47 = vadd.f32 %v1572_v2, %v805_v45  ;;  %v808_v49 = vadd.f32 %v807_v30, %v720_v46  ;;  %v1102_v50 = vpop.f32.mrb[24].mxu1  ;;  %v812_v52 = vpop.f32.mrb[28].mxu0 }
 0x12e   :  { %v1103_v53 = vpop.f32.mrb[25].mxu1  ;;  %v1171_v55 = vpop.f32.mrb[29].mxu0 }
 0x12f   :  { %v908_v56 = vmax.f32 %v895_v47, 0.0  ;;  %v896_v57 = vadd.f32 %v1572_v2, %v808_v49  ;;  %v1104_v58 = vadd.f32 %v1103_v53, %v1102_v50  ;;  %v1105_v59 = vpop.f32.mrb[26].mxu1  ;;  %v815_v42 = vpop.f32.mrb[30].mxu0 }
 0x130   :  { %v1106_v60 = vpop.f32.mrb[27].mxu1  ;;  %v1172_v61 = vpop.f32.mrb[31].mxu0 }
 0x131   :  { %921 = vst [vmem:[%s1637_s3 + $0x20] sm:$0xff] %v908_v56  ;;  %v909_v48 = vmax.f32 %v896_v57, 0.0  ;;  %v725_v62 = vadd.f32 %v1104_v58, %v1565_v51  ;;  %v1107_v63 = vadd.f32 %v1106_v60, %v1105_v59 }
 0x133   :  { %922 = vst [vmem:[%s1637_s3 + $0x28] sm:$0xff] %v909_v48  ;;  %v813_v0 = vadd.f32 %v812_v52, %v725_v62  ;;  %v728_v1 = vadd.f32 %v1107_v63, %v1567_v54 }
 0x135   :  { %v897_v3 = vadd.f32 %v1572_v2, %v813_v0  ;;  %v816_v4 = vadd.f32 %v815_v42, %v728_v1  ;;  %v1108_v5 = vpop.f32.mrb[28].mxu1  ;;  %v820_v6 = vpop.f32.mrb[32].mxu0 }
 0x136   :  { %v1109_v7 = vpop.f32.mrb[29].mxu1  ;;  %v1175_v8 = vpop.f32.mrb[33].mxu0 }
 0x137   :  { %v910_v9 = vmax.f32 %v897_v3, 0.0  ;;  %v898_v10 = vadd.f32 %v1572_v2, %v816_v4  ;;  %v1110_v11 = vadd.f32 %v1109_v7, %v1108_v5  ;;  %v1111_v51 = vpop.f32.mrb[30].mxu1  ;;  %v823_v12 = vpop.f32.mrb[34].mxu0 }
 0x138   :  { %v1112_v13 = vpop.f32.mrb[31].mxu1  ;;  %v1176_v14 = vpop.f32.mrb[35].mxu0 }
 0x139   :  { %923 = vst [vmem:[%s1637_s3 + $0x30] sm:$0xff] %v910_v9  ;;  %v911_v54 = vmax.f32 %v898_v10, 0.0  ;;  %v733_v15 = vadd.f32 %v1110_v11, %v1553_v18  ;;  %v1113_v16 = vadd.f32 %v1112_v13, %v1111_v51 }
 0x13b   :  { %924 = vst [vmem:[%s1637_s3 + $0x38] sm:$0xff] %v911_v54  ;;  %v821_v17 = vadd.f32 %v820_v6, %v733_v15  ;;  %v736_v19 = vadd.f32 %v1113_v16, %v1555_v25 }
 0x13d   :  { %v899_v20 = vadd.f32 %v1572_v2, %v821_v17  ;;  %v824_v21 = vadd.f32 %v823_v12, %v736_v19  ;;  %v1114_v22 = vpop.f32.mrb[32].mxu1  ;;  %v828_v23 = vpop.f32.mrb[36].mxu0 }
 0x13e   :  { %v1115_v24 = vpop.f32.mrb[33].mxu1  ;;  %v1179_v26 = vpop.f32.mrb[37].mxu0 }
 0x13f   :  { %v912_v27 = vmax.f32 %v899_v20, 0.0  ;;  %v900_v28 = vadd.f32 %v1572_v2, %v824_v21  ;;  %v1116_v29 = vadd.f32 %v1115_v24, %v1114_v22  ;;  %v1117_v18 = vpop.f32.mrb[34].mxu1  ;;  %v831_v31 = vpop.f32.mrb[38].mxu0 }
 0x140   :  { %v1118_v33 = vpop.f32.mrb[35].mxu1  ;;  %v1180_v34 = vpop.f32.mrb[39].mxu0 }
 0x141   :  { %925 = vst [vmem:[%s1637_s3 + $0x40] sm:$0xff] %v912_v27  ;;  %v913_v25 = vmax.f32 %v900_v28, 0.0  ;;  %v741_v35 = vadd.f32 %v1116_v29, %v1557_v32  ;;  %v1119_v38 = vadd.f32 %v1118_v33, %v1117_v18 }
 0x143   :  { %926 = vst [vmem:[%s1637_s3 + $0x48] sm:$0xff] %v913_v25  ;;  %v829_v30 = vadd.f32 %v828_v23, %v741_v35  ;;  %v744_v39 = vadd.f32 %v1119_v38, %v1559_v37 }
 0x145   :  { %v901_v40 = vadd.f32 %v1572_v2, %v829_v30  ;;  %v832_v36 = vadd.f32 %v831_v31, %v744_v39  ;;  %v1120_v41 = vpop.f32.mrb[36].mxu1  ;;  %v836_v43 = vpop.f32.mrb[40].mxu0 }
 0x146   :  { %v1121_v45 = vpop.f32.mrb[37].mxu1  ;;  %v1183_v46 = vpop.f32.mrb[41].mxu0 }
 0x147   :  { %v914_v47 = vmax.f32 %v901_v40, 0.0  ;;  %v902_v49 = vadd.f32 %v1572_v2, %v832_v36  ;;  %v1122_v50 = vadd.f32 %v1121_v45, %v1120_v41  ;;  %v1123_v32 = vpop.f32.mrb[38].mxu1  ;;  %v839_v52 = vpop.f32.mrb[42].mxu0 }
 0x148   :  { %v1124_v53 = vpop.f32.mrb[39].mxu1  ;;  %v1184_v55 = vpop.f32.mrb[43].mxu0 }
 0x149   :  { %927 = vst [vmem:[%s1637_s3 + $0x50] sm:$0xff] %v914_v47  ;;  %v915_v37 = vmax.f32 %v902_v49, 0.0  ;;  %v749_v56 = vadd.f32 %v1122_v50, %v1563_v44 }
 0x14b   :  { %928 = vst [vmem:[%s1637_s3 + $0x58] sm:$0xff] %v915_v37  ;;  %v837_v57 = vadd.f32 %v836_v43, %v749_v56 }
 0x14d   :  { %v903_v58 = vadd.f32 %v1572_v2, %v837_v57 }
 0x14f   :  { %v916_v59 = vmax.f32 %v903_v58, 0.0 }
 0x151   :  { %929 = vst [vmem:[%s1637_s3 + $0x60] sm:$0xff] %v916_v59 }

// kernel: active_dqn_forward.7
= control target key start
LH: loop header
LB: loop body
LE: loop exit
PB: predicated region body
PF: predicated region fallthrough
CT: control target
= control target key end

     0   :  { %s4224_s27 = smov 0   ;;  %s4853_s0 = inlined_call_operand.vmem [shape: bf16[8,3200], index: 0, kind: input, shape index: {}]   ;;  %s4854_s1 = inlined_call_operand.vmem [shape: bf16[3200,1024], index: 1, kind: input, shape index: {}]   ;;  %s4855_s2 = inlined_call_operand.vmem [shape: f32[1,1024], index: 2, kind: input, shape index: {}]   ;;  %s4856_s3 = inlined_call_operand.vmem [shape: bf16[512,128], index: 3, kind: input, shape index: {}]   ;;  %s4857_s4 = inlined_call_operand.vmem [shape: f32[1,128], index: 4, kind: input, shape index: {}]   ;;  %s4858_s5 = inlined_call_operand.vmem [shape: bf16[512,128], index: 5, kind: input, shape index: {}]   ;;  %s4859_s6 = inlined_call_operand.vmem [shape: f32[1,128], index: 6, kind: input, shape index: {}]   ;;  %s4860_s7 = inlined_call_operand.vmem [shape: f32[8,128], index: 7, kind: output, shape index: {0}]   ;;  %s4861_s8 = inlined_call_operand.vmem [shape: f32[8,128], index: 8, kind: output, shape index: {1}]  }
   0x1 LB: > { %s4230_s28 = sadd.s32 4294967295, %s4175_s27   ;;  %p3601_p0 = scmp.ge.s32.totalorder %s4175_s27, 1  ;;  %s4175_s27 = sphi %s4224_s27, %s19_s27  }
   0x2   : > { %p268_p1 = scmp.lt.s32.totalorder %s4175_s27, 6 }
   0x4   : > { %p269_p2 = pnand %p3601_p0, %p268_p1 }
   0x5   : > { %s303_s29 = smul.u32 (!%p269_p2), 5, %s4230_s28  ;;  %p3605_p5 = scmp.ne.s32.totalorder (!%p269_p2), %s4230_s28, 0 }
   0x6   : > { %272 = sbr.rel (%p269_p2) target bundleno = 821 (0x335), region = 48 }
   0x7   : > { %s309_s30 = smul.u32 (!%p269_p2), 80, %s4230_s28  ;;  %p304_p3 = scmp.lt.s32.totalorder (!%p269_p2), %s303_s29, 24 }
   0x9   : > { %p310_p4 = scmp.lt.s32.totalorder (!%p269_p2), %s309_s30, 399 }
   0xd   : > { %s4863_s29 = smov (!%p304_p3, %s303_s29), 24  ;;  %s4865_s30 = smov (!%p310_p4, %s309_s30), 399 }
   0xe   : > { %s3602_s9 = sshll.u32 %s4863_s29, 2  ;;  %s4000_s13 = sshll.u32 %s4865_s30, 5  ;;  %v4177_v0 = vmov (!%p3605_p5), 0.0  }
   0xf   : > { %s4239_s12 = scalar_lea.vmem %s4853_s0, %s3602_s9  ;;  %s4244_s16 = scalar_lea.vmem %s4854_s1, %s4000_s13  ;;  %321 = vst [vmem:[#allocation2] sm:$0xff] (!%p3605_p5), %v4177_v0  ;;  %322 = vst [vmem:[#allocation2 + $0x8] sm:$0xff] (!%p3605_p5), %v4177_v0 }
  0x10   : > { %320 = sbr.rel (%p3605_p5) target bundleno = 23 (0x17), region = 52  ;;  %323 = vst [vmem:[#allocation2 + $0x10] sm:$0xff] (!%p3605_p5), %v4177_v0  ;;  %324 = vst [vmem:[#allocation2 + $0x18] sm:$0xff] (!%p3605_p5), %v4177_v0 }
  0x11   : > { %325 = vst [vmem:[#allocation2 + $0x20] sm:$0xff] (!%p3605_p5), %v4177_v0  ;;  %326 = vst [vmem:[#allocation2 + $0x28] sm:$0xff] (!%p3605_p5), %v4177_v0 }
  0x12   : > { %327 = vst [vmem:[#allocation2 + $0x30] sm:$0xff] (!%p3605_p5), %v4177_v0  ;;  %328 = vst [vmem:[#allocation2 + $0x38] sm:$0xff] (!%p3605_p5), %v4177_v0 }
  0x17 PF: > { %v340_v1 = vld [vmem:[%s4244_s16] sm:$0xff]  ;;  %v4279_v55 = vld [vmem:[%s4239_s12 + $0x8] sm:$0xff]  ;;  %p3931_p6 = scmp.ne.s32.totalorder %s4230_s28, 4 }
  0x18   : > { %v344_v2 = vld [vmem:[%s4244_s16 + $0x20] sm:$0xff]  ;;  %v4289_v60 = vcombine.high %v4279_v55, %v4279_v55 }
  0x19   : > { %v468_v3 = vld [vmem:[%s4244_s16 + $0x400] sm:$0xff]  ;;  %v3612_v4 = vcombine.high %v340_v1, %v344_v2  ;;  %v3611_v6 = vcombine.low %v340_v1, %v344_v2 }
  0x1a   : > { %v472_v5 = vld [vmem:[%s4244_s16 + $0x420] sm:$0xff]  ;;  %2351 = vmatprep.mubr.bf16.mxu1 %v4289_v60 }
  0x1b   : > { %v348_v7 = vld [vmem:[%s4244_s16 + $0x40] sm:$0xff]  ;;  %v3740_v9 = vcombine.high %v468_v3, %v472_v5  ;;  %v3739_v10 = vcombine.low %v468_v3, %v472_v5  ;;  %2278 = vmatprep.subr.bf16.mxu0 %v3612_v4 }
  0x1c   : > { %v352_v8 = vld [vmem:[%s4244_s16 + $0x60] sm:$0xff]  ;;  %2279 = vmatpush1.bf16.msra.mxu0 %v3611_v6 }
  0x1d   : > { %v3620_v11 = vcombine.high %v348_v7, %v352_v8  ;;  %v476_v12 = vld [vmem:[%s4244_s16 + $0x440] sm:$0xff]  ;;  %2319 = vmatprep.subr.bf16.mxu1 %v3740_v9  ;;  %v3619_v19 = vcombine.low %v348_v7, %v352_v8 }
  0x1e   : > { %v480_v13 = vld [vmem:[%s4244_s16 + $0x460] sm:$0xff]  ;;  %2320 = vmatpush1.bf16.msra.mxu1 %v3739_v10 }
  0x1f   : > { %v356_v14 = vld [vmem:[%s4244_s16 + $0x80] sm:$0xff]  ;;  %v3748_v15 = vcombine.high %v476_v12, %v480_v13  ;;  %2280 = vmatprep.subr.bf16.mxu0 %v3620_v11  ;;  %v3747_v20 = vcombine.low %v476_v12, %v480_v13 }
  0x20   : > { %v360_v16 = vld [vmem:[%s4244_s16 + $0xa0] sm:$0xff]  ;;  %2281 = vmatpush1.bf16.msra.mxu0 %v3619_v19 }
  0x21   : > { %v484_v17 = vld [vmem:[%s4244_s16 + $0x480] sm:$0xff]  ;;  %v3628_v21 = vcombine.high %v356_v14, %v360_v16  ;;  %2321 = vmatprep.subr.bf16.mxu1 %v3748_v15  ;;  %v3627_v27 = vcombine.low %v356_v14, %v360_v16 }
  0x22   : > { %v488_v18 = vld [vmem:[%s4244_s16 + $0x4a0] sm:$0xff]  ;;  %2322 = vmatpush1.bf16.msra.mxu1 %v3747_v20 }
  0x23   : > { %v3756_v22 = vcombine.high %v484_v17, %v488_v18  ;;  %v364_v23 = vld [vmem:[%s4244_s16 + $0xc0] sm:$0xff]  ;;  %2282 = vmatprep.subr.bf16.mxu0 %v3628_v21  ;;  %v3755_v28 = vcombine.low %v484_v17, %v488_v18 }
  0x24   : > { %v368_v24 = vld [vmem:[%s4244_s16 + $0xe0] sm:$0xff]  ;;  %2283 = vmatpush1.bf16.msra.mxu0 %v3627_v27 }
  0x25   : > { %v492_v25 = vld [vmem:[%s4244_s16 + $0x4c0] sm:$0xff]  ;;  %v3636_v29 = vcombine.high %v364_v23, %v368_v24  ;;  %2323 = vmatprep.subr.bf16.mxu1 %v3756_v22  ;;  %v3635_v35 = vcombine.low %v364_v23, %v368_v24 }
  0x26   : > { %v496_v26 = vld [vmem:[%s4244_s16 + $0x4e0] sm:$0xff]  ;;  %2324 = vmatpush1.bf16.msra.mxu1 %v3755_v28 }
  0x27   : > { %v3764_v30 = vcombine.high %v492_v25, %v496_v26  ;;  %v372_v31 = vld [vmem:[%s4244_s16 + $0x100] sm:$0xff]  ;;  %2284 = vmatprep.subr.bf16.mxu0 %v3636_v29  ;;  %v3763_v36 = vcombine.low %v492_v25, %v496_v26 }
  0x28   : > { %v376_v32 = vld [vmem:[%s4244_s16 + $0x120] sm:$0xff]  ;;  %2285 = vmatpush1.bf16.msra.mxu0 %v3635_v35 }
  0x29   : > { %v500_v33 = vld [vmem:[%s4244_s16 + $0x500] sm:$0xff]  ;;  %v3644_v37 = vcombine.high %v372_v31, %v376_v32  ;;  %2325 = vmatprep.subr.bf16.mxu1 %v3764_v30  ;;  %v3643_v43 = vcombine.low %v372_v31, %v376_v32 }
  0x2a   : > { %v504_v34 = vld [vmem:[%s4244_s16 + $0x520] sm:$0xff]  ;;  %2326 = vmatpush1.bf16.msra.mxu1 %v3763_v36 }
  0x2b   : > { %v3772_v38 = vcombine.high %v500_v33, %v504_v34  ;;  %v380_v39 = vld [vmem:[%s4244_s16 + $0x140] sm:$0xff]  ;;  %2286 = vmatprep.subr.bf16.mxu0 %v3644_v37  ;;  %v3771_v44 = vcombine.low %v500_v33, %v504_v34 }
  0x2c   : > { %v384_v40 = vld [vmem:[%s4244_s16 + $0x160] sm:$0xff]  ;;  %2287 = vmatpush1.bf16.msra.mxu0 %v3643_v43 }
  0x2d   : > { %v508_v41 = vld [vmem:[%s4244_s16 + $0x540] sm:$0xff]  ;;  %v3652_v45 = vcombine.high %v380_v39, %v384_v40  ;;  %2327 = vmatprep.subr.bf16.mxu1 %v3772_v38  ;;  %v3651_v51 = vcombine.low %v380_v39, %v384_v40 }
  0x2e   : > { %v512_v42 = vld [vmem:[%s4244_s16 + $0x560] sm:$0xff]  ;;  %2328 = vmatpush1.bf16.msra.mxu1 %v3771_v44 }
  0x2f   : > { %v3780_v46 = vcombine.high %v508_v41, %v512_v42  ;;  %v388_v47 = vld [vmem:[%s4244_s16 + $0x180] sm:$0xff]  ;;  %2288 = vmatprep.subr.bf16.mxu0 %v3652_v45  ;;  %v3779_v52 = vcombine.low %v508_v41, %v512_v42 }
  0x30   : > { %v392_v48 = vld [vmem:[%s4244_s16 + $0x1a0] sm:$0xff]  ;;  %2289 = vmatpush1.bf16.msra.mxu0 %v3651_v51 }
  0x31   : > { %v516_v49 = vld [vmem:[%s4244_s16 + $0x580] sm:$0xff]  ;;  %v3660_v53 = vcombine.high %v388_v47, %v392_v48  ;;  %2329 = vmatprep.subr.bf16.mxu1 %v3780_v46  ;;  %v3659_v63 = vcombine.low %v388_v47, %v392_v48 }
  0x32   : > { %v520_v50 = vld [vmem:[%s4244_s16 + $0x5a0] sm:$0xff]  ;;  %2330 = vmatpush1.bf16.msra.mxu1 %v3779_v52 }
  0x33   : > { %v4276_v54 = vld [vmem:[%s4239_s12] sm:$0xff]  ;;  %v3788_v56 = vcombine.high %v516_v49, %v520_v50  ;;  %2290 = vmatprep.subr.bf16.mxu0 %v3660_v53  ;;  %v3787_v0 = vcombine.low %v516_v49, %v520_v50 }
  0x34   : > { %v396_v57 = vld [vmem:[%s4244_s16 + $0x1c0] sm:$0xff]  ;;  %v4285_v59 = vcombine.high %v4276_v54, %v4276_v54  ;;  %2291 = vmatpush1.bf16.msra.mxu0 %v3659_v63 }
  0x35   : > { %v400_v58 = vld [vmem:[%s4244_s16 + $0x1e0] sm:$0xff]  ;;  %2331 = vmatprep.subr.bf16.mxu1 %v3788_v56 }
  0x36   : > { %v524_v61 = vld [vmem:[%s4244_s16 + $0x5c0] sm:$0xff]  ;;  %2310 = vmatprep.mubr.bf16.mxu0 %v4285_v59  ;;  %v3668_v1 = vcombine.high %v396_v57, %v400_v58  ;;  %v3667_v7 = vcombine.low %v396_v57, %v400_v58  ;;  %2332 = vmatpush1.bf16.msra.mxu1 %v3787_v0 }
  0x37   : > { %v528_v62 = vld [vmem:[%s4244_s16 + $0x5e0] sm:$0xff] }
  0x38   : > { %v3796_v2 = vcombine.high %v524_v61, %v528_v62  ;;  %v404_v3 = vld [vmem:[%s4244_s16 + $0x200] sm:$0xff]  ;;  %2292 = vmatprep.subr.bf16.mxu0 %v3668_v1  ;;  %v3795_v8 = vcombine.low %v524_v61, %v528_v62 }
  0x39   : > { %v408_v4 = vld [vmem:[%s4244_s16 + $0x220] sm:$0xff]  ;;  %2293 = vmatpush1.bf16.msra.mxu0 %v3667_v7 }
  0x3a   : > { %v532_v5 = vld [vmem:[%s4244_s16 + $0x600] sm:$0xff]  ;;  %v3676_v9 = vcombine.high %v404_v3, %v408_v4  ;;  %2333 = vmatprep.subr.bf16.mxu1 %v3796_v2  ;;  %v3675_v15 = vcombine.low %v404_v3, %v408_v4 }
  0x3b   : > { %v536_v6 = vld [vmem:[%s4244_s16 + $0x620] sm:$0xff]  ;;  %2334 = vmatpush1.bf16.msra.mxu1 %v3795_v8 }
  0x3c   : > { %v3804_v10 = vcombine.high %v532_v5, %v536_v6  ;;  %v412_v11 = vld [vmem:[%s4244_s16 + $0x240] sm:$0xff]  ;;  %2294 = vmatprep.subr.bf16.mxu0 %v3676_v9  ;;  %v3803_v16 = vcombine.low %v532_v5, %v536_v6  ;;  %v341_v9 = vld [vmem:[%s4244_s16 + $0x8] sm:$0xff] }
  0x3d   : > { %v416_v12 = vld [vmem:[%s4244_s16 + $0x260] sm:$0xff]  ;;  %2295 = vmatpush1.bf16.msra.mxu0 %v3675_v15 }
  0x3e   : > { %v540_v13 = vld [vmem:[%s4244_s16 + $0x640] sm:$0xff]  ;;  %v3684_v17 = vcombine.high %v412_v11, %v416_v12  ;;  %2335 = vmatprep.subr.bf16.mxu1 %v3804_v10  ;;  %v3683_v23 = vcombine.low %v412_v11, %v416_v12  ;;  %v345_v10 = vld [vmem:[%s4244_s16 + $0x28] sm:$0xff] }
  0x3f   : > { %v544_v14 = vld [vmem:[%s4244_s16 + $0x660] sm:$0xff]  ;;  %2336 = vmatpush1.bf16.msra.mxu1 %v3803_v16 }
  0x40   : > { %v3812_v18 = vcombine.high %v540_v13, %v544_v14  ;;  %v420_v19 = vld [vmem:[%s4244_s16 + $0x280] sm:$0xff]  ;;  %2296 = vmatprep.subr.bf16.mxu0 %v3684_v17  ;;  %v3811_v24 = vcombine.low %v540_v13, %v544_v14  ;;  %v3614_v14 = vcombine.high %v341_v9, %v345_v10  ;;  %v4335_v17 = vcombine.low %v4276_v54, %v4276_v54 }
  0x41   : > { %v424_v20 = vld [vmem:[%s4244_s16 + $0x2a0] sm:$0xff]  ;;  %2297 = vmatpush1.bf16.msra.mxu0 %v3683_v23 }
  0x42   : > { %v548_v21 = vld [vmem:[%s4244_s16 + $0x680] sm:$0xff]  ;;  %v3692_v25 = vcombine.high %v420_v19, %v424_v20  ;;  %2337 = vmatprep.subr.bf16.mxu1 %v3812_v18  ;;  %v3691_v31 = vcombine.low %v420_v19, %v424_v20  ;;  %v349_v18 = vld [vmem:[%s4244_s16 + $0x48] sm:$0xff]  ;;  %v4341_v20 = vcombine.low %v4279_v55, %v4279_v55 }
  0x43   : > { %v552_v22 = vld [vmem:[%s4244_s16 + $0x6a0] sm:$0xff]  ;;  %2338 = vmatpush1.bf16.msra.mxu1 %v3811_v24  ;;  %v353_v19 = vld [vmem:[%s4244_s16 + $0x68] sm:$0xff] }
  0x44   : > { %v3820_v26 = vcombine.high %v548_v21, %v552_v22  ;;  %v428_v27 = vld [vmem:[%s4244_s16 + $0x2c0] sm:$0xff]  ;;  %2298 = vmatprep.subr.bf16.mxu0 %v3692_v25  ;;  %v3819_v32 = vcombine.low %v548_v21, %v552_v22  ;;  %v3613_v22 = vcombine.low %v341_v9, %v345_v10  ;;  %v3622_v24 = vcombine.high %v349_v18, %v353_v19 }
  0x45   : > { %v432_v28 = vld [vmem:[%s4244_s16 + $0x2e0] sm:$0xff]  ;;  %2299 = vmatpush1.bf16.msra.mxu0 %v3691_v31 }
  0x46   : > { %v556_v29 = vld [vmem:[%s4244_s16 + $0x6c0] sm:$0xff]  ;;  %v3700_v33 = vcombine.high %v428_v27, %v432_v28  ;;  %2339 = vmatprep.subr.bf16.mxu1 %v3820_v26  ;;  %v3699_v39 = vcombine.low %v428_v27, %v432_v28  ;;  %v357_v26 = vld [vmem:[%s4244_s16 + $0x88] sm:$0xff]  ;;  %v3621_v28 = vcombine.low %v349_v18, %v353_v19 }
  0x47   : > { %v560_v30 = vld [vmem:[%s4244_s16 + $0x6e0] sm:$0xff]  ;;  %2340 = vmatpush1.bf16.msra.mxu1 %v3819_v32  ;;  %v361_v27 = vld [vmem:[%s4244_s16 + $0xa8] sm:$0xff] }
  0x48   : > { %v3828_v34 = vcombine.high %v556_v29, %v560_v30  ;;  %v436_v35 = vld [vmem:[%s4244_s16 + $0x300] sm:$0xff]  ;;  %2300 = vmatprep.subr.bf16.mxu0 %v3700_v33  ;;  %v3827_v40 = vcombine.low %v556_v29, %v560_v30  ;;  %v3630_v30 = vcombine.high %v357_v26, %v361_v27  ;;  %v4178_v33 = vmov 0  }
  0x49   : > { %v440_v36 = vld [vmem:[%s4244_s16 + $0x320] sm:$0xff]  ;;  %2301 = vmatpush1.bf16.msra.mxu0 %v3699_v39 }
  0x4a   : > { %v564_v37 = vld [vmem:[%s4244_s16 + $0x700] sm:$0xff]  ;;  %v3708_v41 = vcombine.high %v436_v35, %v440_v36  ;;  %2341 = vmatprep.subr.bf16.mxu1 %v3828_v34  ;;  %v3707_v47 = vcombine.low %v436_v35, %v440_v36  ;;  %v365_v34 = vld [vmem:[%s4244_s16 + $0xc8] sm:$0xff] }
  0x4b   : > { %v568_v38 = vld [vmem:[%s4244_s16 + $0x720] sm:$0xff]  ;;  %2342 = vmatpush1.bf16.msra.mxu1 %v3827_v40  ;;  %v369_v35 = vld [vmem:[%s4244_s16 + $0xe8] sm:$0xff] }
  0x4c   : > { %v3836_v42 = vcombine.high %v564_v37, %v568_v38  ;;  %v444_v43 = vld [vmem:[%s4244_s16 + $0x340] sm:$0xff]  ;;  %2302 = vmatprep.subr.bf16.mxu0 %v3708_v41  ;;  %v3835_v48 = vcombine.low %v564_v37, %v568_v38  ;;  %v3629_v37 = vcombine.low %v357_v26, %v361_v27  ;;  %v3638_v39 = vcombine.high %v365_v34, %v369_v35 }
  0x4d   : > { %v448_v44 = vld [vmem:[%s4244_s16 + $0x360] sm:$0xff]  ;;  %2303 = vmatpush1.bf16.msra.mxu0 %v3707_v47 }
  0x4e   : > { %v572_v45 = vld [vmem:[%s4244_s16 + $0x740] sm:$0xff]  ;;  %v3716_v49 = vcombine.high %v444_v43, %v448_v44  ;;  %2343 = vmatprep.subr.bf16.mxu1 %v3836_v42  ;;  %v3715_v57 = vcombine.low %v444_v43, %v448_v44  ;;  %v373_v42 = vld [vmem:[%s4244_s16 + $0x108] sm:$0xff] }
  0x4f   : > { %v576_v46 = vld [vmem:[%s4244_s16 + $0x760] sm:$0xff]  ;;  %2344 = vmatpush1.bf16.msra.mxu1 %v3835_v48  ;;  %v377_v43 = vld [vmem:[%s4244_s16 + $0x128] sm:$0xff] }
  0x50   : > { %v3844_v50 = vcombine.high %v572_v45, %v576_v46  ;;  %v452_v51 = vld [vmem:[%s4244_s16 + $0x380] sm:$0xff]  ;;  %2304 = vmatprep.subr.bf16.mxu0 %v3716_v49  ;;  %v3843_v58 = vcombine.low %v572_v45, %v576_v46  ;;  %v3637_v45 = vcombine.low %v365_v34, %v369_v35  ;;  %v3646_v47 = vcombine.high %v373_v42, %v377_v43 }
  0x51   : > { %v456_v52 = vld [vmem:[%s4244_s16 + $0x3a0] sm:$0xff]  ;;  %2305 = vmatpush1.bf16.msra.mxu0 %v3715_v57 }
  0x52   : > { %v580_v53 = vld [vmem:[%s4244_s16 + $0x780] sm:$0xff]  ;;  %v3724_v61 = vcombine.high %v452_v51, %v456_v52  ;;  %2345 = vmatprep.subr.bf16.mxu1 %v3844_v50  ;;  %v3723_v3 = vcombine.low %v452_v51, %v456_v52  ;;  %v381_v50 = vld [vmem:[%s4244_s16 + $0x148] sm:$0xff] }
  0x53   : > { %v584_v56 = vld [vmem:[%s4244_s16 + $0x7a0] sm:$0xff]  ;;  %2346 = vmatpush1.bf16.msra.mxu1 %v3843_v58  ;;  %v385_v51 = vld [vmem:[%s4244_s16 + $0x168] sm:$0xff] }
  0x54   : > { %v3852_v62 = vcombine.high %v580_v53, %v584_v56  ;;  %v460_v63 = vld [vmem:[%s4244_s16 + $0x3c0] sm:$0xff]  ;;  %2306 = vmatprep.subr.bf16.mxu0 %v3724_v61  ;;  %v3851_v4 = vcombine.low %v580_v53, %v584_v56  ;;  %v3645_v53 = vcombine.low %v373_v42, %v377_v43  ;;  %v3654_v57 = vcombine.high %v381_v50, %v385_v51 }
  0x55   : > { %v464_v0 = vld [vmem:[%s4244_s16 + $0x3e0] sm:$0xff]  ;;  %2307 = vmatpush1.bf16.msra.mxu0 %v3723_v3 }
  0x56   : > { %v588_v1 = vld [vmem:[%s4244_s16 + $0x7c0] sm:$0xff]  ;;  %v3732_v5 = vcombine.high %v460_v63, %v464_v0  ;;  %2347 = vmatprep.subr.bf16.mxu1 %v3852_v62  ;;  %v3731_v11 = vcombine.low %v460_v63, %v464_v0  ;;  %v389_v62 = vld [vmem:[%s4244_s16 + $0x188] sm:$0xff] }
  0x57   : > { %v592_v2 = vld [vmem:[%s4244_s16 + $0x7e0] sm:$0xff]  ;;  %2348 = vmatpush1.bf16.msra.mxu1 %v3851_v4  ;;  %v393_v63 = vld [vmem:[%s4244_s16 + $0x1a8] sm:$0xff] }
  0x58   : > { %v3860_v6 = vcombine.high %v588_v1, %v592_v2  ;;  %v596_v7 = vld [vmem:[%s4244_s16 + $0x800] sm:$0xff]  ;;  %2308 = vmatprep.subr.bf16.mxu0 %v3732_v5  ;;  %v3859_v12 = vcombine.low %v588_v1, %v592_v2  ;;  %v3653_v1 = vcombine.low %v381_v50, %v385_v51  ;;  %v3662_v3 = vcombine.high %v389_v62, %v393_v63 }
  0x59   : > { %v600_v8 = vld [vmem:[%s4244_s16 + $0x820] sm:$0xff]  ;;  %2309 = vmatpush1.bf16.msra.mxu0 %v3731_v11  ;;  %v3661_v9 = vcombine.low %v389_v62, %v393_v63 }
  0x5a   : > { %v3868_v13 = vcombine.high %v596_v7, %v600_v8  ;;  %2349 = vmatprep.subr.bf16.mxu1 %v3860_v6  ;;  %v604_v15 = vld [vmem:[%s4244_s16 + $0x840] sm:$0xff]  ;;  %v3867_v21 = vcombine.low %v596_v7, %v600_v8  ;;  %v397_v6 = vld [vmem:[%s4244_s16 + $0x1c8] sm:$0xff] }
  0x5b   : > { %v608_v16 = vld [vmem:[%s4244_s16 + $0x860] sm:$0xff]  ;;  %2350 = vmatpush1.bf16.msra.mxu1 %v3859_v12  ;;  %v401_v7 = vld [vmem:[%s4244_s16 + $0x1e8] sm:$0xff] }
  0x5c   : > { %2360 = vmatprep.subr.bf16.mxu0 %v3868_v13  ;;  %v3876_v23 = vcombine.high %v604_v15, %v608_v16  ;;  %2401 = vmatprep.subr.bf16.mxu1 %v3614_v14  ;;  %v612_v25 = vld [vmem:[%s4244_s16 + $0x880] sm:$0xff]  ;;  %v3875_v55 = vcombine.low %v604_v15, %v608_v16  ;;  %v3670_v11 = vcombine.high %v397_v6, %v401_v7  ;;  %v469_v12 = vld [vmem:[%s4244_s16 + $0x408] sm:$0xff] }
  0x5d   : > { %v616_v54 = vld [vmem:[%s4244_s16 + $0x8a0] sm:$0xff]  ;;  %2311 = vmatmul.mubr.bf16.vlgmr.msra.gmra.mrb[0].mxu0 %v4335_v17  ;;  %v473_v13 = vld [vmem:[%s4244_s16 + $0x428] sm:$0xff]  ;;  %v3669_v18 = vcombine.low %v397_v6, %v401_v7 }
  0x5e   : > { %2352 = vmatmul.mubr.bf16.vlgmr.msra.gmra.mrb[0].mxu1 %v4341_v20  ;;  %2361 = vmatpush1.bf16.msra.mxu0 %v3867_v21  ;;  %v3884_v29 = vcombine.high %v612_v25, %v616_v54  ;;  %v620_v31 = vld [vmem:[%s4244_s16 + $0x8c0] sm:$0xff]  ;;  %v3883_v36 = vcombine.low %v612_v25, %v616_v54  ;;  %v405_v14 = vld [vmem:[%s4244_s16 + $0x208] sm:$0xff]  ;;  %v3742_v19 = vcombine.high %v469_v12, %v473_v13 }
  0x5f   : > { %2402 = vmatpush1.bf16.msra.mxu1 %v3613_v22  ;;  %2362 = vmatprep.subr.bf16.mxu0 %v3876_v23  ;;  %v624_v32 = vld [vmem:[%s4244_s16 + $0x8e0] sm:$0xff]  ;;  %v409_v15 = vld [vmem:[%s4244_s16 + $0x228] sm:$0xff]  ;;  %v3741_v26 = vcombine.low %v469_v12, %v473_v13 }
  0x60   : > { %2403 = vmatprep.subr.bf16.mxu1 %v3622_v24  ;;  %2392 = vmatprep.mubr.bf16.mxu0 %v4178_v33  ;;  %v3892_v38 = vcombine.high %v620_v31, %v624_v32  ;;  %v628_v40 = vld [vmem:[%s4244_s16 + $0x900] sm:$0xff]  ;;  %v3891_v44 = vcombine.low %v620_v31, %v624_v32  ;;  %v3678_v21 = vcombine.high %v405_v14, %v409_v15  ;;  %v477_v22 = vld [vmem:[%s4244_s16 + $0x448] sm:$0xff]  ;;  %v4378_v24 = vld [vmem:[%s4239_s12 + $0x10] ss:$0 sps:$4 sm:$0xff]  }
  0x61   : > { %2433 = vmatprep.mubr.bf16.mxu1 %v4285_v59  ;;  %v632_v41 = vld [vmem:[%s4244_s16 + $0x920] sm:$0xff]  ;;  %v481_v23 = vld [vmem:[%s4244_s16 + $0x468] sm:$0xff]  ;;  %v3677_v27 = vcombine.low %v405_v14, %v409_v15 }
  0x62   : > { %2363 = vmatpush1.bf16.msra.mxu0 %v3875_v55  ;;  %v3900_v46 = vcombine.high %v628_v40, %v632_v41  ;;  %v636_v48 = vld [vmem:[%s4244_s16 + $0x940] sm:$0xff]  ;;  %v3899_v52 = vcombine.low %v628_v40, %v632_v41  ;;  %v413_v25 = vld [vmem:[%s4244_s16 + $0x248] sm:$0xff]  ;;  %v3750_v55 = vcombine.high %v477_v22, %v481_v23  ;;  %v3749_v34 = vcombine.low %v477_v22, %v481_v23 }
  0x63   : > { %2404 = vmatpush1.bf16.msra.mxu1 %v3621_v28  ;;  %2364 = vmatprep.subr.bf16.mxu0 %v3884_v29  ;;  %v640_v49 = vld [vmem:[%s4244_s16 + $0x960] sm:$0xff]  ;;  %v417_v54 = vld [vmem:[%s4244_s16 + $0x268] sm:$0xff] }
  0x64   : > { %2405 = vmatprep.subr.bf16.mxu1 %v3630_v30  ;;  %v3908_v56 = vcombine.high %v636_v48, %v640_v49  ;;  %v644_v58 = vld [vmem:[%s4244_s16 + $0x980] sm:$0xff]  ;;  %v3907_v0 = vcombine.low %v636_v48, %v640_v49  ;;  %v3686_v28 = vcombine.high %v413_v25, %v417_v54  ;;  %v485_v29 = vld [vmem:[%s4244_s16 + $0x488] sm:$0xff]  ;;  %v3685_v35 = vcombine.low %v413_v25, %v417_v54 }
  0x65   : > { %v648_v61 = vld [vmem:[%s4244_s16 + $0x9a0] sm:$0xff]  ;;  %v489_v30 = vld [vmem:[%s4244_s16 + $0x4a8] sm:$0xff] }
  0x66   : > { %2365 = vmatpush1.bf16.msra.mxu0 %v3883_v36  ;;  %v3916_v2 = vcombine.high %v644_v58, %v648_v61  ;;  %v652_v4 = vld [vmem:[%s4244_s16 + $0x9c0] sm:$0xff]  ;;  %v3915_v8 = vcombine.low %v644_v58, %v648_v61  ;;  %v421_v31 = vld [vmem:[%s4244_s16 + $0x288] sm:$0xff]  ;;  %v3758_v36 = vcombine.high %v485_v29, %v489_v30  ;;  %v3757_v42 = vcombine.low %v485_v29, %v489_v30 }
  0x67   : > { %2406 = vmatpush1.bf16.msra.mxu1 %v3629_v37  ;;  %2366 = vmatprep.subr.bf16.mxu0 %v3892_v38  ;;  %v656_v5 = vld [vmem:[%s4244_s16 + $0x9e0] sm:$0xff]  ;;  %v425_v32 = vld [vmem:[%s4244_s16 + $0x2a8] sm:$0xff] }
  0x68   : > { %2407 = vmatprep.subr.bf16.mxu1 %v3638_v39  ;;  %v3924_v10 = vcombine.high %v652_v4, %v656_v5  ;;  %v3923_v16 = vcombine.low %v652_v4, %v656_v5  ;;  %v3694_v37 = vcombine.high %v421_v31, %v425_v32  ;;  %v493_v38 = vld [vmem:[%s4244_s16 + $0x4c8] sm:$0xff]  ;;  %v3693_v43 = vcombine.low %v421_v31, %v425_v32 }
  0x69   : > { %v497_v39 = vld [vmem:[%s4244_s16 + $0x4e8] sm:$0xff] }
  0x6a   : > { %2367 = vmatpush1.bf16.msra.mxu0 %v3891_v44  ;;  %v429_v40 = vld [vmem:[%s4244_s16 + $0x2c8] sm:$0xff]  ;;  %v3766_v44 = vcombine.high %v493_v38, %v497_v39  ;;  %v3765_v50 = vcombine.low %v493_v38, %v497_v39 }
  0x6b   : > { %2408 = vmatpush1.bf16.msra.mxu1 %v3637_v45  ;;  %2368 = vmatprep.subr.bf16.mxu0 %v3900_v46  ;;  %v433_v41 = vld [vmem:[%s4244_s16 + $0x2e8] sm:$0xff] }
  0x6c   : > { %2409 = vmatprep.subr.bf16.mxu1 %v3646_v47  ;;  %v3702_v45 = vcombine.high %v429_v40, %v433_v41  ;;  %v501_v46 = vld [vmem:[%s4244_s16 + $0x508] sm:$0xff]  ;;  %v3701_v51 = vcombine.low %v429_v40, %v433_v41 }
  0x6d   : > { %v505_v47 = vld [vmem:[%s4244_s16 + $0x528] sm:$0xff] }
  0x6e   : > { %2369 = vmatpush1.bf16.msra.mxu0 %v3899_v52  ;;  %v437_v48 = vld [vmem:[%s4244_s16 + $0x308] sm:$0xff]  ;;  %v3774_v52 = vcombine.high %v501_v46, %v505_v47  ;;  %v3773_v62 = vcombine.low %v501_v46, %v505_v47 }
  0x6f   : > { %2410 = vmatpush1.bf16.msra.mxu1 %v3645_v53  ;;  %2370 = vmatprep.subr.bf16.mxu0 %v3908_v56  ;;  %v441_v49 = vld [vmem:[%s4244_s16 + $0x328] sm:$0xff] }
  0x70   : > { %2411 = vmatprep.subr.bf16.mxu1 %v3654_v57  ;;  %v3710_v53 = vcombine.high %v437_v48, %v441_v49  ;;  %v509_v56 = vld [vmem:[%s4244_s16 + $0x548] sm:$0xff]  ;;  %v3709_v63 = vcombine.low %v437_v48, %v441_v49 }
  0x71   : > { %v513_v57 = vld [vmem:[%s4244_s16 + $0x568] sm:$0xff] }
  0x72   : > { %2371 = vmatpush1.bf16.msra.mxu0 %v3907_v0  ;;  %v445_v58 = vld [vmem:[%s4244_s16 + $0x348] sm:$0xff]  ;;  %v3782_v0 = vcombine.high %v509_v56, %v513_v57  ;;  %v3781_v6 = vcombine.low %v509_v56, %v513_v57 }
  0x73   : > { %2412 = vmatpush1.bf16.msra.mxu1 %v3653_v1  ;;  %2372 = vmatprep.subr.bf16.mxu0 %v3916_v2  ;;  %v449_v61 = vld [vmem:[%s4244_s16 + $0x368] sm:$0xff] }
  0x74   : > { %2413 = vmatprep.subr.bf16.mxu1 %v3662_v3  ;;  %v3718_v1 = vcombine.high %v445_v58, %v449_v61  ;;  %v517_v2 = vld [vmem:[%s4244_s16 + $0x588] sm:$0xff]  ;;  %v3717_v7 = vcombine.low %v445_v58, %v449_v61 }
  0x75   : > { %v521_v3 = vld [vmem:[%s4244_s16 + $0x5a8] sm:$0xff] }
  0x76   : > { %2373 = vmatpush1.bf16.msra.mxu0 %v3915_v8  ;;  %v453_v4 = vld [vmem:[%s4244_s16 + $0x388] sm:$0xff]  ;;  %v3790_v8 = vcombine.high %v517_v2, %v521_v3  ;;  %v3789_v14 = vcombine.low %v517_v2, %v521_v3 }
  0x77   : > { %2414 = vmatpush1.bf16.msra.mxu1 %v3661_v9  ;;  %2374 = vmatprep.subr.bf16.mxu0 %v3924_v10  ;;  %v457_v5 = vld [vmem:[%s4244_s16 + $0x3a8] sm:$0xff] }
  0x78   : > { %2415 = vmatprep.subr.bf16.mxu1 %v3670_v11  ;;  %v3726_v9 = vcombine.high %v453_v4, %v457_v5  ;;  %v525_v10 = vld [vmem:[%s4244_s16 + $0x5c8] sm:$0xff]  ;;  %v3725_v15 = vcombine.low %v453_v4, %v457_v5 }
  0x79   : > { %v529_v11 = vld [vmem:[%s4244_s16 + $0x5e8] sm:$0xff] }
  0x7a   : > { %2375 = vmatpush1.bf16.msra.mxu0 %v3923_v16  ;;  %v461_v12 = vld [vmem:[%s4244_s16 + $0x3c8] sm:$0xff]  ;;  %v3798_v16 = vcombine.high %v525_v10, %v529_v11  ;;  %v3797_v25 = vcombine.low %v525_v10, %v529_v11 }
  0x7b   : > { %2416 = vmatpush1.bf16.msra.mxu1 %v3669_v18  ;;  %2442 = vmatprep.subr.bf16.mxu0 %v3742_v19  ;;  %v465_v13 = vld [vmem:[%s4244_s16 + $0x3e8] sm:$0xff] }
  0x7c   : > { %2417 = vmatprep.subr.bf16.mxu1 %v3678_v21  ;;  %v3734_v18 = vcombine.high %v461_v12, %v465_v13  ;;  %v533_v19 = vld [vmem:[%s4244_s16 + $0x608] sm:$0xff]  ;;  %v3733_v54 = vcombine.low %v461_v12, %v465_v13 }
  0x7d   : > { %2393 = vmatmul.mubr.bf16.vlgmr.msra.gmra.mrb[4].mxu0 %v4378_v24  ;;  %v537_v21 = vld [vmem:[%s4244_s16 + $0x628] sm:$0xff] }
  0x7e   : > { %2443 = vmatpush1.bf16.msra.mxu0 %v3741_v26  ;;  %2474 = vmatprep.mubr.bf16.mxu0 %v4289_v60  ;;  %v597_v22 = vld [vmem:[%s4244_s16 + $0x808] sm:$0xff]  ;;  %v3806_v26 = vcombine.high %v533_v19, %v537_v21  ;;  %v3805_v31 = vcombine.low %v533_v19, %v537_v21 }
  0x7f   : > { %2418 = vmatpush1.bf16.msra.mxu1 %v3677_v27  ;;  %2444 = vmatprep.subr.bf16.mxu0 %v3750_v55  ;;  %v601_v23 = vld [vmem:[%s4244_s16 + $0x828] sm:$0xff] }
  0x80   : > { %2419 = vmatprep.subr.bf16.mxu1 %v3686_v28  ;;  %v3870_v27 = vcombine.high %v597_v22, %v601_v23  ;;  %v541_v55 = vld [vmem:[%s4244_s16 + $0x648] sm:$0xff]  ;;  %v3869_v32 = vcombine.low %v597_v22, %v601_v23 }
  0x81   : > { %v545_v28 = vld [vmem:[%s4244_s16 + $0x668] sm:$0xff] }
  0x82   : > { %2445 = vmatpush1.bf16.msra.mxu0 %v3749_v34  ;;  %v605_v29 = vld [vmem:[%s4244_s16 + $0x848] sm:$0xff]  ;;  %v3814_v34 = vcombine.high %v541_v55, %v545_v28  ;;  %v3813_v40 = vcombine.low %v541_v55, %v545_v28  ;;  %v470_v55 = vld [vmem:[%s4244_s16 + $0x410] sm:$0xff] }
  0x83   : > { %2420 = vmatpush1.bf16.msra.mxu1 %v3685_v35  ;;  %2446 = vmatprep.subr.bf16.mxu0 %v3758_v36  ;;  %v609_v30 = vld [vmem:[%s4244_s16 + $0x868] sm:$0xff]  ;;  %v474_v28 = vld [vmem:[%s4244_s16 + $0x430] sm:$0xff] }
  0x84   : > { %2421 = vmatprep.subr.bf16.mxu1 %v3694_v37  ;;  %v3878_v35 = vcombine.high %v605_v29, %v609_v30  ;;  %v549_v36 = vld [vmem:[%s4244_s16 + $0x688] sm:$0xff]  ;;  %v3877_v41 = vcombine.low %v605_v29, %v609_v30 }
  0x85   : > { %v553_v37 = vld [vmem:[%s4244_s16 + $0x6a8] sm:$0xff] }
  0x86   : > { %2447 = vmatpush1.bf16.msra.mxu0 %v3757_v42  ;;  %v613_v38 = vld [vmem:[%s4244_s16 + $0x888] sm:$0xff]  ;;  %v3822_v42 = vcombine.high %v549_v36, %v553_v37  ;;  %v3821_v48 = vcombine.low %v549_v36, %v553_v37  ;;  %v478_v36 = vld [vmem:[%s4244_s16 + $0x450] sm:$0xff] }
  0x87   : > { %2422 = vmatpush1.bf16.msra.mxu1 %v3693_v43  ;;  %2448 = vmatprep.subr.bf16.mxu0 %v3766_v44  ;;  %v617_v39 = vld [vmem:[%s4244_s16 + $0x8a8] sm:$0xff]  ;;  %v482_v37 = vld [vmem:[%s4244_s16 + $0x470] sm:$0xff] }
  0x88   : > { %2423 = vmatprep.subr.bf16.mxu1 %v3702_v45  ;;  %v3886_v43 = vcombine.high %v613_v38, %v617_v39  ;;  %v557_v44 = vld [vmem:[%s4244_s16 + $0x6c8] sm:$0xff]  ;;  %v3885_v49 = vcombine.low %v613_v38, %v617_v39  ;;  %v3743_v39 = vcombine.low %v470_v55, %v474_v28 }
  0x89   : > { %v561_v45 = vld [vmem:[%s4244_s16 + $0x6e8] sm:$0xff] }
  0x8a   : > { %2449 = vmatpush1.bf16.msra.mxu0 %v3765_v50  ;;  %v621_v46 = vld [vmem:[%s4244_s16 + $0x8c8] sm:$0xff]  ;;  %v3830_v50 = vcombine.high %v557_v44, %v561_v45  ;;  %v3829_v58 = vcombine.low %v557_v44, %v561_v45  ;;  %v486_v44 = vld [vmem:[%s4244_s16 + $0x490] sm:$0xff] }
  0x8b   : > { %2424 = vmatpush1.bf16.msra.mxu1 %v3701_v51  ;;  %2450 = vmatprep.subr.bf16.mxu0 %v3774_v52  ;;  %v625_v47 = vld [vmem:[%s4244_s16 + $0x8e8] sm:$0xff]  ;;  %v490_v45 = vld [vmem:[%s4244_s16 + $0x4b0] sm:$0xff] }
  0x8c   : > { %2425 = vmatprep.subr.bf16.mxu1 %v3710_v53  ;;  %v3894_v51 = vcombine.high %v621_v46, %v625_v47  ;;  %v565_v52 = vld [vmem:[%s4244_s16 + $0x708] sm:$0xff]  ;;  %v3893_v61 = vcombine.low %v621_v46, %v625_v47  ;;  %v3751_v47 = vcombine.low %v478_v36, %v482_v37 }
  0x8d   : > { %v569_v53 = vld [vmem:[%s4244_s16 + $0x728] sm:$0xff] }
  0x8e   : > { %2451 = vmatpush1.bf16.msra.mxu0 %v3773_v62  ;;  %v629_v56 = vld [vmem:[%s4244_s16 + $0x908] sm:$0xff]  ;;  %v3838_v62 = vcombine.high %v565_v52, %v569_v53  ;;  %v3837_v4 = vcombine.low %v565_v52, %v569_v53  ;;  %v494_v52 = vld [vmem:[%s4244_s16 + $0x4d0] sm:$0xff] }
  0x8f   : > { %2426 = vmatpush1.bf16.msra.mxu1 %v3709_v63  ;;  %2452 = vmatprep.subr.bf16.mxu0 %v3782_v0  ;;  %v633_v57 = vld [vmem:[%s4244_s16 + $0x928] sm:$0xff]  ;;  %v498_v53 = vld [vmem:[%s4244_s16 + $0x4f0] sm:$0xff] }
  0x90   : > { %2427 = vmatprep.subr.bf16.mxu1 %v3718_v1  ;;  %v3902_v63 = vcombine.high %v629_v56, %v633_v57  ;;  %v573_v0 = vld [vmem:[%s4244_s16 + $0x748] sm:$0xff]  ;;  %v3901_v5 = vcombine.low %v629_v56, %v633_v57  ;;  %v3759_v57 = vcombine.low %v486_v44, %v490_v45 }
  0x91   : > { %v577_v1 = vld [vmem:[%s4244_s16 + $0x768] sm:$0xff] }
  0x92   : > { %2453 = vmatpush1.bf16.msra.mxu0 %v3781_v6  ;;  %v637_v2 = vld [vmem:[%s4244_s16 + $0x948] sm:$0xff]  ;;  %v3846_v6 = vcombine.high %v573_v0, %v577_v1  ;;  %v3845_v12 = vcombine.low %v573_v0, %v577_v1  ;;  %v502_v0 = vld [vmem:[%s4244_s16 + $0x510] sm:$0xff] }
  0x93   : > { %2428 = vmatpush1.bf16.msra.mxu1 %v3717_v7  ;;  %2454 = vmatprep.subr.bf16.mxu0 %v3790_v8  ;;  %v641_v3 = vld [vmem:[%s4244_s16 + $0x968] sm:$0xff]  ;;  %v506_v1 = vld [vmem:[%s4244_s16 + $0x530] sm:$0xff] }
  0x94   : > { %2429 = vmatprep.subr.bf16.mxu1 %v3726_v9  ;;  %v3910_v7 = vcombine.high %v637_v2, %v641_v3  ;;  %v581_v8 = vld [vmem:[%s4244_s16 + $0x788] sm:$0xff]  ;;  %v3909_v13 = vcombine.low %v637_v2, %v641_v3  ;;  %v3767_v3 = vcombine.low %v494_v52, %v498_v53 }
  0x95   : > { %v585_v9 = vld [vmem:[%s4244_s16 + $0x7a8] sm:$0xff] }
  0x96   : > { %2455 = vmatpush1.bf16.msra.mxu0 %v3789_v14  ;;  %v645_v10 = vld [vmem:[%s4244_s16 + $0x988] sm:$0xff]  ;;  %v3854_v14 = vcombine.high %v581_v8, %v585_v9  ;;  %v3853_v22 = vcombine.low %v581_v8, %v585_v9  ;;  %v510_v8 = vld [vmem:[%s4244_s16 + $0x550] sm:$0xff] }
  0x97   : > { %2430 = vmatpush1.bf16.msra.mxu1 %v3725_v15  ;;  %2456 = vmatprep.subr.bf16.mxu0 %v3798_v16  ;;  %v649_v11 = vld [vmem:[%s4244_s16 + $0x9a8] sm:$0xff]  ;;  %v514_v9 = vld [vmem:[%s4244_s16 + $0x570] sm:$0xff] }
  0x98   : > { %2431 = vmatprep.subr.bf16.mxu1 %v3734_v18  ;;  %v3918_v15 = vcombine.high %v645_v10, %v649_v11  ;;  %v589_v16 = vld [vmem:[%s4244_s16 + $0x7c8] sm:$0xff]  ;;  %v3917_v23 = vcombine.low %v645_v10, %v649_v11  ;;  %v3775_v11 = vcombine.low %v502_v0, %v506_v1 }
  0x99   : > { %v593_v18 = vld [vmem:[%s4244_s16 + $0x7e8] sm:$0xff] }
  0x9a   : > { %2457 = vmatpush1.bf16.msra.mxu0 %v3797_v25  ;;  %v653_v19 = vld [vmem:[%s4244_s16 + $0x9c8] sm:$0xff]  ;;  %v3862_v25 = vcombine.high %v589_v16, %v593_v18  ;;  %v3861_v29 = vcombine.low %v589_v16, %v593_v18  ;;  %v518_v16 = vld [vmem:[%s4244_s16 + $0x590] sm:$0xff] }
  0x9b   : > { %2432 = vmatpush1.bf16.msra.mxu1 %v3733_v54  ;;  %2458 = vmatprep.subr.bf16.mxu0 %v3806_v26  ;;  %v657_v21 = vld [vmem:[%s4244_s16 + $0x9e8] sm:$0xff]  ;;  %v342_v26 = vld [vmem:[%s4244_s16 + $0x10] sm:$0xff] }
  0x9c   : > { %2483 = vmatprep.subr.bf16.mxu1 %v3870_v27  ;;  %v3926_v54 = vcombine.high %v653_v19, %v657_v21  ;;  %v346_v27 = vld [vmem:[%s4244_s16 + $0x30] sm:$0xff]  ;;  %v3925_v30 = vcombine.low %v653_v19, %v657_v21  ;;  %v3783_v21 = vcombine.low %v510_v8, %v514_v9 }
  0x9d   : > { %v3615_v38 = vcombine.low %v342_v26, %v346_v27  ;;  %v522_v18 = vld [vmem:[%s4244_s16 + $0x5b0] sm:$0xff] }
  0x9e   : > { %2434 = vmatmul.mubr.bf16.vlgmr.msra.gmra.mrb[4].mxu1 %v4335_v17  ;;  %2459 = vmatpush1.bf16.msra.mxu0 %v3805_v31  ;;  %v3616_v31 = vcombine.high %v342_v26, %v346_v27  ;;  %v526_v26 = vld [vmem:[%s4244_s16 + $0x5d0] sm:$0xff] }
  0x9f   : > { %2484 = vmatpush1.bf16.msra.mxu1 %v3869_v32  ;;  %2460 = vmatprep.subr.bf16.mxu0 %v3814_v34  ;;  %v3744_v32 = vcombine.high %v470_v55, %v474_v28  ;;  %v350_v34 = vld [vmem:[%s4244_s16 + $0x50] sm:$0xff]  ;;  %v3791_v28 = vcombine.low %v518_v16, %v522_v18 }
  0xa0   : > { %2485 = vmatprep.subr.bf16.mxu1 %v3878_v35  ;;  %2515 = vmatprep.mubr.bf16.mxu1 %v4178_v33  ;;  %v354_v35 = vld [vmem:[%s4244_s16 + $0x70] sm:$0xff] }
  0xa1   : > { %v3623_v46 = vcombine.low %v350_v34, %v354_v35  ;;  %v530_v27 = vld [vmem:[%s4244_s16 + $0x5f0] sm:$0xff] }
  0xa2   : > { %2461 = vmatpush1.bf16.msra.mxu0 %v3813_v40  ;;  %v3624_v40 = vcombine.high %v350_v34, %v354_v35  ;;  %v534_v34 = vld [vmem:[%s4244_s16 + $0x610] sm:$0xff] }
  0xa3   : > { %2486 = vmatpush1.bf16.msra.mxu1 %v3877_v41  ;;  %2462 = vmatprep.subr.bf16.mxu0 %v3822_v42  ;;  %v3752_v41 = vcombine.high %v478_v36, %v482_v37  ;;  %v358_v42 = vld [vmem:[%s4244_s16 + $0x90] sm:$0xff]  ;;  %v3799_v37 = vcombine.low %v526_v26, %v530_v27 }
  0xa4   : > { %2487 = vmatprep.subr.bf16.mxu1 %v3886_v43  ;;  %v362_v43 = vld [vmem:[%s4244_s16 + $0xb0] sm:$0xff] }
  0xa5   : > { %v3631_v56 = vcombine.low %v358_v42, %v362_v43  ;;  %v538_v35 = vld [vmem:[%s4244_s16 + $0x630] sm:$0xff] }
  0xa6   : > { %2463 = vmatpush1.bf16.msra.mxu0 %v3821_v48  ;;  %v3632_v48 = vcombine.high %v358_v42, %v362_v43  ;;  %v542_v42 = vld [vmem:[%s4244_s16 + $0x650] sm:$0xff] }
  0xa7   : > { %2488 = vmatpush1.bf16.msra.mxu1 %v3885_v49  ;;  %2464 = vmatprep.subr.bf16.mxu0 %v3830_v50  ;;  %v3760_v49 = vcombine.high %v486_v44, %v490_v45  ;;  %v366_v50 = vld [vmem:[%s4244_s16 + $0xd0] sm:$0xff]  ;;  %v3807_v45 = vcombine.low %v534_v34, %v538_v35 }
  0xa8   : > { %2489 = vmatprep.subr.bf16.mxu1 %v3894_v51  ;;  %v370_v51 = vld [vmem:[%s4244_s16 + $0xf0] sm:$0xff] }
  0xa9   : > { %v3639_v2 = vcombine.low %v366_v50, %v370_v51  ;;  %v546_v43 = vld [vmem:[%s4244_s16 + $0x670] sm:$0xff] }
  0xaa   : > { %2465 = vmatpush1.bf16.msra.mxu0 %v3829_v58  ;;  %v3640_v58 = vcombine.high %v366_v50, %v370_v51  ;;  %v550_v50 = vld [vmem:[%s4244_s16 + $0x690] sm:$0xff] }
  0xab   : > { %2490 = vmatpush1.bf16.msra.mxu1 %v3893_v61  ;;  %2466 = vmatprep.subr.bf16.mxu0 %v3838_v62  ;;  %v3768_v61 = vcombine.high %v494_v52, %v498_v53  ;;  %v374_v62 = vld [vmem:[%s4244_s16 + $0x110] sm:$0xff]  ;;  %v3815_v53 = vcombine.low %v542_v42, %v546_v43 }
  0xac   : > { %2491 = vmatprep.subr.bf16.mxu1 %v3902_v63  ;;  %v378_v63 = vld [vmem:[%s4244_s16 + $0x130] sm:$0xff] }
  0xad   : > { %v3647_v10 = vcombine.low %v374_v62, %v378_v63  ;;  %v554_v51 = vld [vmem:[%s4244_s16 + $0x6b0] sm:$0xff] }
  0xae   : > { %2467 = vmatpush1.bf16.msra.mxu0 %v3837_v4  ;;  %v3648_v4 = vcombine.high %v374_v62, %v378_v63  ;;  %v558_v62 = vld [vmem:[%s4244_s16 + $0x6d0] sm:$0xff] }
  0xaf   : > { %2492 = vmatpush1.bf16.msra.mxu1 %v3901_v5  ;;  %2468 = vmatprep.subr.bf16.mxu0 %v3846_v6  ;;  %v3776_v5 = vcombine.high %v502_v0, %v506_v1  ;;  %v382_v6 = vld [vmem:[%s4244_s16 + $0x150] sm:$0xff]  ;;  %v3823_v1 = vcombine.low %v550_v50, %v554_v51 }
  0xb0   : > { %2493 = vmatprep.subr.bf16.mxu1 %v3910_v7  ;;  %v386_v7 = vld [vmem:[%s4244_s16 + $0x170] sm:$0xff] }
  0xb1   : > { %v3655_v19 = vcombine.low %v382_v6, %v386_v7  ;;  %v562_v63 = vld [vmem:[%s4244_s16 + $0x6f0] sm:$0xff] }
  0xb2   : > { %2469 = vmatpush1.bf16.msra.mxu0 %v3845_v12  ;;  %v3656_v12 = vcombine.high %v382_v6, %v386_v7  ;;  %v566_v6 = vld [vmem:[%s4244_s16 + $0x710] sm:$0xff] }
  0xb3   : > { %2494 = vmatpush1.bf16.msra.mxu1 %v3909_v13  ;;  %2470 = vmatprep.subr.bf16.mxu0 %v3854_v14  ;;  %v3784_v13 = vcombine.high %v510_v8, %v514_v9  ;;  %v390_v14 = vld [vmem:[%s4244_s16 + $0x190] sm:$0xff]  ;;  %v3831_v9 = vcombine.low %v558_v62, %v562_v63 }
  0xb4   : > { %2495 = vmatprep.subr.bf16.mxu1 %v3918_v15  ;;  %v394_v15 = vld [vmem:[%s4244_s16 + $0x1b0] sm:$0xff] }
  0xb5   : > { %v3663_v55 = vcombine.low %v390_v14, %v394_v15  ;;  %v570_v7 = vld [vmem:[%s4244_s16 + $0x730] sm:$0xff] }
  0xb6   : > { %2471 = vmatpush1.bf16.msra.mxu0 %v3853_v22  ;;  %v3664_v22 = vcombine.high %v390_v14, %v394_v15  ;;  %v574_v14 = vld [vmem:[%s4244_s16 + $0x750] sm:$0xff] }
  0xb7   : > { %2496 = vmatpush1.bf16.msra.mxu1 %v3917_v23  ;;  %2472 = vmatprep.subr.bf16.mxu0 %v3862_v25  ;;  %v3792_v23 = vcombine.high %v518_v16, %v522_v18  ;;  %v398_v25 = vld [vmem:[%s4244_s16 + $0x1d0] sm:$0xff]  ;;  %v3839_v18 = vcombine.low %v566_v6, %v570_v7 }
  0xb8   : > { %2497 = vmatprep.subr.bf16.mxu1 %v3926_v54  ;;  %v402_v54 = vld [vmem:[%s4244_s16 + $0x1f0] sm:$0xff] }
  0xb9   : > { %v3671_v36 = vcombine.low %v398_v25, %v402_v54  ;;  %v578_v15 = vld [vmem:[%s4244_s16 + $0x770] sm:$0xff] }
  0xba   : > { %2473 = vmatpush1.bf16.msra.mxu0 %v3861_v29  ;;  %v3672_v29 = vcombine.high %v398_v25, %v402_v54  ;;  %v582_v25 = vld [vmem:[%s4244_s16 + $0x790] sm:$0xff] }
  0xbb   : > { %2498 = vmatpush1.bf16.msra.mxu1 %v3925_v30  ;;  %2524 = vmatprep.subr.bf16.mxu0 %v3616_v31  ;;  %v3800_v30 = vcombine.high %v526_v26, %v530_v27  ;;  %v406_v31 = vld [vmem:[%s4244_s16 + $0x210] sm:$0xff]  ;;  %v3847_v27 = vcombine.low %v574_v14, %v578_v15 }
  0xbc   : > { %2565 = vmatprep.subr.bf16.mxu1 %v3744_v32  ;;  %v410_v32 = vld [vmem:[%s4244_s16 + $0x230] sm:$0xff] }
  0xbd   : > { %2475 = vmatmul.mubr.bf16.vlgmr.msra.gmra.mrb[8].mxu0 %v4341_v20  ;;  %v3679_v44 = vcombine.low %v406_v31, %v410_v32  ;;  %v586_v54 = vld [vmem:[%s4244_s16 + $0x7b0] sm:$0xff] }
  0xbe   : > { %2516 = vmatmul.mubr.bf16.vlgmr.msra.gmra.mrb[8].mxu1 %v4378_v24  ;;  %2525 = vmatpush1.bf16.msra.mxu0 %v3615_v38  ;;  %v3680_v38 = vcombine.high %v406_v31, %v410_v32  ;;  %v590_v31 = vld [vmem:[%s4244_s16 + $0x7d0] sm:$0xff] }
  0xbf   : > { %2566 = vmatpush1.bf16.msra.mxu1 %v3743_v39  ;;  %2526 = vmatprep.subr.bf16.mxu0 %v3624_v40  ;;  %v3808_v39 = vcombine.high %v534_v34, %v538_v35  ;;  %v414_v40 = vld [vmem:[%s4244_s16 + $0x250] sm:$0xff]  ;;  %v3855_v35 = vcombine.low %v582_v25, %v586_v54 }
  0xc0   : > { %2567 = vmatprep.subr.bf16.mxu1 %v3752_v41  ;;  %2556 = vmatprep.mubr.bf16.mxu0 %v4285_v59  ;;  %v418_v41 = vld [vmem:[%s4244_s16 + $0x270] sm:$0xff] }
  0xc1   : > { %2597 = vmatprep.mubr.bf16.mxu1 %v4289_v60  ;;  %v3687_v52 = vcombine.low %v414_v40, %v418_v41  ;;  %v594_v32 = vld [vmem:[%s4244_s16 + $0x7f0] sm:$0xff] }
  0xc2   : > { %2527 = vmatpush1.bf16.msra.mxu0 %v3623_v46  ;;  %v3688_v46 = vcombine.high %v414_v40, %v418_v41  ;;  %v343_v40 = vld [vmem:[%s4244_s16 + $0x18] sm:$0xff] }
  0xc3   : > { %2568 = vmatpush1.bf16.msra.mxu1 %v3751_v47  ;;  %2528 = vmatprep.subr.bf16.mxu0 %v3632_v48  ;;  %v3816_v47 = vcombine.high %v542_v42, %v546_v43  ;;  %v422_v48 = vld [vmem:[%s4244_s16 + $0x290] sm:$0xff]  ;;  %v347_v41 = vld [vmem:[%s4244_s16 + $0x38] sm:$0xff]  ;;  %v3863_v43 = vcombine.low %v590_v31, %v594_v32 }
  0xc4   : > { %2569 = vmatprep.subr.bf16.mxu1 %v3760_v49  ;;  %v426_v49 = vld [vmem:[%s4244_s16 + $0x2b0] sm:$0xff] }
  0xc5   : > { %v3695_v0 = vcombine.low %v422_v48, %v426_v49 }
  0xc6   : > { %2529 = vmatpush1.bf16.msra.mxu0 %v3631_v56  ;;  %v3696_v56 = vcombine.high %v422_v48, %v426_v49  ;;  %v351_v48 = vld [vmem:[%s4244_s16 + $0x58] sm:$0xff] }
  0xc7   : > { %2570 = vmatpush1.bf16.msra.mxu1 %v3759_v57  ;;  %2530 = vmatprep.subr.bf16.mxu0 %v3640_v58  ;;  %v3824_v57 = vcombine.high %v550_v50, %v554_v51  ;;  %v430_v58 = vld [vmem:[%s4244_s16 + $0x2d0] sm:$0xff]  ;;  %v355_v49 = vld [vmem:[%s4244_s16 + $0x78] sm:$0xff]  ;;  %v3617_v51 = vcombine.low %v343_v40, %v347_v41 }
  0xc8   : > { %2571 = vmatprep.subr.bf16.mxu1 %v3768_v61  ;;  %v434_v61 = vld [vmem:[%s4244_s16 + $0x2f0] sm:$0xff] }
  0xc9   : > { %v3703_v8 = vcombine.low %v430_v58, %v434_v61 }
  0xca   : > { %2531 = vmatpush1.bf16.msra.mxu0 %v3639_v2  ;;  %v3704_v2 = vcombine.high %v430_v58, %v434_v61  ;;  %v359_v58 = vld [vmem:[%s4244_s16 + $0x98] sm:$0xff] }
  0xcb   : > { %2572 = vmatpush1.bf16.msra.mxu1 %v3767_v3  ;;  %2532 = vmatprep.subr.bf16.mxu0 %v3648_v4  ;;  %v3832_v3 = vcombine.high %v558_v62, %v562_v63  ;;  %v438_v4 = vld [vmem:[%s4244_s16 + $0x310] sm:$0xff]  ;;  %v363_v61 = vld [vmem:[%s4244_s16 + $0xb8] sm:$0xff]  ;;  %v3625_v63 = vcombine.low %v351_v48, %v355_v49 }
  0xcc   : > { %2573 = vmatprep.subr.bf16.mxu1 %v3776_v5  ;;  %v442_v5 = vld [vmem:[%s4244_s16 + $0x330] sm:$0xff] }
  0xcd   : > { %v3711_v16 = vcombine.low %v438_v4, %v442_v5 }
  0xce   : > { %2533 = vmatpush1.bf16.msra.mxu0 %v3647_v10  ;;  %v3712_v10 = vcombine.high %v438_v4, %v442_v5  ;;  %v367_v4 = vld [vmem:[%s4244_s16 + $0xd8] sm:$0xff] }
  0xcf   : > { %2574 = vmatpush1.bf16.msra.mxu1 %v3775_v11  ;;  %2534 = vmatprep.subr.bf16.mxu0 %v3656_v12  ;;  %v3840_v11 = vcombine.high %v566_v6, %v570_v7  ;;  %v446_v12 = vld [vmem:[%s4244_s16 + $0x350] sm:$0xff]  ;;  %v371_v5 = vld [vmem:[%s4244_s16 + $0xf8] sm:$0xff]  ;;  %v3633_v7 = vcombine.low %v359_v58, %v363_v61 }
  0xd0   : > { %2575 = vmatprep.subr.bf16.mxu1 %v3784_v13  ;;  %v450_v13 = vld [vmem:[%s4244_s16 + $0x370] sm:$0xff] }
  0xd1   : > { %v3719_v26 = vcombine.low %v446_v12, %v450_v13 }
  0xd2   : > { %2535 = vmatpush1.bf16.msra.mxu0 %v3655_v19  ;;  %v3720_v19 = vcombine.high %v446_v12, %v450_v13  ;;  %v375_v12 = vld [vmem:[%s4244_s16 + $0x118] sm:$0xff] }
  0xd3   : > { %2576 = vmatpush1.bf16.msra.mxu1 %v3783_v21  ;;  %2536 = vmatprep.subr.bf16.mxu0 %v3664_v22  ;;  %v3848_v21 = vcombine.high %v574_v14, %v578_v15  ;;  %v454_v22 = vld [vmem:[%s4244_s16 + $0x390] sm:$0xff]  ;;  %v379_v13 = vld [vmem:[%s4244_s16 + $0x138] sm:$0xff] }
  0xd4   : > { %2577 = vmatprep.subr.bf16.mxu1 %v3792_v23  ;;  %v458_v23 = vld [vmem:[%s4244_s16 + $0x3b0] sm:$0xff] }
  0xd5   : > { %v3727_v34 = vcombine.low %v454_v22, %v458_v23 }
  0xd6   : > { %2537 = vmatpush1.bf16.msra.mxu0 %v3663_v55  ;;  %v3728_v55 = vcombine.high %v454_v22, %v458_v23  ;;  %v387_v22 = vld [vmem:[%s4244_s16 + $0x178] sm:$0xff] }
  0xd7   : > { %2578 = vmatpush1.bf16.msra.mxu1 %v3791_v28  ;;  %2538 = vmatprep.subr.bf16.mxu0 %v3672_v29  ;;  %v3856_v28 = vcombine.high %v582_v25, %v586_v54  ;;  %v462_v29 = vld [vmem:[%s4244_s16 + $0x3d0] sm:$0xff]  ;;  %v3649_v25 = vcombine.low %v375_v12, %v379_v13 }
  0xd8   : > { %2579 = vmatprep.subr.bf16.mxu1 %v3800_v30  ;;  %v466_v30 = vld [vmem:[%s4244_s16 + $0x3f0] sm:$0xff] }
  0xd9   : > { %v3735_v42 = vcombine.low %v462_v29, %v466_v30 }
  0xda   : > { %2539 = vmatpush1.bf16.msra.mxu0 %v3671_v36  ;;  %v3736_v36 = vcombine.high %v462_v29, %v466_v30  ;;  %v395_v29 = vld [vmem:[%s4244_s16 + $0x1b8] sm:$0xff] }
  0xdb   : > { %2580 = vmatpush1.bf16.msra.mxu1 %v3799_v37  ;;  %2540 = vmatprep.subr.bf16.mxu0 %v3680_v38  ;;  %v3864_v37 = vcombine.high %v590_v31, %v594_v32  ;;  %v598_v38 = vld [vmem:[%s4244_s16 + $0x810] sm:$0xff] }
  0xdc   : > { %2581 = vmatprep.subr.bf16.mxu1 %v3808_v39  ;;  %v602_v39 = vld [vmem:[%s4244_s16 + $0x830] sm:$0xff] }
  0xdd   : > { %v3871_v50 = vcombine.low %v598_v38, %v602_v39 }
  0xde   : > { %2541 = vmatpush1.bf16.msra.mxu0 %v3679_v44  ;;  %v3872_v44 = vcombine.high %v598_v38, %v602_v39  ;;  %v403_v38 = vld [vmem:[%s4244_s16 + $0x1f8] sm:$0xff] }
  0xdf   : > { %2582 = vmatpush1.bf16.msra.mxu1 %v3807_v45  ;;  %2542 = vmatprep.subr.bf16.mxu0 %v3688_v46  ;;  %v3618_v45 = vcombine.high %v343_v40, %v347_v41  ;;  %v606_v46 = vld [vmem:[%s4244_s16 + $0x850] sm:$0xff] }
  0xe0   : > { %2583 = vmatprep.subr.bf16.mxu1 %v3816_v47  ;;  %v610_v47 = vld [vmem:[%s4244_s16 + $0x870] sm:$0xff] }
  0xe1   : > { %v3879_v62 = vcombine.low %v606_v46, %v610_v47 }
  0xe2   : > { %2543 = vmatpush1.bf16.msra.mxu0 %v3687_v52  ;;  %v3880_v52 = vcombine.high %v606_v46, %v610_v47  ;;  %v411_v46 = vld [vmem:[%s4244_s16 + $0x238] sm:$0xff] }
  0xe3   : > { %2584 = vmatpush1.bf16.msra.mxu1 %v3815_v53  ;;  %2544 = vmatprep.subr.bf16.mxu0 %v3696_v56  ;;  %v3626_v53 = vcombine.high %v351_v48, %v355_v49  ;;  %v614_v56 = vld [vmem:[%s4244_s16 + $0x890] sm:$0xff] }
  0xe4   : > { %2585 = vmatprep.subr.bf16.mxu1 %v3824_v57  ;;  %v618_v57 = vld [vmem:[%s4244_s16 + $0x8b0] sm:$0xff] }
  0xe5   : > { %v3887_v6 = vcombine.low %v614_v56, %v618_v57 }
  0xe6   : > { %2545 = vmatpush1.bf16.msra.mxu0 %v3695_v0  ;;  %v3888_v0 = vcombine.high %v614_v56, %v618_v57  ;;  %v419_v56 = vld [vmem:[%s4244_s16 + $0x278] sm:$0xff] }
  0xe7   : > { %2586 = vmatpush1.bf16.msra.mxu1 %v3823_v1  ;;  %2546 = vmatprep.subr.bf16.mxu0 %v3704_v2  ;;  %v3634_v1 = vcombine.high %v359_v58, %v363_v61  ;;  %v622_v2 = vld [vmem:[%s4244_s16 + $0x8d0] sm:$0xff] }
  0xe8   : > { %2587 = vmatprep.subr.bf16.mxu1 %v3832_v3  ;;  %v626_v3 = vld [vmem:[%s4244_s16 + $0x8f0] sm:$0xff] }
  0xe9   : > { %v3895_v14 = vcombine.low %v622_v2, %v626_v3 }
  0xea   : > { %2547 = vmatpush1.bf16.msra.mxu0 %v3703_v8  ;;  %v3896_v8 = vcombine.high %v622_v2, %v626_v3  ;;  %v427_v2 = vld [vmem:[%s4244_s16 + $0x2b8] sm:$0xff] }
  0xeb   : > { %2588 = vmatpush1.bf16.msra.mxu1 %v3831_v9  ;;  %2548 = vmatprep.subr.bf16.mxu0 %v3712_v10  ;;  %v3642_v9 = vcombine.high %v367_v4, %v371_v5  ;;  %v630_v10 = vld [vmem:[%s4244_s16 + $0x910] sm:$0xff] }
  0xec   : > { %2589 = vmatprep.subr.bf16.mxu1 %v3840_v11  ;;  %v634_v11 = vld [vmem:[%s4244_s16 + $0x930] sm:$0xff] }
  0xed   : > { %v3904_v15 = vcombine.high %v630_v10, %v634_v11  ;;  %v3903_v23 = vcombine.low %v630_v10, %v634_v11 }
  0xee   : > { %2549 = vmatpush1.bf16.msra.mxu0 %v3711_v16  ;;  %v3650_v16 = vcombine.high %v375_v12, %v379_v13  ;;  %v503_v13 = vld [vmem:[%s4244_s16 + $0x518] sm:$0xff] }
  0xef   : > { %2590 = vmatpush1.bf16.msra.mxu1 %v3839_v18  ;;  %2550 = vmatprep.subr.bf16.mxu0 %v3720_v19  ;;  %v638_v18 = vld [vmem:[%s4244_s16 + $0x950] sm:$0xff] }
  0xf0   : > { %2591 = vmatprep.subr.bf16.mxu1 %v3848_v21  ;;  %v642_v19 = vld [vmem:[%s4244_s16 + $0x970] sm:$0xff]  ;;  %v383_v21 = vld [vmem:[%s4244_s16 + $0x158] sm:$0xff] }
  0xf1   : > { %v3912_v54 = vcombine.high %v638_v18, %v642_v19  ;;  %v3911_v30 = vcombine.low %v638_v18, %v642_v19  ;;  %v3657_v31 = vcombine.low %v383_v21, %v387_v22 }
  0xf2   : > { %2551 = vmatpush1.bf16.msra.mxu0 %v3719_v26  ;;  %v3658_v26 = vcombine.high %v383_v21, %v387_v22  ;;  %v511_v22 = vld [vmem:[%s4244_s16 + $0x558] sm:$0xff] }
  0xf3   : > { %2592 = vmatpush1.bf16.msra.mxu1 %v3847_v27  ;;  %2552 = vmatprep.subr.bf16.mxu0 %v3728_v55  ;;  %v646_v27 = vld [vmem:[%s4244_s16 + $0x990] sm:$0xff] }
  0xf4   : > { %2593 = vmatprep.subr.bf16.mxu1 %v3856_v28  ;;  %v650_v55 = vld [vmem:[%s4244_s16 + $0x9b0] sm:$0xff]  ;;  %v391_v28 = vld [vmem:[%s4244_s16 + $0x198] sm:$0xff] }
  0xf5   : > { %v3920_v32 = vcombine.high %v646_v27, %v650_v55  ;;  %v3919_v39 = vcombine.low %v646_v27, %v650_v55  ;;  %v3665_v40 = vcombine.low %v391_v28, %v395_v29 }
  0xf6   : > { %2553 = vmatpush1.bf16.msra.mxu0 %v3727_v34  ;;  %v3666_v34 = vcombine.high %v391_v28, %v395_v29  ;;  %v519_v29 = vld [vmem:[%s4244_s16 + $0x598] sm:$0xff] }
  0xf7   : > { %2594 = vmatpush1.bf16.msra.mxu1 %v3855_v35  ;;  %2554 = vmatprep.subr.bf16.mxu0 %v3736_v36  ;;  %v654_v35 = vld [vmem:[%s4244_s16 + $0x9d0] sm:$0xff] }
  0xf8   : > { %2595 = vmatprep.subr.bf16.mxu1 %v3864_v37  ;;  %v658_v36 = vld [vmem:[%s4244_s16 + $0x9f0] sm:$0xff]  ;;  %v399_v37 = vld [vmem:[%s4244_s16 + $0x1d8] sm:$0xff] }
  0xf9   : > { %v3928_v41 = vcombine.high %v654_v35, %v658_v36  ;;  %v3927_v47 = vcombine.low %v654_v35, %v658_v36  ;;  %v3673_v48 = vcombine.low %v399_v37, %v403_v38 }
  0xfa   : > { %2555 = vmatpush1.bf16.msra.mxu0 %v3735_v42  ;;  %v3674_v42 = vcombine.high %v399_v37, %v403_v38 }
  0xfb   : > { %2596 = vmatpush1.bf16.msra.mxu1 %v3863_v43  ;;  %2606 = vmatprep.subr.bf16.mxu0 %v3872_v44  ;;  %v471_v43 = vld [vmem:[%s4244_s16 + $0x418] sm:$0xff] }
  0xfc   : > { %2647 = vmatprep.subr.bf16.mxu1 %v3618_v45  ;;  %v475_v44 = vld [vmem:[%s4244_s16 + $0x438] sm:$0xff] }
  0xfd   : > { %2557 = vmatmul.mubr.bf16.vlgmr.msra.gmra.mrb[12].mxu0 %v4335_v17  ;;  %v407_v45 = vld [vmem:[%s4244_s16 + $0x218] sm:$0xff]  ;;  %v3746_v49 = vcombine.high %v471_v43, %v475_v44  ;;  %v3745_v57 = vcombine.low %v471_v43, %v475_v44 }
  0xfe   : > { %2598 = vmatmul.mubr.bf16.vlgmr.msra.gmra.mrb[12].mxu1 %v4341_v20  ;;  %2607 = vmatpush1.bf16.msra.mxu0 %v3871_v50  ;;  %v3682_v50 = vcombine.high %v407_v45, %v411_v46  ;;  %v3681_v58 = vcombine.low %v407_v45, %v411_v46  ;;  %v463_v43 = vld [vmem:[%s4244_s16 + $0x3d8] sm:$0xff] }
  0xff   : > { %2648 = vmatpush1.bf16.msra.mxu1 %v3617_v51  ;;  %2608 = vmatprep.subr.bf16.mxu0 %v3880_v52  ;;  %v479_v51 = vld [vmem:[%s4244_s16 + $0x458] sm:$0xff] }
 0x100   : > { %2649 = vmatprep.subr.bf16.mxu1 %v3626_v53  ;;  %2638 = vmatprep.mubr.bf16.mxu0 %v4178_v33  ;;  %v483_v52 = vld [vmem:[%s4244_s16 + $0x478] sm:$0xff] }
 0x101   : > { %2679 = vmatprep.mubr.bf16.mxu1 %v4285_v59  ;;  %v3641_v59 = vcombine.low %v367_v4, %v371_v5  ;;  %v415_v53 = vld [vmem:[%s4244_s16 + $0x258] sm:$0xff]  ;;  %v3754_v61 = vcombine.high %v479_v51, %v483_v52  ;;  %v3753_v3 = vcombine.low %v479_v51, %v483_v52 }
 0x102   : > { %2609 = vmatpush1.bf16.msra.mxu0 %v3879_v62  ;;  %v3690_v62 = vcombine.high %v415_v53, %v419_v56  ;;  %v3689_v4 = vcombine.low %v415_v53, %v419_v56  ;;  %v467_v44 = vld [vmem:[%s4244_s16 + $0x3f8] sm:$0xff] }
 0x103   : > { %2650 = vmatpush1.bf16.msra.mxu1 %v3625_v63  ;;  %2610 = vmatprep.subr.bf16.mxu0 %v3888_v0  ;;  %v487_v63 = vld [vmem:[%s4244_s16 + $0x498] sm:$0xff] }
 0x104   : > { %2651 = vmatprep.subr.bf16.mxu1 %v3634_v1  ;;  %v491_v0 = vld [vmem:[%s4244_s16 + $0x4b8] sm:$0xff] }
 0x105   : > { %v423_v1 = vld [vmem:[%s4244_s16 + $0x298] sm:$0xff]  ;;  %v3762_v5 = vcombine.high %v487_v63, %v491_v0  ;;  %v3761_v10 = vcombine.low %v487_v63, %v491_v0 }
 0x106   : > { %2611 = vmatpush1.bf16.msra.mxu0 %v3887_v6  ;;  %v3698_v6 = vcombine.high %v423_v1, %v427_v2  ;;  %v3697_v11 = vcombine.low %v423_v1, %v427_v2  ;;  %v603_v63 = vld [vmem:[%s4244_s16 + $0x838] sm:$0xff]  ;;  %v3737_v1 = vcombine.low %v463_v43, %v467_v44 }
 0x107   : > { %2652 = vmatpush1.bf16.msra.mxu1 %v3633_v7  ;;  %2612 = vmatprep.subr.bf16.mxu0 %v3896_v8  ;;  %v495_v7 = vld [vmem:[%s4244_s16 + $0x4d8] sm:$0xff] }
 0x108   : > { %2653 = vmatprep.subr.bf16.mxu1 %v3642_v9  ;;  %v499_v8 = vld [vmem:[%s4244_s16 + $0x4f8] sm:$0xff] }
 0x109   : > { %v431_v9 = vld [vmem:[%s4244_s16 + $0x2d8] sm:$0xff] }
 0x10a   : > { %2613 = vmatpush1.bf16.msra.mxu0 %v3895_v14  ;;  %v507_v14 = vld [vmem:[%s4244_s16 + $0x538] sm:$0xff] }
 0x10b   : > { %2654 = vmatpush1.bf16.msra.mxu1 %v3641_v59  ;;  %2614 = vmatprep.subr.bf16.mxu0 %v3904_v15  ;;  %v439_v59 = vld [vmem:[%s4244_s16 + $0x318] sm:$0xff]  ;;  %v3778_v19 = vcombine.high %v503_v13, %v507_v14 }
 0x10c   : > { %2655 = vmatprep.subr.bf16.mxu1 %v3650_v16  ;;  %v443_v15 = vld [vmem:[%s4244_s16 + $0x338] sm:$0xff]  ;;  %v3769_v16 = vcombine.low %v495_v7, %v499_v8 }
 0x10d   : > { %v3714_v21 = vcombine.high %v439_v59, %v443_v15  ;;  %v3713_v27 = vcombine.low %v439_v59, %v443_v15 }
 0x10e   : > { %2615 = vmatpush1.bf16.msra.mxu0 %v3903_v23  ;;  %v515_v23 = vld [vmem:[%s4244_s16 + $0x578] sm:$0xff] }
 0x10f   : > { %2656 = vmatpush1.bf16.msra.mxu1 %v3649_v25  ;;  %2616 = vmatprep.subr.bf16.mxu0 %v3912_v54  ;;  %v447_v25 = vld [vmem:[%s4244_s16 + $0x358] sm:$0xff]  ;;  %v3786_v55 = vcombine.high %v511_v22, %v515_v23 }
 0x110   : > { %2657 = vmatprep.subr.bf16.mxu1 %v3658_v26  ;;  %v451_v54 = vld [vmem:[%s4244_s16 + $0x378] sm:$0xff]  ;;  %v3777_v26 = vcombine.low %v503_v13, %v507_v14 }
 0x111   : > { %v3722_v28 = vcombine.high %v447_v25, %v451_v54  ;;  %v3721_v35 = vcombine.low %v447_v25, %v451_v54  ;;  %v619_v13 = vld [vmem:[%s4244_s16 + $0x8b8] sm:$0xff] }
 0x112   : > { %2617 = vmatpush1.bf16.msra.mxu0 %v3911_v30  ;;  %v523_v30 = vld [vmem:[%s4244_s16 + $0x5b8] sm:$0xff] }
 0x113   : > { %2658 = vmatpush1.bf16.msra.mxu1 %v3657_v31  ;;  %2618 = vmatprep.subr.bf16.mxu0 %v3920_v32  ;;  %v455_v31 = vld [vmem:[%s4244_s16 + $0x398] sm:$0xff]  ;;  %v3794_v36 = vcombine.high %v519_v29, %v523_v30 }
 0x114   : > { %2659 = vmatprep.subr.bf16.mxu1 %v3666_v34  ;;  %v459_v32 = vld [vmem:[%s4244_s16 + $0x3b8] sm:$0xff]  ;;  %v3785_v34 = vcombine.low %v511_v22, %v515_v23 }
 0x115   : > { %v3730_v38 = vcombine.high %v455_v31, %v459_v32  ;;  %v3729_v52 = vcombine.low %v455_v31, %v459_v32  ;;  %v627_v22 = vld [vmem:[%s4244_s16 + $0x8f8] sm:$0xff] }
 0x116   : > { %2619 = vmatpush1.bf16.msra.mxu0 %v3919_v39  ;;  %v527_v39 = vld [vmem:[%s4244_s16 + $0x5d8] sm:$0xff] }
 0x117   : > { %2660 = vmatpush1.bf16.msra.mxu1 %v3665_v40  ;;  %2620 = vmatprep.subr.bf16.mxu0 %v3928_v41  ;;  %v531_v40 = vld [vmem:[%s4244_s16 + $0x5f8] sm:$0xff] }
 0x118   : > { %2661 = vmatprep.subr.bf16.mxu1 %v3674_v42  ;;  %v3802_v53 = vcombine.high %v527_v39, %v531_v40  ;;  %v3801_v0 = vcombine.low %v527_v39, %v531_v40  ;;  %v575_v32 = vld [vmem:[%s4244_s16 + $0x758] sm:$0xff] }
 0x11a   : > { %2621 = vmatpush1.bf16.msra.mxu0 %v3927_v47 }
 0x11b   : > { %2662 = vmatpush1.bf16.msra.mxu1 %v3673_v48  ;;  %2688 = vmatprep.subr.bf16.mxu0 %v3746_v49  ;;  %v3793_v48 = vcombine.low %v519_v29, %v523_v30 }
 0x11c   : > { %2663 = vmatprep.subr.bf16.mxu1 %v3682_v50 }
 0x11d   : > { %2639 = vmatmul.mubr.bf16.vlgmr.msra.gmra.mrb[16].mxu0 %v4378_v24  ;;  %v435_v24 = vld [vmem:[%s4244_s16 + $0x2f8] sm:$0xff] }
 0x11e   : > { %2689 = vmatpush1.bf16.msra.mxu0 %v3745_v57  ;;  %2720 = vmatprep.mubr.bf16.mxu0 %v4289_v60  ;;  %v3770_v60 = vcombine.high %v495_v7, %v499_v8  ;;  %v3706_v12 = vcombine.high %v431_v9, %v435_v24  ;;  %v3705_v18 = vcombine.low %v431_v9, %v435_v24  ;;  %v611_v7 = vld [vmem:[%s4244_s16 + $0x878] sm:$0xff] }
 0x11f   : > { %2664 = vmatpush1.bf16.msra.mxu1 %v3681_v58  ;;  %2690 = vmatprep.subr.bf16.mxu0 %v3754_v61  ;;  %v3738_v57 = vcombine.high %v463_v43, %v467_v44  ;;  %v535_v58 = vld [vmem:[%s4244_s16 + $0x618] sm:$0xff] }
 0x120   : > { %2665 = vmatprep.subr.bf16.mxu1 %v3690_v62  ;;  %v539_v61 = vld [vmem:[%s4244_s16 + $0x638] sm:$0xff] }
 0x121   : > { %v599_v62 = vld [vmem:[%s4244_s16 + $0x818] sm:$0xff]  ;;  %v3810_v2 = vcombine.high %v535_v58, %v539_v61  ;;  %v3809_v8 = vcombine.low %v535_v58, %v539_v61  ;;  %v330_v58 = vld [vmem:[#allocation2 + $0x8] sm:$0xff] }
 0x122   : > { %2691 = vmatpush1.bf16.msra.mxu0 %v3753_v3  ;;  %v3874_v3 = vcombine.high %v599_v62, %v603_v63  ;;  %v3873_v9 = vcombine.low %v599_v62, %v603_v63  ;;  %v647_v43 = vld [vmem:[%s4244_s16 + $0x998] sm:$0xff] }
 0x123   : > { %2666 = vmatpush1.bf16.msra.mxu1 %v3689_v4  ;;  %2692 = vmatprep.subr.bf16.mxu0 %v3762_v5  ;;  %v543_v4 = vld [vmem:[%s4244_s16 + $0x658] sm:$0xff] }
 0x124   : > { %2667 = vmatprep.subr.bf16.mxu1 %v3698_v6  ;;  %v547_v5 = vld [vmem:[%s4244_s16 + $0x678] sm:$0xff] }
 0x125   : > { %v607_v6 = vld [vmem:[%s4244_s16 + $0x858] sm:$0xff]  ;;  %v3818_v24 = vcombine.high %v543_v4, %v547_v5  ;;  %v3817_v14 = vcombine.low %v543_v4, %v547_v5 }
 0x126   : > { %2693 = vmatpush1.bf16.msra.mxu0 %v3761_v10  ;;  %v3882_v10 = vcombine.high %v607_v6, %v611_v7  ;;  %v3881_v59 = vcombine.low %v607_v6, %v611_v7  ;;  %v651_v44 = vld [vmem:[%s4244_s16 + $0x9b8] sm:$0xff] }
 0x127   : > { %2668 = vmatpush1.bf16.msra.mxu1 %v3697_v11  ;;  %2694 = vmatprep.subr.bf16.mxu0 %v3770_v60  ;;  %v551_v11 = vld [vmem:[%s4244_s16 + $0x698] sm:$0xff]  ;;  %v3921_v5 = vcombine.low %v647_v43, %v651_v44 }
 0x128   : > { %2669 = vmatprep.subr.bf16.mxu1 %v3706_v12  ;;  %v555_v60 = vld [vmem:[%s4244_s16 + $0x6b8] sm:$0xff] }
 0x129   : > { %v615_v12 = vld [vmem:[%s4244_s16 + $0x898] sm:$0xff]  ;;  %v3826_v15 = vcombine.high %v551_v11, %v555_v60 }
 0x12a   : > { %2695 = vmatpush1.bf16.msra.mxu0 %v3769_v16  ;;  %v3890_v16 = vcombine.high %v615_v12, %v619_v13  ;;  %v3889_v23 = vcombine.low %v615_v12, %v619_v13  ;;  %v655_v62 = vld [vmem:[%s4244_s16 + $0x9d8] sm:$0xff] }
 0x12b   : > { %2670 = vmatpush1.bf16.msra.mxu1 %v3705_v18  ;;  %2696 = vmatprep.subr.bf16.mxu0 %v3778_v19  ;;  %v559_v18 = vld [vmem:[%s4244_s16 + $0x6d8] sm:$0xff] }
 0x12c   : > { %2671 = vmatprep.subr.bf16.mxu1 %v3714_v21  ;;  %v563_v19 = vld [vmem:[%s4244_s16 + $0x6f8] sm:$0xff] }
 0x12d   : > { %v623_v21 = vld [vmem:[%s4244_s16 + $0x8d8] sm:$0xff]  ;;  %v3834_v25 = vcombine.high %v559_v18, %v563_v19 }
 0x12e   : > { %2697 = vmatpush1.bf16.msra.mxu0 %v3777_v26  ;;  %v3898_v54 = vcombine.high %v623_v21, %v627_v22  ;;  %v567_v26 = vld [vmem:[%s4244_s16 + $0x718] sm:$0xff]  ;;  %v3897_v29 = vcombine.low %v623_v21, %v627_v22 }
 0x12f   : > { %2672 = vmatpush1.bf16.msra.mxu1 %v3713_v27  ;;  %2698 = vmatprep.subr.bf16.mxu0 %v3786_v55  ;;  %v571_v27 = vld [vmem:[%s4244_s16 + $0x738] sm:$0xff] }
 0x130   : > { %v2312_v37 = vpop.f32.mrb[0].mxu0  ;;  %2673 = vmatprep.subr.bf16.mxu1 %v3722_v28  ;;  %v631_v55 = vld [vmem:[%s4244_s16 + $0x918] sm:$0xff]  ;;  %v3842_v30 = vcombine.high %v567_v26, %v571_v27 }
 0x131   : > { %v2353_v41 = vpop.f32.mrb[0].mxu1  ;;  %v2314_v42 = vpop.f32.mrb[1].mxu0  ;;  %v635_v28 = vld [vmem:[%s4244_s16 + $0x938] sm:$0xff] }
 0x132   : > { %v4580_v45 = vadd.f32 %v2353_v41, %v2312_v37  ;;  %v2355_v46 = vpop.f32.mrb[1].mxu1  ;;  %v2316_v47 = vpop.f32.mrb[2].mxu0  ;;  %2699 = vmatpush1.bf16.msra.mxu0 %v3785_v34  ;;  %v3906_v31 = vcombine.high %v631_v55, %v635_v28  ;;  %v579_v34 = vld [vmem:[%s4244_s16 + $0x778] sm:$0xff]  ;;  %v3841_v37 = vcombine.low %v567_v26, %v571_v27 }
 0x133   : > { %v4582_v49 = vadd.f32 %v2355_v46, %v2314_v42  ;;  %v2357_v50 = vpop.f32.mrb[2].mxu1  ;;  %2674 = vmatpush1.bf16.msra.mxu1 %v3721_v35  ;;  %v2317_v51 = vpop.f32.mrb[3].mxu0  ;;  %2700 = vmatprep.subr.bf16.mxu0 %v3794_v36  ;;  %v639_v35 = vld [vmem:[%s4244_s16 + $0x958] sm:$0xff]  ;;  %v3850_v39 = vcombine.high %v575_v32, %v579_v34  ;;  %v3849_v46 = vcombine.low %v575_v32, %v579_v34 }
 0x134   : > { %v2358_v56 = vpop.f32.mrb[3].mxu1  ;;  %2675 = vmatprep.subr.bf16.mxu1 %v3730_v38  ;;  %v643_v36 = vld [vmem:[%s4244_s16 + $0x978] sm:$0xff]  ;;  %v3905_v38 = vcombine.low %v631_v55, %v635_v28  ;;  %v329_v50 = vld [vmem:[#allocation2] sm:$0xff] }
 0x135   : > { %v3914_v40 = vcombine.high %v639_v35, %v643_v36  ;;  %v583_v41 = vld [vmem:[%s4244_s16 + $0x798] sm:$0xff]  ;;  %v3913_v47 = vcombine.low %v639_v35, %v643_v36  ;;  %v333_v36 = vld [vmem:[#allocation2 + $0x20] sm:$0xff] }
 0x136   : > { %2701 = vmatpush1.bf16.msra.mxu0 %v3793_v48  ;;  %v587_v42 = vld [vmem:[%s4244_s16 + $0x7b8] sm:$0xff] }
 0x137   : > { %2676 = vmatpush1.bf16.msra.mxu1 %v3729_v52  ;;  %2702 = vmatprep.subr.bf16.mxu0 %v3802_v53  ;;  %v3858_v48 = vcombine.high %v583_v41, %v587_v42  ;;  %v3922_v52 = vcombine.high %v647_v43, %v651_v44  ;;  %v591_v53 = vld [vmem:[%s4244_s16 + $0x7d8] sm:$0xff] }
 0x138   : > { %2677 = vmatprep.subr.bf16.mxu1 %v3738_v57  ;;  %v595_v56 = vld [vmem:[%s4244_s16 + $0x7f8] sm:$0xff] }
 0x139   : > { %v659_v63 = vld [vmem:[%s4244_s16 + $0x9f8] sm:$0xff]  ;;  %v3866_v6 = vcombine.high %v591_v53, %v595_v56 }
 0x13a   : > { %2703 = vmatpush1.bf16.msra.mxu0 %v3801_v0  ;;  %v332_v22 = vld [vmem:[#allocation2 + $0x18] sm:$0xff] }
 0x13b   : > { %2678 = vmatpush1.bf16.msra.mxu1 %v3737_v1  ;;  %2704 = vmatprep.subr.bf16.mxu0 %v3810_v2  ;;  %v3857_v2 = vcombine.low %v583_v41, %v587_v42 }
 0x13c   : > { %2729 = vmatprep.subr.bf16.mxu1 %v3874_v3 }
 0x13e   : > { %2680 = vmatmul.mubr.bf16.vlgmr.msra.gmra.mrb[16].mxu1 %v4335_v17  ;;  %2705 = vmatpush1.bf16.msra.mxu0 %v3809_v8  ;;  %v3825_v17 = vcombine.low %v551_v11, %v555_v60  ;;  %v3930_v8 = vcombine.high %v655_v62, %v659_v63 }
 0x13f   : > { %2730 = vmatpush1.bf16.msra.mxu1 %v3873_v9  ;;  %2706 = vmatprep.subr.bf16.mxu0 %v3818_v24  ;;  %v4104_v9 = vld [vmem:[%s4239_s12 + $0x10] ss:$0 sps:$4 sm:$0xff]  }
 0x140   : > { %2731 = vmatprep.subr.bf16.mxu1 %v3882_v10  ;;  %2761 = vmatprep.mubr.bf16.mxu1 %v4178_v33  ;;  %v3833_v33 = vcombine.low %v559_v18, %v563_v19 }
 0x142   : > { %2707 = vmatpush1.bf16.msra.mxu0 %v3817_v14 }
 0x143   : > { %2732 = vmatpush1.bf16.msra.mxu1 %v3881_v59  ;;  %2708 = vmatprep.subr.bf16.mxu0 %v3826_v15  ;;  %v331_v15 = vld [vmem:[#allocation2 + $0x10] sm:$0xff] }
 0x144   : > { %2733 = vmatprep.subr.bf16.mxu1 %v3890_v16 }
 0x146   : > { %2709 = vmatpush1.bf16.msra.mxu0 %v3825_v17 }
 0x147   : > { %2734 = vmatpush1.bf16.msra.mxu1 %v3889_v23  ;;  %2710 = vmatprep.subr.bf16.mxu0 %v3834_v25 }
 0x148   : > { %2735 = vmatprep.subr.bf16.mxu1 %v3898_v54 }
 0x14a   : > { %2711 = vmatpush1.bf16.msra.mxu0 %v3833_v33 }
 0x14b   : > { %2736 = vmatpush1.bf16.msra.mxu1 %v3897_v29  ;;  %2712 = vmatprep.subr.bf16.mxu0 %v3842_v30 }
 0x14c   : > { %2737 = vmatprep.subr.bf16.mxu1 %v3906_v31 }
 0x14e   : > { %2713 = vmatpush1.bf16.msra.mxu0 %v3841_v37 }
 0x14f   : > { %2738 = vmatpush1.bf16.msra.mxu1 %v3905_v38  ;;  %2714 = vmatprep.subr.bf16.mxu0 %v3850_v39  ;;  %v334_v39 = vld [vmem:[#allocation2 + $0x28] sm:$0xff] }
 0x150   : > { %v2394_v51 = vpop.f32.mrb[4].mxu0  ;;  %2739 = vmatprep.subr.bf16.mxu1 %v3914_v40 }
 0x151   : > { %v2395_v57 = vadd.f32 %v2394_v51, %v4580_v45  ;;  %v2396_v61 = vpop.f32.mrb[5].mxu0  ;;  %v3865_v45 = vcombine.low %v591_v53, %v595_v56 }
 0x152   : > { %v2397_v0 = vadd.f32 %v2396_v61, %v4582_v49  ;;  %v2398_v1 = vpop.f32.mrb[6].mxu0  ;;  %2715 = vmatpush1.bf16.msra.mxu0 %v3849_v46  ;;  %v3929_v49 = vcombine.low %v655_v62, %v659_v63 }
 0x153   : > { %v2770_v3 = vadd.f32 %v2395_v57, %v329_v50  ;;  %2740 = vmatpush1.bf16.msra.mxu1 %v3913_v47  ;;  %v2399_v4 = vpop.f32.mrb[7].mxu0  ;;  %2716 = vmatprep.subr.bf16.mxu0 %v3858_v48  ;;  %v336_v1 = vld [vmem:[#allocation2 + $0x38] sm:$0xff] }
 0x154   : > { %v2771_v7 = vadd.f32 %v2397_v0, %v330_v58  ;;  %2741 = vmatprep.subr.bf16.mxu1 %v3922_v52  ;;  %v335_v58 = vld [vmem:[#allocation2 + $0x30] sm:$0xff] }
 0x155   : > { %2778 = vst [vmem:[#allocation2] sm:$0xff] %v2770_v3 }
 0x156   : > { %2779 = vst [vmem:[#allocation2 + $0x8] sm:$0xff] %v2771_v7  ;;  %2717 = vmatpush1.bf16.msra.mxu0 %v3857_v2 }
 0x157   : > { %2742 = vmatpush1.bf16.msra.mxu1 %v3921_v5  ;;  %2718 = vmatprep.subr.bf16.mxu0 %v3866_v6 }
 0x158   : > { %2743 = vmatprep.subr.bf16.mxu1 %v3930_v8  ;;  %v4105_v8 = vld [vmem:[%s4856_s3 + $0x40] sm:$0xff] (!%p3931_p6)  }
 0x15a   : > { %2719 = vmatpush1.bf16.msra.mxu0 %v3865_v45  ;;  %v4106_v45 = vld [vmem:[%s4856_s3 + $0xc0] sm:$0xff] (!%p3931_p6)  }
 0x15b   : > { %2744 = vmatpush1.bf16.msra.mxu1 %v3929_v49  ;;  %4001 = vmatprep.subr.bf16.mxu0 (!%p3931_p6), %v4105_v8  ;;  %v4107_v49 = vld [vmem:[%s4856_s3] sm:$0xff] (!%p3931_p6)   ;;  %v4142_v8 = vld [vmem:[%s4858_s5 + $0xc8] sm:$0xff] (!%p3931_p6)  }
 0x15c   : > { %4023 = vmatprep.subr.bf16.mxu1 (!%p3931_p6), %v4106_v45  ;;  %v4143_v45 = vld [vmem:[%s4858_s5 + $0x8] sm:$0xff] (!%p3931_p6)  }
 0x15d   : > { %2721 = vmatmul.mubr.bf16.vlgmr.msra.gmra.mrb[20].mxu0 %v4341_v20 }
 0x15e   : > { %2762 = vmatmul.mubr.bf16.vlgmr.msra.gmra.mrb[20].mxu1 %v4104_v9  ;;  %v4108_v9 = vld [vmem:[%s4856_s3 + $0x80] sm:$0xff] (!%p3931_p6)   ;;  %4002 = vmatpush3.bf16.msra.mxu0 (!%p3931_p6), %v4107_v49  ;;  %v4144_v49 = vld [vmem:[%s4858_s5 + $0x88] sm:$0xff] (!%p3931_p6)  }
 0x15f   : > { %4024 = vmatpush3.bf16.msra.mxu1 (!%p3931_p6), %v4108_v9  ;;  %v4145_v9 = vld [vmem:[%s4858_s5 + $0x50] sm:$0xff] (!%p3931_p6)  }
 0x171   : > { %v2435_v24 = vpop.f32.mrb[4].mxu1 }
 0x172   : > { %v2437_v10 = vpop.f32.mrb[5].mxu1 }
 0x173   : > { %v2439_v11 = vpop.f32.mrb[6].mxu1 }
 0x174   : > { %v2440_v60 = vpop.f32.mrb[7].mxu1  ;;  %v4111_v11 = vld [vmem:[%s4856_s3 + $0x8] sm:$0xff] (!%p3931_p6)  }
 0x175   : > { %v4112_v60 = vld [vmem:[%s4856_s3 + $0x88] sm:$0xff] (!%p3931_p6)  }
 0x190   : > { %v2476_v12 = vpop.f32.mrb[8].mxu0 }
 0x191   : > { %v2477_v13 = vadd.f32 %v2476_v12, %v2435_v24  ;;  %v2517_v14 = vpop.f32.mrb[8].mxu1  ;;  %v2478_v59 = vpop.f32.mrb[9].mxu0  ;;  %v4109_v24 = vld [vmem:[%s4856_s3 + $0x48] sm:$0xff] (!%p3931_p6)   ;;  %v4113_v12 = vld [vmem:[%s4856_s3 + $0x50] sm:$0xff] (!%p3931_p6)  }
 0x192   : > { %v2479_v16 = vadd.f32 %v2478_v59, %v2437_v10  ;;  %v2519_v18 = vpop.f32.mrb[9].mxu1  ;;  %v2480_v19 = vpop.f32.mrb[10].mxu0  ;;  %v4110_v10 = vld [vmem:[%s4856_s3 + $0xc8] sm:$0xff] (!%p3931_p6)   ;;  %4003 = vmatprep.subr.bf16.mxu0 (!%p3931_p6), %v4109_v24  ;;  %v4116_v59 = vld [vmem:[%s4856_s3 + $0x90] sm:$0xff] (!%p3931_p6)  }
 0x193   : > { %v2518_v21 = vadd.f32 %v2517_v14, %v2477_v13  ;;  %v2521_v17 = vpop.f32.mrb[10].mxu1  ;;  %v2481_v23 = vpop.f32.mrb[11].mxu0  ;;  %4025 = vmatprep.subr.bf16.mxu1 (!%p3931_p6), %v4110_v10  ;;  %4004 = vmatpush3.bf16.msra.mxu0 (!%p3931_p6), %v4111_v11  ;;  %v4114_v13 = vld [vmem:[%s4856_s3 + $0xd0] sm:$0xff] (!%p3931_p6)   ;;  %v4120_v19 = vld [vmem:[%s4856_s3 + $0x98] sm:$0xff] (!%p3931_p6)  }
 0x194   : > { %v2520_v25 = vadd.f32 %v2519_v18, %v2479_v16  ;;  %v2522_v20 = vpop.f32.mrb[11].mxu1  ;;  %4026 = vmatpush3.bf16.msra.mxu1 (!%p3931_p6), %v4112_v60  ;;  %4005 = vmatprep.subr.bf16.mxu0 (!%p3931_p6), %v4113_v12  ;;  %v4115_v14 = vld [vmem:[%s4856_s3 + $0x10] sm:$0xff] (!%p3931_p6)   ;;  %v4118_v16 = vld [vmem:[%s4856_s3 + $0xd8] sm:$0xff] (!%p3931_p6)   ;;  %v4123_v17 = vld [vmem:[%s4856_s3 + $0x20] sm:$0xff] (!%p3931_p6)   ;;  %v2800_v23 = vlaneseq (!%p3931_p6) }
 0x195   : > { %v2772_v54 = vadd.f32 %v2518_v21, %v331_v15  ;;  %4027 = vmatprep.subr.bf16.mxu1 (!%p3931_p6), %v4114_v13  ;;  %v4117_v15 = vld [vmem:[%s4856_s3 + $0x58] sm:$0xff] (!%p3931_p6)   ;;  %v4121_v21 = vld [vmem:[%s4856_s3 + $0x60] sm:$0xff] (!%p3931_p6)   ;;  %v4125_v20 = vld [vmem:[%s4856_s3 + $0x68] sm:$0xff] (!%p3931_p6)  }
 0x196   : > { %v2773_v26 = vadd.f32 %v2520_v25, %v332_v22  ;;  %v4119_v18 = vld [vmem:[%s4856_s3 + $0x18] sm:$0xff] (!%p3931_p6)   ;;  %v4122_v22 = vld [vmem:[%s4856_s3 + $0xe0] sm:$0xff] (!%p3931_p6)   ;;  %v4146_v24 = vld [vmem:[%s4858_s5 + $0xd0] sm:$0xff] (!%p3931_p6)  }
 0x197   : > { %2780 = vst [vmem:[#allocation2 + $0x10] sm:$0xff] %v2772_v54  ;;  %4006 = vmatpush3.bf16.msra.mxu0 (!%p3931_p6), %v4115_v14  ;;  %v4124_v25 = vld [vmem:[%s4856_s3 + $0xa0] sm:$0xff] (!%p3931_p6)   ;;  %v4126_v54 = vld [vmem:[%s4856_s3 + $0xe8] sm:$0xff] (!%p3931_p6)   ;;  %v4147_v10 = vld [vmem:[%s4858_s5 + $0x10] sm:$0xff] (!%p3931_p6)  }
 0x198   : > { %2781 = vst [vmem:[#allocation2 + $0x18] sm:$0xff] %v2773_v26  ;;  %4028 = vmatpush3.bf16.msra.mxu1 (!%p3931_p6), %v4116_v59  ;;  %4007 = vmatprep.subr.bf16.mxu0 (!%p3931_p6), %v4117_v15  ;;  %v4127_v26 = vld [vmem:[%s4856_s3 + $0x28] sm:$0xff] (!%p3931_p6)   ;;  %v4148_v11 = vld [vmem:[%s4858_s5 + $0x90] sm:$0xff] (!%p3931_p6)   ;;  %v4149_v60 = vld [vmem:[%s4858_s5 + $0x58] sm:$0xff] (!%p3931_p6)  }
 0x199   : > { %4029 = vmatprep.subr.bf16.mxu1 (!%p3931_p6), %v4118_v16  ;;  %v4150_v12 = vld [vmem:[%s4858_s5 + $0xd8] sm:$0xff] (!%p3931_p6)   ;;  %v4153_v59 = vld [vmem:[%s4858_s5 + $0x60] sm:$0xff] (!%p3931_p6)  }
 0x19a   : > { %v4151_v13 = vld [vmem:[%s4858_s5 + $0x18] sm:$0xff] (!%p3931_p6)   ;;  %v4154_v15 = vld [vmem:[%s4858_s5 + $0xe0] sm:$0xff] (!%p3931_p6)  }
 0x19b   : > { %4008 = vmatpush3.bf16.msra.mxu0 (!%p3931_p6), %v4119_v18  ;;  %v4152_v14 = vld [vmem:[%s4858_s5 + $0x98] sm:$0xff] (!%p3931_p6)   ;;  %v4155_v16 = vld [vmem:[%s4858_s5 + $0x20] sm:$0xff] (!%p3931_p6)  }
 0x19c   : > { %4030 = vmatpush3.bf16.msra.mxu1 (!%p3931_p6), %v4120_v19  ;;  %4009 = vmatprep.subr.bf16.mxu0 (!%p3931_p6), %v4121_v21  ;;  %v4156_v18 = vld [vmem:[%s4858_s5 + $0xa0] sm:$0xff] (!%p3931_p6)   ;;  %v4157_v19 = vld [vmem:[%s4858_s5 + $0x68] sm:$0xff] (!%p3931_p6)  }
 0x19d   : > { %4031 = vmatprep.subr.bf16.mxu1 (!%p3931_p6), %v4122_v22  ;;  %v4158_v21 = vld [vmem:[%s4858_s5 + $0xe8] sm:$0xff] (!%p3931_p6)  }
 0x19e   : > { %v4159_v22 = vld [vmem:[%s4858_s5 + $0x28] sm:$0xff] (!%p3931_p6)  }
 0x19f   : > { %4010 = vmatpush3.bf16.msra.mxu0 (!%p3931_p6), %v4123_v17 }
 0x1a0   : > { %4032 = vmatpush3.bf16.msra.mxu1 (!%p3931_p6), %v4124_v25  ;;  %4011 = vmatprep.subr.bf16.mxu0 (!%p3931_p6), %v4125_v20  ;;  %v4161_v20 = vld [vmem:[%s4858_s5 + $0x70] sm:$0xff] (!%p3931_p6)  }
 0x1a1   : > { %4033 = vmatprep.subr.bf16.mxu1 (!%p3931_p6), %v4126_v54 }
 0x1a3   : > { %4012 = vmatpush3.bf16.msra.mxu0 (!%p3931_p6), %v4127_v26  ;;  %v4162_v26 = vld [vmem:[%s4858_s5 + $0xf0] sm:$0xff] (!%p3931_p6)  }
 0x1d0   : > { %v2558_v27 = vpop.f32.mrb[12].mxu0 }
 0x1d1   : > { %v2599_v55 = vpop.f32.mrb[12].mxu1  ;;  %v2560_v28 = vpop.f32.mrb[13].mxu0 }
 0x1d2   : > { %v2600_v33 = vadd.f32 %v2599_v55, %v2558_v27  ;;  %v2601_v29 = vpop.f32.mrb[13].mxu1  ;;  %v2562_v30 = vpop.f32.mrb[14].mxu0  ;;  %v4692_v27 = vshrl.u32 (!%p3931_p6), %v2800_v23, 7  ;;  %v4128_v55 = vld [vmem:[%s4856_s3 + $0xa8] sm:$0xff] (!%p3931_p6)  }
 0x1d3   : > { %v2602_v31 = vadd.f32 %v2601_v29, %v2560_v28  ;;  %v2603_v32 = vpop.f32.mrb[14].mxu1  ;;  %v2563_v34 = vpop.f32.mrb[15].mxu0  ;;  %v4129_v28 = vld [vmem:[%s4856_s3 + $0x70] sm:$0xff] (!%p3931_p6)   ;;  %4034 = vmatpush3.bf16.msra.mxu1 (!%p3931_p6), %v4128_v55  ;;  %v4160_v23 = vld [vmem:[%s4858_s5 + $0xa8] sm:$0xff] (!%p3931_p6)  }
 0x1d4   : > { %v2604_v35 = vpop.f32.mrb[15].mxu1  ;;  %4013 = vmatprep.subr.bf16.mxu0 (!%p3931_p6), %v4129_v28  ;;  %v4131_v29 = vld [vmem:[%s4856_s3 + $0x30] sm:$0xff] (!%p3931_p6)   ;;  %v2806_v30 = vsub.s32 (!%p3931_p6), 1, %v4692_v27  ;;  %v2814_v32 = vsub.s32 (!%p3931_p6), 3, %v4692_v27  ;;  %v4133_v34 = vld [vmem:[%s4856_s3 + $0x78] sm:$0xff] (!%p3931_p6)   ;;  %v2822_v17 = vsub.s32 (!%p3931_p6), 5, %v4692_v27 }
 0x1d5   : > { %4014 = vmatpush3.bf16.msra.mxu0 (!%p3931_p6), %v4131_v29  ;;  %v2802_v35 = vsub.s32 (!%p3931_p6), 0, %v4692_v27  ;;  %v2830_v25 = vsub.s32 (!%p3931_p6), 7, %v4692_v27  ;;  %v2818_v54 = vsub.s32 (!%p3931_p6), 4, %v4692_v27  ;;  %v2826_v55 = vsub.s32 (!%p3931_p6), 6, %v4692_v27  ;;  %v4163_v28 = vld [vmem:[%s4858_s5 + $0x30] sm:$0xff] (!%p3931_p6)   ;;  %v4165_v29 = vld [vmem:[%s4858_s5 + $0x78] sm:$0xff] (!%p3931_p6)  }
 0x1d6   : > { %4015 = vmatprep.subr.bf16.mxu0 (!%p3931_p6), %v4133_v34 }
 0x1f0   : > { %v2640_v37 = vpop.f32.mrb[16].mxu0 }
 0x1f1   : > { %v2641_v38 = vadd.f32 %v2640_v37, %v2600_v33  ;;  %v2642_v40 = vpop.f32.mrb[17].mxu0  ;;  %v4130_v33 = vld [vmem:[%s4856_s3 + $0xf0] sm:$0xff] (!%p3931_p6)   ;;  %v2810_v37 = vsub.s32 (!%p3931_p6), 2, %v4692_v27  ;;  %v4166_v27 = vld [vmem:[%s4858_s5 + $0xf8] sm:$0xff] (!%p3931_p6)  }
 0x1f2   : > { %v2643_v41 = vadd.f32 %v2642_v40, %v2602_v31  ;;  %v2644_v42 = vpop.f32.mrb[18].mxu0  ;;  %4035 = vmatprep.subr.bf16.mxu1 (!%p3931_p6), %v4130_v33  ;;  %v4132_v31 = vld [vmem:[%s4856_s3 + $0xb0] sm:$0xff] (!%p3931_p6)   ;;  %v2791_v40 = vld [vmem:[#allocation2 + $0x8] sm:$0xff] (!%p3931_p6) }
 0x1f3   : > { %v2774_v43 = vadd.f32 %v2641_v38, %v333_v36  ;;  %v2645_v44 = vpop.f32.mrb[19].mxu0  ;;  %4036 = vmatpush3.bf16.msra.mxu1 (!%p3931_p6), %v4132_v31  ;;  %v4134_v36 = vld [vmem:[%s4856_s3 + $0xf8] sm:$0xff] (!%p3931_p6)   ;;  %v4164_v33 = vld [vmem:[%s4858_s5 + $0xb0] sm:$0xff] (!%p3931_p6)  }
 0x1f4   : > { %v2775_v46 = vadd.f32 %v2643_v41, %v334_v39  ;;  %v4135_v38 = vld [vmem:[%s4856_s3 + $0x38] sm:$0xff] (!%p3931_p6)   ;;  %4037 = vmatprep.subr.bf16.mxu1 (!%p3931_p6), %v4134_v36  ;;  %v4728_v41 = vld [vmem:[%s4855_s2] sm:$0xff] (!%p3931_p6) }
 0x1f5   : > { %2782 = vst [vmem:[#allocation2 + $0x20] sm:$0xff] %v2774_v43  ;;  %v4136_v39 = vld [vmem:[%s4856_s3 + $0xb8] sm:$0xff] (!%p3931_p6)   ;;  %4016 = vmatpush3.bf16.msra.mxu0 (!%p3931_p6), %v4135_v38  ;;  %v2807_v43 = vrot.slane (!%p3931_p6), %v4728_v41, %v2806_v30  ;;  %v2815_v44 = vrot.slane (!%p3931_p6), %v4728_v41, %v2814_v32  ;;  %v2823_v30 = vrot.slane (!%p3931_p6), %v4728_v41, %v2822_v17 }
 0x1f6   : > { %2783 = vst [vmem:[#allocation2 + $0x28] sm:$0xff] %v2775_v46  ;;  %v2793_v42 = vld [vmem:[#allocation2 + $0x18] sm:$0xff] (!%p3931_p6)  ;;  %v2790_v46 = vld [vmem:[#allocation2] sm:$0xff] (!%p3931_p6)  ;;  %v2831_v31 = vrot.slane (!%p3931_p6), %v4728_v41, %v2830_v25  ;;  %v2819_v32 = vrot.slane (!%p3931_p6), %v4728_v41, %v2818_v54  ;;  %v2827_v34 = vrot.slane (!%p3931_p6), %v4728_v41, %v2826_v55 }
 0x1f7   : > { %4038 = vmatpush3.bf16.msra.mxu1 (!%p3931_p6), %v4136_v39  ;;  %v4168_v38 = vld [vmem:[%s4858_s5 + $0xb8] sm:$0xff] (!%p3931_p6)  }
 0x1fd   : > { %v2795_v36 = vld [vmem:[#allocation2 + $0x28] sm:$0xff] (!%p3931_p6) }
 0x1fe   : > { %v2845_v39 = vadd.f32 (!%p3931_p6), %v2823_v30, %v2795_v36 }
 0x211   : > { %v2681_v47 = vpop.f32.mrb[16].mxu1 }
 0x212   : > { %v2683_v48 = vpop.f32.mrb[17].mxu1 }
 0x213   : > { %v2685_v50 = vpop.f32.mrb[18].mxu1 }
 0x214   : > { %v2686_v51 = vpop.f32.mrb[19].mxu1  ;;  %v2811_v50 = vrot.slane (!%p3931_p6), %v4728_v41, %v2810_v37 }
 0x215   : > { %v4137_v51 = vld [vmem:[%s4858_s5 + $0x40] sm:$0xff] (!%p3931_p6)  }
 0x216   : > { %4045 = vmatprep.subr.bf16.mxu0 (!%p3931_p6), %v4137_v51 }
 0x230   : > { %v2722_v52 = vpop.f32.mrb[20].mxu0 }
 0x231   : > { %v2723_v53 = vadd.f32 %v2722_v52, %v2681_v47  ;;  %v2763_v56 = vpop.f32.mrb[20].mxu1  ;;  %v2724_v57 = vpop.f32.mrb[21].mxu0  ;;  %v2803_v47 = vrot.slane (!%p3931_p6), %v4728_v41, %v2802_v35  ;;  %v2841_v52 = vadd.f32 (!%p3931_p6), %v2807_v43, %v2791_v40  ;;  %v4167_v35 = vld [vmem:[%s4858_s5 + $0x38] sm:$0xff] (!%p3931_p6)  }
 0x232   : > { %v2725_v61 = vadd.f32 %v2724_v57, %v2683_v48  ;;  %v2765_v62 = vpop.f32.mrb[21].mxu1  ;;  %v2726_v63 = vpop.f32.mrb[22].mxu0  ;;  %2789 = sbr.rel (%p3931_p6) target bundleno = 821 (0x335), region = 56  ;;  %v2792_v48 = vld [vmem:[#allocation2 + $0x10] sm:$0xff] (!%p3931_p6) }
 0x233   : > { %v2764_v0 = vadd.f32 %v2763_v56, %v2723_v53  ;;  %v2767_v2 = vpop.f32.mrb[22].mxu1  ;;  %v2727_v3 = vpop.f32.mrb[23].mxu0  ;;  %v2843_v53 = vadd.f32 (!%p3931_p6), %v2815_v44, %v2793_v42  ;;  %v2840_v56 = vadd.f32 (!%p3931_p6), %v2803_v47, %v2790_v46  ;;  %v2842_v57 = vadd.f32 (!%p3931_p6), %v2811_v50, %v2792_v48  ;;  %v2794_v42 = vld [vmem:[#allocation2 + $0x20] sm:$0xff] (!%p3931_p6) }
 0x234   : > { %v2766_v4 = vadd.f32 %v2765_v62, %v2725_v61  ;;  %v2768_v5 = vpop.f32.mrb[23].mxu1  ;;  %v2849_v61 = vmax.f32 (!%p3931_p6), %v2841_v52, 0.0  ;;  %v4140_v2 = vld [vmem:[%s4858_s5 + $0x80] sm:$0xff] (!%p3931_p6)   ;;  %v2844_v44 = vadd.f32 (!%p3931_p6), %v2819_v32, %v2794_v42  ;;  %v2853_v46 = vmax.f32 (!%p3931_p6), %v2845_v39, 0.0 }
 0x235   : > { %v2776_v6 = vadd.f32 %v2764_v0, %v335_v58  ;;  %v4138_v58 = vld [vmem:[%s4858_s5 + $0xc0] sm:$0xff] (!%p3931_p6)   ;;  %v2851_v62 = vmax.f32 (!%p3931_p6), %v2843_v53, 0.0  ;;  %v2848_v63 = vmax.f32 (!%p3931_p6), %v2840_v56, 0.0  ;;  %v2850_v0 = vmax.f32 (!%p3931_p6), %v2842_v57, 0.0 }
 0x236   : > { %v2777_v7 = vadd.f32 %v2766_v4, %v336_v1  ;;  %4067 = vmatprep.subr.bf16.mxu1 (!%p3931_p6), %v4138_v58  ;;  %v4139_v1 = vld [vmem:[%s4858_s5] sm:$0xff] (!%p3931_p6)   ;;  %v2857_v3 = vpack.c.bf16 (!%p3931_p6), %v2849_v61, %v2849_v61  ;;  %v2852_v48 = vmax.f32 (!%p3931_p6), %v2844_v44, 0.0  ;;  %v2861_v51 = vpack.c.bf16 (!%p3931_p6), %v2853_v46, %v2853_v46 }
 0x237   : > { %2784 = vst [vmem:[#allocation2 + $0x30] sm:$0xff] %v2776_v6  ;;  %v2859_v4 = vpack.c.bf16 (!%p3931_p6), %v2851_v62, %v2851_v62  ;;  %v2856_v5 = vpack.c.bf16 (!%p3931_p6), %v2848_v63, %v2848_v63  ;;  %v2858_v6 = vpack.c.bf16 (!%p3931_p6), %v2850_v0, %v2850_v0  ;;  %v3932_v61 = vld [vmem:[%s4857_s4] ss:$0 sm:$0xff] (!%p3931_p6) }
 0x238   : > { %2785 = vst [vmem:[#allocation2 + $0x38] sm:$0xff] %v2777_v7  ;;  %v4141_v7 = vld [vmem:[%s4858_s5 + $0x48] sm:$0xff] (!%p3931_p6)   ;;  %3159 = vmatprep.mubr.bf16.mxu0 (!%p3931_p6), %v2857_v3  ;;  %v2860_v53 = vpack.c.bf16 (!%p3931_p6), %v2852_v48, %v2852_v48 }
 0x239   : > { %3199 = vmatprep.mubr.bf16.mxu1 %v2859_v4  ;;  %3160 = vmatmul.mubr.bf16.vlgmr.msra.gmra.mrb[0].mxu0 %v2856_v5 }
 0x23a   : > { %3200 = vmatmul.mubr.bf16.vlgmr.msra.gmra.mrb[0].mxu1 %v2858_v6  ;;  %4046 = vmatpush3.bf16.msra.mxu0 %v4139_v1 }
 0x23b   : > { %4068 = vmatpush3.bf16.msra.mxu1 %v4140_v2  ;;  %4047 = vmatprep.subr.bf16.mxu0 %v4141_v7 }
 0x23c   : > { %4069 = vmatprep.subr.bf16.mxu1 %v4142_v8  ;;  %3503 = vmatprep.mubr.bf16.mxu0 %v2861_v51 }
 0x23e   : > { %4048 = vmatpush3.bf16.msra.mxu0 %v4143_v45  ;;  %v2796_v43 = vld [vmem:[#allocation2 + $0x30] sm:$0xff] }
 0x23f   : > { %4070 = vmatpush3.bf16.msra.mxu1 %v4144_v49  ;;  %4049 = vmatprep.subr.bf16.mxu0 %v4145_v9  ;;  %v2797_v37 = vld [vmem:[#allocation2 + $0x38] sm:$0xff]  ;;  %v2846_v41 = vadd.f32 %v2827_v34, %v2796_v43  ;;  %v3965_v49 = vld [vmem:[%s4859_s6] ss:$0 sm:$0xff] }
 0x240   : > { %4071 = vmatprep.subr.bf16.mxu1 %v4146_v24  ;;  %v2847_v40 = vadd.f32 %v2831_v31, %v2797_v37 }
 0x241   : > { %v2854_v50 = vmax.f32 %v2846_v41, 0.0 }
 0x242   : > { %4050 = vmatpush3.bf16.msra.mxu0 %v4147_v10  ;;  %v2855_v47 = vmax.f32 %v2847_v40, 0.0 }
 0x243   : > { %4072 = vmatpush3.bf16.msra.mxu1 %v4148_v11  ;;  %4051 = vmatprep.subr.bf16.mxu0 %v4149_v60  ;;  %v2862_v56 = vpack.c.bf16 %v2854_v50, %v2854_v50 }
 0x244   : > { %4073 = vmatprep.subr.bf16.mxu1 %v4150_v12  ;;  %v2863_v52 = vpack.c.bf16 %v2855_v47, %v2855_v47 }
 0x246   : > { %4052 = vmatpush3.bf16.msra.mxu0 %v4151_v13  ;;  %3543 = vmatprep.mubr.bf16.mxu1 %v2863_v52 }
 0x247   : > { %4074 = vmatpush3.bf16.msra.mxu1 %v4152_v14  ;;  %4053 = vmatprep.subr.bf16.mxu0 %v4153_v59 }
 0x248   : > { %4075 = vmatprep.subr.bf16.mxu1 %v4154_v15 }
 0x24a   : > { %4054 = vmatpush3.bf16.msra.mxu0 %v4155_v16 }
 0x24b   : > { %4076 = vmatpush3.bf16.msra.mxu1 %v4156_v18  ;;  %4055 = vmatprep.subr.bf16.mxu0 %v4157_v19 }
 0x24c   : > { %4077 = vmatprep.subr.bf16.mxu1 %v4158_v21 }
 0x24e   : > { %4056 = vmatpush3.bf16.msra.mxu0 %v4159_v22 }
 0x24f   : > { %4078 = vmatpush3.bf16.msra.mxu1 %v4160_v23  ;;  %4057 = vmatprep.subr.bf16.mxu0 %v4161_v20 }
 0x250   : > { %4079 = vmatprep.subr.bf16.mxu1 %v4162_v26 }
 0x252   : > { %4058 = vmatpush3.bf16.msra.mxu0 %v4163_v28 }
 0x253   : > { %4080 = vmatpush3.bf16.msra.mxu1 %v4164_v33  ;;  %4059 = vmatprep.subr.bf16.mxu0 %v4165_v29 }
 0x254   : > { %4081 = vmatprep.subr.bf16.mxu1 %v4166_v27 }
 0x256   : > { %4060 = vmatpush3.bf16.msra.mxu0 %v4167_v35 }
 0x257   : > { %4082 = vmatpush3.bf16.msra.mxu1 %v4168_v38 }
 0x259   : > { %3504 = vmatmul.mubr.bf16.vlgmr.msra.gmra.mrb[4].mxu0 %v2860_v53 }
 0x25a   : > { %3544 = vmatmul.mubr.bf16.vlgmr.msra.gmra.mrb[4].mxu1 %v2862_v56 }
 0x30c   : > { %v4017_v57 = vpop.f32.mrb[0].mxu0 }
 0x30d   : > { %v4039_v58 = vpop.f32.mrb[0].mxu1  ;;  %v4018_v62 = vpop.f32.mrb[1].mxu0 }
 0x30e   : > { %v4040_v63 = vpop.f32.mrb[1].mxu1  ;;  %v4019_v0 = vadd.f32 %v4018_v62, %v4017_v57  ;;  %v4020_v2 = vpop.f32.mrb[2].mxu0 }
 0x30f   : > { %v4041_v1 = vadd.f32 %v4040_v63, %v4039_v58  ;;  %v4042_v3 = vpop.f32.mrb[2].mxu1  ;;  %v4021_v4 = vpop.f32.mrb[3].mxu0 }
 0x310   : > { %v4043_v5 = vpop.f32.mrb[3].mxu1  ;;  %v3162_v6 = vadd.f32 %v4019_v0, %v3932_v61 }
 0x312   : > { %v3202_v7 = vadd.f32 %v4041_v1, %v3162_v6 }
 0x314   : > { %3207 = vst [vmem:[%s4860_s7] sm:$0xff] %v3202_v7 }
 0x32c   : > { %v4061_v8 = vpop.f32.mrb[4].mxu0 }
 0x32d   : > { %v4083_v45 = vpop.f32.mrb[4].mxu1  ;;  %v4062_v9 = vpop.f32.mrb[5].mxu0 }
 0x32e   : > { %v4084_v24 = vpop.f32.mrb[5].mxu1  ;;  %v4063_v10 = vadd.f32 %v4062_v9, %v4061_v8  ;;  %v4064_v60 = vpop.f32.mrb[6].mxu0 }
 0x32f   : > { %v4085_v11 = vadd.f32 %v4084_v24, %v4083_v45  ;;  %v4086_v12 = vpop.f32.mrb[6].mxu1  ;;  %v4065_v13 = vpop.f32.mrb[7].mxu0 }
 0x330   : > { %v4087_v14 = vpop.f32.mrb[7].mxu1  ;;  %v3506_v59 = vadd.f32 %v4063_v10, %v3965_v49 }
 0x332   : > { %v3546_v15 = vadd.f32 %v4085_v11, %v3506_v59 }
 0x334   : > { %3551 = vst [vmem:[%s4861_s8] sm:$0xff] %v3546_v15 }
 0x335 PF: > { %s19_s27 = sadd.s32 1, %s4175_s27  }
 0x336   : > { %p16_p7 = scmp.ge.s32.totalorder %s19_s27, 7  }
 0x338   :  { %18 = sbr.rel (!%p16_p7) target bundleno = 1 (0x1), region = 93 }

</bundles_post_ra>
